<compile_context>
chip_gen: v6e
topology: v6e:2x2x1
jax: 0.10.0
libtpu: 0.0.40
codegen_flags: <defaults>
</compile_context>

<pallas_src>
import functools

import jax
import jax.numpy as jnp
import numpy as np
from jax.experimental import pallas as pl
from jax.experimental.pallas import tpu as pltpu


def attention_kernel(x_ref, wqkv_ref, bqkv_ref, wproj_ref, bproj_ref,
                     out_ref, qkv_ref, heads_ref, *, n_heads, q_chunk):
    C = x_ref.shape[1]
    HW = x_ref.shape[2]
    emb = C // n_heads
    scale = 1.0 / float(np.sqrt(emb))

    x = x_ref[0]  # (C, HW), HW on lanes

    # ---- fused QKV projection: single (3C, C) @ (C, HW) matmul ----
    # Parked in VMEM scratch so its 24-vreg value does not stay live in
    # registers across the whole head loop.
    qkv_ref[...] = (jnp.dot(wqkv_ref[...], x, preferred_element_type=jnp.float32)
                    + bqkv_ref[...])                     # (3C, HW)

    # ---- per-head attention, tiled over 128-wide query chunks ----
    for h in range(n_heads):
        k = qkv_ref[C + h * emb:C + (h + 1) * emb, :]          # (emb, HW)
        v = qkv_ref[2 * C + h * emb:2 * C + (h + 1) * emb, :]  # (emb, HW)

        for c0 in range(0, HW, q_chunk):
            q = qkv_ref[h * emb:(h + 1) * emb, c0:c0 + q_chunk] * scale  # (emb, qc)

            # scores_T[j, i] = sum_e k[e, j] * q[e, i]  -> (HW, qc)
            # (softmax over keys = axis 0; PV below stays a native matmul)
            s_t = jax.lax.dot_general(
                k, q, (((0,), (0,)), ((), ())),
                preferred_element_type=jnp.float32)

            m = jnp.max(s_t, axis=0, keepdims=True)      # (1, qc)
            p = jnp.exp(s_t - m)                         # (HW, qc), unnormalized
            l = jnp.sum(p, axis=0, keepdims=True)        # (1, qc)
            # TODO(synk): attention dropout on p omitted (eval/inference mode).

            # head_out[e, i] = sum_j v[e, j] * p[j, i]  -> (emb, qc), native (M,K)@(K,N)
            head_out = jnp.dot(v, p, preferred_element_type=jnp.float32)

            # Deferred normalization: scale the small result by 1/l.
            inv_l = pl.reciprocal(l, approx=True)
            inv_l = inv_l * (2.0 - l * inv_l)            # one Newton step -> ~f32 accurate
            heads_ref[h * emb:(h + 1) * emb, c0:c0 + q_chunk] = head_out * inv_l

    # ---- output projection: single (C, C) @ (C, HW) matmul ----
    out = (jnp.dot(wproj_ref[...], heads_ref[...], preferred_element_type=jnp.float32)
           + bproj_ref[...])
    # TODO(synk): output dropout omitted (eval/inference mode).
    out_ref[0] = out                                      # (C, HW), lane-dense store


def attention_forward(x_nchw, wqkv, bqkv, wproj, bproj, n_heads, q_chunk=128):
    """x_nchw: (N, C, H, W) float32 -> (N, C, H, W). Matches PyTorch Attention (eval)."""
    N, C, H, W = x_nchw.shape
    HW = H * W
    assert C % n_heads == 0
    q_chunk = min(q_chunk, HW)
    assert HW % q_chunk == 0

    # NCHW is already channel-major / spatial-last: reshape is free (no transpose).
    x = x_nchw.reshape(N, C, HW).astype(jnp.float32)

    kernel = functools.partial(attention_kernel, n_heads=n_heads, q_chunk=q_chunk)

    out = pl.pallas_call(
        kernel,
        out_shape=jax.ShapeDtypeStruct((N, C, HW), jnp.float32),
        grid=(N,),
        in_specs=[
            pl.BlockSpec((1, C, HW), lambda i: (i, 0, 0)),   # x
            pl.BlockSpec((3 * C, C), lambda i: (0, 0)),      # W_qkv
            pl.BlockSpec((3 * C, 1), lambda i: (0, 0)),      # b_qkv (column)
            pl.BlockSpec((C, C), lambda i: (0, 0)),          # W_proj
            pl.BlockSpec((C, 1), lambda i: (0, 0)),          # b_proj (column)
        ],
        out_specs=pl.BlockSpec((1, C, HW), lambda i: (i, 0, 0)),
        scratch_shapes=[
            pltpu.VMEM((3 * C, HW), jnp.float32),            # qkv projection
            pltpu.VMEM((C, HW), jnp.float32),                # concat'd head outputs
        ],
        compiler_params=pltpu.CompilerParams(
            dimension_semantics=("parallel",)),
    )(x,
      wqkv.astype(jnp.float32),
      bqkv.reshape(3 * C, 1).astype(jnp.float32),
      wproj.astype(jnp.float32),
      bproj.reshape(C, 1).astype(jnp.float32))

    return out.reshape(N, C, H, W)


# ---------------- pure-JAX reference (independent check, mirrors PyTorch) ----------------
def attention_reference(x, wqkv, bqkv, wproj, bproj, n_heads):
    N, C, H, W = x.shape
    HW = H * W
    emb = C // n_heads

    xf = x.reshape(N, C, HW)
    qkv = jnp.einsum('oc,ncs->nos', wqkv, xf) + bqkv[None, :, None]       # (N, 3C, HW)
    qkv = qkv.reshape(N, 3 * n_heads, emb, HW).transpose(0, 1, 3, 2)      # (N, 3h, HW, emb)
    q, k, v = jnp.split(qkv, 3, axis=1)                                   # each (N, h, HW, emb)

    scores = jnp.einsum('nhqe,nhke->nhqk', q, k) / np.sqrt(emb)
    attn = jax.nn.softmax(scores, axis=-1)
    out_h = jnp.einsum('nhqk,nhke->nhqe', attn, v)                        # (N, h, HW, emb)

    out_h = out_h.transpose(0, 2, 1, 3).reshape(N, HW, C)                 # (N, HW, C)
    out_c = out_h.transpose(0, 2, 1)                                      # (N, C, HW)
    y = jnp.einsum('oc,ncs->nos', wproj, out_c) + bproj[None, :, None]
    return y.reshape(N, C, H, W)


if __name__ == "__main__":
    # module config: Attention(n_heads=4, in_channel=32, dropout=0.1) in eval mode
    n_heads, C = 4, 32
    N, H, W = 2, 16, 16

    key = jax.random.PRNGKey(0)
    keys = jax.random.split(key, 5)

    # deterministic synthetic parameters (1x1 convs == per-pixel linear maps)
    wqkv = 0.2 * jax.random.normal(keys[0], (3 * C, C), jnp.float32)
    bqkv = 0.05 * jax.random.normal(keys[1], (3 * C,), jnp.float32)
    wproj = 0.2 * jax.random.normal(keys[2], (C, C), jnp.float32)
    bproj = 0.05 * jax.random.normal(keys[3], (C,), jnp.float32)

    x = jax.random.normal(keys[4], (N, C, H, W), jnp.float32)

    out = attention_forward(x, wqkv, bqkv, wproj, bproj, n_heads)
    out = jax.block_until_ready(out)

    ref = jax.block_until_ready(
        attention_reference(x, wqkv, bqkv, wproj, bproj, n_heads))
    np.testing.assert_allclose(np.asarray(out), np.asarray(ref),
                               atol=1e-3, rtol=1e-3)
    assert out.shape == (N, C, H, W)
    print("KERNEL_OK")
</pallas_src>

<mosaic_0001>
module attributes {stable_mosaic.version = 11 : i64} {
  func.func @attention_kernel(%arg0: i32, %arg1: memref<1x32x256xf32, #tpu.memory_space<vmem>>, %arg2: memref<96x32xf32, #tpu.memory_space<vmem>>, %arg3: memref<96x1xf32, #tpu.memory_space<vmem>>, %arg4: memref<32x32xf32, #tpu.memory_space<vmem>>, %arg5: memref<32x1xf32, #tpu.memory_space<vmem>>, %arg6: memref<1x32x256xf32, #tpu.memory_space<vmem>>, %arg7: memref<96x256xf32, #tpu.memory_space<vmem>>, %arg8: memref<32x256xf32, #tpu.memory_space<vmem>>) attributes {dimension_semantics = [#tpu.dimension_semantics<parallel>], iteration_bounds = array<i64: 2>, scalar_prefetch = 0 : i64, scratch_operands = 2 : i64, tpu.core_type = #tpu.core_type<tc>, window_params = [{transform_indices = @transform_0, window_bounds = array<i64: 1, 32, 256>}, {pipeline_mode = #tpu.pipeline_mode<synchronous>, transform_indices = @transform_1, window_bounds = array<i64: 96, 32>}, {pipeline_mode = #tpu.pipeline_mode<synchronous>, transform_indices = @transform_2, window_bounds = array<i64: 96, 1>}, {pipeline_mode = #tpu.pipeline_mode<synchronous>, transform_indices = @transform_3, window_bounds = array<i64: 32, 32>}, {pipeline_mode = #tpu.pipeline_mode<synchronous>, transform_indices = @transform_4, window_bounds = array<i64: 32, 1>}, {transform_indices = @transform_5, window_bounds = array<i64: 1, 32, 256>}]} {
    %c0 = arith.constant 0 : index
    %c0_0 = arith.constant 0 : index
    %c0_1 = arith.constant 0 : index
    %0 = vector.load %arg1[%c0, %c0_0, %c0_1] : memref<1x32x256xf32, #tpu.memory_space<vmem>>, vector<1x32x256xf32>
    %1 = vector.shape_cast %0 : vector<1x32x256xf32> to vector<32x256xf32>
    %c0_2 = arith.constant 0 : index
    %c0_3 = arith.constant 0 : index
    %2 = vector.load %arg2[%c0_2, %c0_3] : memref<96x32xf32, #tpu.memory_space<vmem>>, vector<96x32xf32>
    %cst = arith.constant dense<0.000000e+00> : vector<96x256xf32>
    %3 = tpu.matmul %2, %1, %cst {dimension_numbers = #tpu.dot_dimension_numbers<[1], [0], [0], [1], [0, 0, 1, 1], [], []>} : vector<96x32xf32>, vector<32x256xf32>, vector<96x256xf32> -> vector<96x256xf32>
    %c0_4 = arith.constant 0 : index
    %c0_5 = arith.constant 0 : index
    %4 = vector.load %arg3[%c0_4, %c0_5] : memref<96x1xf32, #tpu.memory_space<vmem>>, vector<96x1xf32>
    %5 = vector.broadcast %4 : vector<96x1xf32> to vector<96x256xf32>
    %6 = arith.addf %3, %5 : vector<96x256xf32>
    %c0_6 = arith.constant 0 : index
    %c0_7 = arith.constant 0 : index
    %7 = vector.load %arg7[%c0_6, %c0_7] : memref<96x256xf32, #tpu.memory_space<vmem>>, vector<96x256xf32>
    tpu.vector_store %arg7[%c0_6, %c0_7], %6 {strides = array<i32>} : memref<96x256xf32, #tpu.memory_space<vmem>>, vector<96x256xf32>,
    %c32 = arith.constant 32 : index
    %c0_8 = arith.constant 0 : index
    %8 = vector.load %arg7[%c32, %c0_8] : memref<96x256xf32, #tpu.memory_space<vmem>>, vector<8x256xf32>
    %c64 = arith.constant 64 : index
    %c0_9 = arith.constant 0 : index
    %9 = vector.load %arg7[%c64, %c0_9] : memref<96x256xf32, #tpu.memory_space<vmem>>, vector<8x256xf32>
    %c0_10 = arith.constant 0 : index
    %c0_11 = arith.constant 0 : index
    %10 = vector.load %arg7[%c0_10, %c0_11] : memref<96x256xf32, #tpu.memory_space<vmem>>, vector<8x128xf32>
    %cst_12 = arith.constant 0.353553385 : f32
    %11 = vector.broadcast %cst_12 : f32 to vector<8x128xf32>
    %12 = arith.mulf %10, %11 : vector<8x128xf32>
    %cst_13 = arith.constant dense<0.000000e+00> : vector<256x128xf32>
    %13 = tpu.matmul %8, %12, %cst_13 {dimension_numbers = #tpu.dot_dimension_numbers<[0], [0], [1], [1], [0, 1, 1, 1], [], []>} : vector<8x256xf32>, vector<8x128xf32>, vector<256x128xf32> -> vector<256x128xf32>
    %cst_14 = arith.constant dense<0xFF800000> : vector<128xf32>
    %14 = vector.multi_reduction <maximumf>, %13, %cst_14 [0] : vector<256x128xf32> to vector<128xf32>
    %15 = vector.shape_cast %14 : vector<128xf32> to vector<1x128xf32>
    %16 = vector.broadcast %15 : vector<1x128xf32> to vector<256x128xf32>
    %17 = arith.subf %13, %16 : vector<256x128xf32>
    %18 = math.exp %17 : vector<256x128xf32>
    %cst_15 = arith.constant dense<0.000000e+00> : vector<128xf32>
    %19 = vector.multi_reduction <add>, %18, %cst_15 [0] : vector<256x128xf32> to vector<128xf32>
    %20 = vector.shape_cast %19 : vector<128xf32> to vector<1x128xf32>
    %cst_16 = arith.constant dense<0.000000e+00> : vector<8x128xf32>
    %21 = tpu.matmul %9, %18, %cst_16 {dimension_numbers = #tpu.dot_dimension_numbers<[1], [0], [0], [1], [0, 0, 1, 1], [], []>} : vector<8x256xf32>, vector<256x128xf32>, vector<8x128xf32> -> vector<8x128xf32>
    %22 = tpu.reciprocal %20 {approx = true} : vector<1x128xf32> -> vector<1x128xf32>
    %23 = arith.mulf %20, %22 : vector<1x128xf32>
    %cst_17 = arith.constant 2.000000e+00 : f32
    %24 = vector.broadcast %cst_17 : f32 to vector<1x128xf32>
    %25 = arith.subf %24, %23 : vector<1x128xf32>
    %26 = arith.mulf %22, %25 : vector<1x128xf32>
    %27 = vector.broadcast %26 : vector<1x128xf32> to vector<8x128xf32>
    %28 = arith.mulf %21, %27 : vector<8x128xf32>
    %c0_18 = arith.constant 0 : index
    %c0_19 = arith.constant 0 : index
    %29 = vector.load %arg8[%c0_18, %c0_19] : memref<32x256xf32, #tpu.memory_space<vmem>>, vector<8x128xf32>
    tpu.vector_store %arg8[%c0_18, %c0_19], %28 {strides = array<i32>} : memref<32x256xf32, #tpu.memory_space<vmem>>, vector<8x128xf32>,
    %c0_20 = arith.constant 0 : index
    %c128 = arith.constant 128 : index
    %30 = vector.load %arg7[%c0_20, %c128] : memref<96x256xf32, #tpu.memory_space<vmem>>, vector<8x128xf32>
    %cst_21 = arith.constant 0.353553385 : f32
    %31 = vector.broadcast %cst_21 : f32 to vector<8x128xf32>
    %32 = arith.mulf %30, %31 : vector<8x128xf32>
    %cst_22 = arith.constant dense<0.000000e+00> : vector<256x128xf32>
    %33 = tpu.matmul %8, %32, %cst_22 {dimension_numbers = #tpu.dot_dimension_numbers<[0], [0], [1], [1], [0, 1, 1, 1], [], []>} : vector<8x256xf32>, vector<8x128xf32>, vector<256x128xf32> -> vector<256x128xf32>
    %cst_23 = arith.constant dense<0xFF800000> : vector<128xf32>
    %34 = vector.multi_reduction <maximumf>, %33, %cst_23 [0] : vector<256x128xf32> to vector<128xf32>
    %35 = vector.shape_cast %34 : vector<128xf32> to vector<1x128xf32>
    %36 = vector.broadcast %35 : vector<1x128xf32> to vector<256x128xf32>
    %37 = arith.subf %33, %36 : vector<256x128xf32>
    %38 = math.exp %37 : vector<256x128xf32>
    %cst_24 = arith.constant dense<0.000000e+00> : vector<128xf32>
    %39 = vector.multi_reduction <add>, %38, %cst_24 [0] : vector<256x128xf32> to vector<128xf32>
    %40 = vector.shape_cast %39 : vector<128xf32> to vector<1x128xf32>
    %cst_25 = arith.constant dense<0.000000e+00> : vector<8x128xf32>
    %41 = tpu.matmul %9, %38, %cst_25 {dimension_numbers = #tpu.dot_dimension_numbers<[1], [0], [0], [1], [0, 0, 1, 1], [], []>} : vector<8x256xf32>, vector<256x128xf32>, vector<8x128xf32> -> vector<8x128xf32>
    %42 = tpu.reciprocal %40 {approx = true} : vector<1x128xf32> -> vector<1x128xf32>
    %43 = arith.mulf %40, %42 : vector<1x128xf32>
    %cst_26 = arith.constant 2.000000e+00 : f32
    %44 = vector.broadcast %cst_26 : f32 to vector<1x128xf32>
    %45 = arith.subf %44, %43 : vector<1x128xf32>
    %46 = arith.mulf %42, %45 : vector<1x128xf32>
    %47 = vector.broadcast %46 : vector<1x128xf32> to vector<8x128xf32>
    %48 = arith.mulf %41, %47 : vector<8x128xf32>
    %c0_27 = arith.constant 0 : index
    %c128_28 = arith.constant 128 : index
    %49 = vector.load %arg8[%c0_27, %c128_28] : memref<32x256xf32, #tpu.memory_space<vmem>>, vector<8x128xf32>
    tpu.vector_store %arg8[%c0_27, %c128_28], %48 {strides = array<i32>} : memref<32x256xf32, #tpu.memory_space<vmem>>, vector<8x128xf32>,
    %c40 = arith.constant 40 : index
    %c0_29 = arith.constant 0 : index
    %50 = vector.load %arg7[%c40, %c0_29] : memref<96x256xf32, #tpu.memory_space<vmem>>, vector<8x256xf32>
    %c72 = arith.constant 72 : index
    %c0_30 = arith.constant 0 : index
    %51 = vector.load %arg7[%c72, %c0_30] : memref<96x256xf32, #tpu.memory_space<vmem>>, vector<8x256xf32>
    %c8 = arith.constant 8 : index
    %c0_31 = arith.constant 0 : index
    %52 = vector.load %arg7[%c8, %c0_31] : memref<96x256xf32, #tpu.memory_space<vmem>>, vector<8x128xf32>
    %cst_32 = arith.constant 0.353553385 : f32
    %53 = vector.broadcast %cst_32 : f32 to vector<8x128xf32>
    %54 = arith.mulf %52, %53 : vector<8x128xf32>
    %cst_33 = arith.constant dense<0.000000e+00> : vector<256x128xf32>
    %55 = tpu.matmul %50, %54, %cst_33 {dimension_numbers = #tpu.dot_dimension_numbers<[0], [0], [1], [1], [0, 1, 1, 1], [], []>} : vector<8x256xf32>, vector<8x128xf32>, vector<256x128xf32> -> vector<256x128xf32>
    %cst_34 = arith.constant dense<0xFF800000> : vector<128xf32>
    %56 = vector.multi_reduction <maximumf>, %55, %cst_34 [0] : vector<256x128xf32> to vector<128xf32>
    %57 = vector.shape_cast %56 : vector<128xf32> to vector<1x128xf32>
    %58 = vector.broadcast %57 : vector<1x128xf32> to vector<256x128xf32>
    %59 = arith.subf %55, %58 : vector<256x128xf32>
    %60 = math.exp %59 : vector<256x128xf32>
    %cst_35 = arith.constant dense<0.000000e+00> : vector<128xf32>
    %61 = vector.multi_reduction <add>, %60, %cst_35 [0] : vector<256x128xf32> to vector<128xf32>
    %62 = vector.shape_cast %61 : vector<128xf32> to vector<1x128xf32>
    %cst_36 = arith.constant dense<0.000000e+00> : vector<8x128xf32>
    %63 = tpu.matmul %51, %60, %cst_36 {dimension_numbers = #tpu.dot_dimension_numbers<[1], [0], [0], [1], [0, 0, 1, 1], [], []>} : vector<8x256xf32>, vector<256x128xf32>, vector<8x128xf32> -> vector<8x128xf32>
    %64 = tpu.reciprocal %62 {approx = true} : vector<1x128xf32> -> vector<1x128xf32>
    %65 = arith.mulf %62, %64 : vector<1x128xf32>
    %cst_37 = arith.constant 2.000000e+00 : f32
    %66 = vector.broadcast %cst_37 : f32 to vector<1x128xf32>
    %67 = arith.subf %66, %65 : vector<1x128xf32>
    %68 = arith.mulf %64, %67 : vector<1x128xf32>
    %69 = vector.broadcast %68 : vector<1x128xf32> to vector<8x128xf32>
    %70 = arith.mulf %63, %69 : vector<8x128xf32>
    %c8_38 = arith.constant 8 : index
    %c0_39 = arith.constant 0 : index
    %71 = vector.load %arg8[%c8_38, %c0_39] : memref<32x256xf32, #tpu.memory_space<vmem>>, vector<8x128xf32>
    tpu.vector_store %arg8[%c8_38, %c0_39], %70 {strides = array<i32>} : memref<32x256xf32, #tpu.memory_space<vmem>>, vector<8x128xf32>,
    %c8_40 = arith.constant 8 : index
    %c128_41 = arith.constant 128 : index
    %72 = vector.load %arg7[%c8_40, %c128_41] : memref<96x256xf32, #tpu.memory_space<vmem>>, vector<8x128xf32>
    %cst_42 = arith.constant 0.353553385 : f32
    %73 = vector.broadcast %cst_42 : f32 to vector<8x128xf32>
    %74 = arith.mulf %72, %73 : vector<8x128xf32>
    %cst_43 = arith.constant dense<0.000000e+00> : vector<256x128xf32>
    %75 = tpu.matmul %50, %74, %cst_43 {dimension_numbers = #tpu.dot_dimension_numbers<[0], [0], [1], [1], [0, 1, 1, 1], [], []>} : vector<8x256xf32>, vector<8x128xf32>, vector<256x128xf32> -> vector<256x128xf32>
    %cst_44 = arith.constant dense<0xFF800000> : vector<128xf32>
    %76 = vector.multi_reduction <maximumf>, %75, %cst_44 [0] : vector<256x128xf32> to vector<128xf32>
    %77 = vector.shape_cast %76 : vector<128xf32> to vector<1x128xf32>
    %78 = vector.broadcast %77 : vector<1x128xf32> to vector<256x128xf32>
    %79 = arith.subf %75, %78 : vector<256x128xf32>
    %80 = math.exp %79 : vector<256x128xf32>
    %cst_45 = arith.constant dense<0.000000e+00> : vector<128xf32>
    %81 = vector.multi_reduction <add>, %80, %cst_45 [0] : vector<256x128xf32> to vector<128xf32>
    %82 = vector.shape_cast %81 : vector<128xf32> to vector<1x128xf32>
    %cst_46 = arith.constant dense<0.000000e+00> : vector<8x128xf32>
    %83 = tpu.matmul %51, %80, %cst_46 {dimension_numbers = #tpu.dot_dimension_numbers<[1], [0], [0], [1], [0, 0, 1, 1], [], []>} : vector<8x256xf32>, vector<256x128xf32>, vector<8x128xf32> -> vector<8x128xf32>
    %84 = tpu.reciprocal %82 {approx = true} : vector<1x128xf32> -> vector<1x128xf32>
    %85 = arith.mulf %82, %84 : vector<1x128xf32>
    %cst_47 = arith.constant 2.000000e+00 : f32
    %86 = vector.broadcast %cst_47 : f32 to vector<1x128xf32>
    %87 = arith.subf %86, %85 : vector<1x128xf32>
    %88 = arith.mulf %84, %87 : vector<1x128xf32>
    %89 = vector.broadcast %88 : vector<1x128xf32> to vector<8x128xf32>
    %90 = arith.mulf %83, %89 : vector<8x128xf32>
    %c8_48 = arith.constant 8 : index
    %c128_49 = arith.constant 128 : index
    %91 = vector.load %arg8[%c8_48, %c128_49] : memref<32x256xf32, #tpu.memory_space<vmem>>, vector<8x128xf32>
    tpu.vector_store %arg8[%c8_48, %c128_49], %90 {strides = array<i32>} : memref<32x256xf32, #tpu.memory_space<vmem>>, vector<8x128xf32>,
    %c48 = arith.constant 48 : index
    %c0_50 = arith.constant 0 : index
    %92 = vector.load %arg7[%c48, %c0_50] : memref<96x256xf32, #tpu.memory_space<vmem>>, vector<8x256xf32>
    %c80 = arith.constant 80 : index
    %c0_51 = arith.constant 0 : index
    %93 = vector.load %arg7[%c80, %c0_51] : memref<96x256xf32, #tpu.memory_space<vmem>>, vector<8x256xf32>
    %c16 = arith.constant 16 : index
    %c0_52 = arith.constant 0 : index
    %94 = vector.load %arg7[%c16, %c0_52] : memref<96x256xf32, #tpu.memory_space<vmem>>, vector<8x128xf32>
    %cst_53 = arith.constant 0.353553385 : f32
    %95 = vector.broadcast %cst_53 : f32 to vector<8x128xf32>
    %96 = arith.mulf %94, %95 : vector<8x128xf32>
    %cst_54 = arith.constant dense<0.000000e+00> : vector<256x128xf32>
    %97 = tpu.matmul %92, %96, %cst_54 {dimension_numbers = #tpu.dot_dimension_numbers<[0], [0], [1], [1], [0, 1, 1, 1], [], []>} : vector<8x256xf32>, vector<8x128xf32>, vector<256x128xf32> -> vector<256x128xf32>
    %cst_55 = arith.constant dense<0xFF800000> : vector<128xf32>
    %98 = vector.multi_reduction <maximumf>, %97, %cst_55 [0] : vector<256x128xf32> to vector<128xf32>
    %99 = vector.shape_cast %98 : vector<128xf32> to vector<1x128xf32>
    %100 = vector.broadcast %99 : vector<1x128xf32> to vector<256x128xf32>
    %101 = arith.subf %97, %100 : vector<256x128xf32>
    %102 = math.exp %101 : vector<256x128xf32>
    %cst_56 = arith.constant dense<0.000000e+00> : vector<128xf32>
    %103 = vector.multi_reduction <add>, %102, %cst_56 [0] : vector<256x128xf32> to vector<128xf32>
    %104 = vector.shape_cast %103 : vector<128xf32> to vector<1x128xf32>
    %cst_57 = arith.constant dense<0.000000e+00> : vector<8x128xf32>
    %105 = tpu.matmul %93, %102, %cst_57 {dimension_numbers = #tpu.dot_dimension_numbers<[1], [0], [0], [1], [0, 0, 1, 1], [], []>} : vector<8x256xf32>, vector<256x128xf32>, vector<8x128xf32> -> vector<8x128xf32>
    %106 = tpu.reciprocal %104 {approx = true} : vector<1x128xf32> -> vector<1x128xf32>
    %107 = arith.mulf %104, %106 : vector<1x128xf32>
    %cst_58 = arith.constant 2.000000e+00 : f32
    %108 = vector.broadcast %cst_58 : f32 to vector<1x128xf32>
    %109 = arith.subf %108, %107 : vector<1x128xf32>
    %110 = arith.mulf %106, %109 : vector<1x128xf32>
    %111 = vector.broadcast %110 : vector<1x128xf32> to vector<8x128xf32>
    %112 = arith.mulf %105, %111 : vector<8x128xf32>
    %c16_59 = arith.constant 16 : index
    %c0_60 = arith.constant 0 : index
    %113 = vector.load %arg8[%c16_59, %c0_60] : memref<32x256xf32, #tpu.memory_space<vmem>>, vector<8x128xf32>
    tpu.vector_store %arg8[%c16_59, %c0_60], %112 {strides = array<i32>} : memref<32x256xf32, #tpu.memory_space<vmem>>, vector<8x128xf32>,
    %c16_61 = arith.constant 16 : index
    %c128_62 = arith.constant 128 : index
    %114 = vector.load %arg7[%c16_61, %c128_62] : memref<96x256xf32, #tpu.memory_space<vmem>>, vector<8x128xf32>
    %cst_63 = arith.constant 0.353553385 : f32
    %115 = vector.broadcast %cst_63 : f32 to vector<8x128xf32>
    %116 = arith.mulf %114, %115 : vector<8x128xf32>
    %cst_64 = arith.constant dense<0.000000e+00> : vector<256x128xf32>
    %117 = tpu.matmul %92, %116, %cst_64 {dimension_numbers = #tpu.dot_dimension_numbers<[0], [0], [1], [1], [0, 1, 1, 1], [], []>} : vector<8x256xf32>, vector<8x128xf32>, vector<256x128xf32> -> vector<256x128xf32>
    %cst_65 = arith.constant dense<0xFF800000> : vector<128xf32>
    %118 = vector.multi_reduction <maximumf>, %117, %cst_65 [0] : vector<256x128xf32> to vector<128xf32>
    %119 = vector.shape_cast %118 : vector<128xf32> to vector<1x128xf32>
    %120 = vector.broadcast %119 : vector<1x128xf32> to vector<256x128xf32>
    %121 = arith.subf %117, %120 : vector<256x128xf32>
    %122 = math.exp %121 : vector<256x128xf32>
    %cst_66 = arith.constant dense<0.000000e+00> : vector<128xf32>
    %123 = vector.multi_reduction <add>, %122, %cst_66 [0] : vector<256x128xf32> to vector<128xf32>
    %124 = vector.shape_cast %123 : vector<128xf32> to vector<1x128xf32>
    %cst_67 = arith.constant dense<0.000000e+00> : vector<8x128xf32>
    %125 = tpu.matmul %93, %122, %cst_67 {dimension_numbers = #tpu.dot_dimension_numbers<[1], [0], [0], [1], [0, 0, 1, 1], [], []>} : vector<8x256xf32>, vector<256x128xf32>, vector<8x128xf32> -> vector<8x128xf32>
    %126 = tpu.reciprocal %124 {approx = true} : vector<1x128xf32> -> vector<1x128xf32>
    %127 = arith.mulf %124, %126 : vector<1x128xf32>
    %cst_68 = arith.constant 2.000000e+00 : f32
    %128 = vector.broadcast %cst_68 : f32 to vector<1x128xf32>
    %129 = arith.subf %128, %127 : vector<1x128xf32>
    %130 = arith.mulf %126, %129 : vector<1x128xf32>
    %131 = vector.broadcast %130 : vector<1x128xf32> to vector<8x128xf32>
    %132 = arith.mulf %125, %131 : vector<8x128xf32>
    %c16_69 = arith.constant 16 : index
    %c128_70 = arith.constant 128 : index
    %133 = vector.load %arg8[%c16_69, %c128_70] : memref<32x256xf32, #tpu.memory_space<vmem>>, vector<8x128xf32>
    tpu.vector_store %arg8[%c16_69, %c128_70], %132 {strides = array<i32>} : memref<32x256xf32, #tpu.memory_space<vmem>>, vector<8x128xf32>,
    %c56 = arith.constant 56 : index
    %c0_71 = arith.constant 0 : index
    %134 = vector.load %arg7[%c56, %c0_71] : memref<96x256xf32, #tpu.memory_space<vmem>>, vector<8x256xf32>
    %c88 = arith.constant 88 : index
    %c0_72 = arith.constant 0 : index
    %135 = vector.load %arg7[%c88, %c0_72] : memref<96x256xf32, #tpu.memory_space<vmem>>, vector<8x256xf32>
    %c24 = arith.constant 24 : index
    %c0_73 = arith.constant 0 : index
    %136 = vector.load %arg7[%c24, %c0_73] : memref<96x256xf32, #tpu.memory_space<vmem>>, vector<8x128xf32>
    %cst_74 = arith.constant 0.353553385 : f32
    %137 = vector.broadcast %cst_74 : f32 to vector<8x128xf32>
    %138 = arith.mulf %136, %137 : vector<8x128xf32>
    %cst_75 = arith.constant dense<0.000000e+00> : vector<256x128xf32>
    %139 = tpu.matmul %134, %138, %cst_75 {dimension_numbers = #tpu.dot_dimension_numbers<[0], [0], [1], [1], [0, 1, 1, 1], [], []>} : vector<8x256xf32>, vector<8x128xf32>, vector<256x128xf32> -> vector<256x128xf32>
    %cst_76 = arith.constant dense<0xFF800000> : vector<128xf32>
    %140 = vector.multi_reduction <maximumf>, %139, %cst_76 [0] : vector<256x128xf32> to vector<128xf32>
    %141 = vector.shape_cast %140 : vector<128xf32> to vector<1x128xf32>
    %142 = vector.broadcast %141 : vector<1x128xf32> to vector<256x128xf32>
    %143 = arith.subf %139, %142 : vector<256x128xf32>
    %144 = math.exp %143 : vector<256x128xf32>
    %cst_77 = arith.constant dense<0.000000e+00> : vector<128xf32>
    %145 = vector.multi_reduction <add>, %144, %cst_77 [0] : vector<256x128xf32> to vector<128xf32>
    %146 = vector.shape_cast %145 : vector<128xf32> to vector<1x128xf32>
    %cst_78 = arith.constant dense<0.000000e+00> : vector<8x128xf32>
    %147 = tpu.matmul %135, %144, %cst_78 {dimension_numbers = #tpu.dot_dimension_numbers<[1], [0], [0], [1], [0, 0, 1, 1], [], []>} : vector<8x256xf32>, vector<256x128xf32>, vector<8x128xf32> -> vector<8x128xf32>
    %148 = tpu.reciprocal %146 {approx = true} : vector<1x128xf32> -> vector<1x128xf32>
    %149 = arith.mulf %146, %148 : vector<1x128xf32>
    %cst_79 = arith.constant 2.000000e+00 : f32
    %150 = vector.broadcast %cst_79 : f32 to vector<1x128xf32>
    %151 = arith.subf %150, %149 : vector<1x128xf32>
    %152 = arith.mulf %148, %151 : vector<1x128xf32>
    %153 = vector.broadcast %152 : vector<1x128xf32> to vector<8x128xf32>
    %154 = arith.mulf %147, %153 : vector<8x128xf32>
    %c24_80 = arith.constant 24 : index
    %c0_81 = arith.constant 0 : index
    %155 = vector.load %arg8[%c24_80, %c0_81] : memref<32x256xf32, #tpu.memory_space<vmem>>, vector<8x128xf32>
    tpu.vector_store %arg8[%c24_80, %c0_81], %154 {strides = array<i32>} : memref<32x256xf32, #tpu.memory_space<vmem>>, vector<8x128xf32>,
    %c24_82 = arith.constant 24 : index
    %c128_83 = arith.constant 128 : index
    %156 = vector.load %arg7[%c24_82, %c128_83] : memref<96x256xf32, #tpu.memory_space<vmem>>, vector<8x128xf32>
    %cst_84 = arith.constant 0.353553385 : f32
    %157 = vector.broadcast %cst_84 : f32 to vector<8x128xf32>
    %158 = arith.mulf %156, %157 : vector<8x128xf32>
    %cst_85 = arith.constant dense<0.000000e+00> : vector<256x128xf32>
    %159 = tpu.matmul %134, %158, %cst_85 {dimension_numbers = #tpu.dot_dimension_numbers<[0], [0], [1], [1], [0, 1, 1, 1], [], []>} : vector<8x256xf32>, vector<8x128xf32>, vector<256x128xf32> -> vector<256x128xf32>
    %cst_86 = arith.constant dense<0xFF800000> : vector<128xf32>
    %160 = vector.multi_reduction <maximumf>, %159, %cst_86 [0] : vector<256x128xf32> to vector<128xf32>
    %161 = vector.shape_cast %160 : vector<128xf32> to vector<1x128xf32>
    %162 = vector.broadcast %161 : vector<1x128xf32> to vector<256x128xf32>
    %163 = arith.subf %159, %162 : vector<256x128xf32>
    %164 = math.exp %163 : vector<256x128xf32>
    %cst_87 = arith.constant dense<0.000000e+00> : vector<128xf32>
    %165 = vector.multi_reduction <add>, %164, %cst_87 [0] : vector<256x128xf32> to vector<128xf32>
    %166 = vector.shape_cast %165 : vector<128xf32> to vector<1x128xf32>
    %cst_88 = arith.constant dense<0.000000e+00> : vector<8x128xf32>
    %167 = tpu.matmul %135, %164, %cst_88 {dimension_numbers = #tpu.dot_dimension_numbers<[1], [0], [0], [1], [0, 0, 1, 1], [], []>} : vector<8x256xf32>, vector<256x128xf32>, vector<8x128xf32> -> vector<8x128xf32>
    %168 = tpu.reciprocal %166 {approx = true} : vector<1x128xf32> -> vector<1x128xf32>
    %169 = arith.mulf %166, %168 : vector<1x128xf32>
    %cst_89 = arith.constant 2.000000e+00 : f32
    %170 = vector.broadcast %cst_89 : f32 to vector<1x128xf32>
    %171 = arith.subf %170, %169 : vector<1x128xf32>
    %172 = arith.mulf %168, %171 : vector<1x128xf32>
    %173 = vector.broadcast %172 : vector<1x128xf32> to vector<8x128xf32>
    %174 = arith.mulf %167, %173 : vector<8x128xf32>
    %c24_90 = arith.constant 24 : index
    %c128_91 = arith.constant 128 : index
    %175 = vector.load %arg8[%c24_90, %c128_91] : memref<32x256xf32, #tpu.memory_space<vmem>>, vector<8x128xf32>
    tpu.vector_store %arg8[%c24_90, %c128_91], %174 {strides = array<i32>} : memref<32x256xf32, #tpu.memory_space<vmem>>, vector<8x128xf32>,
    %c0_92 = arith.constant 0 : index
    %c0_93 = arith.constant 0 : index
    %176 = vector.load %arg4[%c0_92, %c0_93] : memref<32x32xf32, #tpu.memory_space<vmem>>, vector<32x32xf32>
    %c0_94 = arith.constant 0 : index
    %c0_95 = arith.constant 0 : index
    %177 = vector.load %arg8[%c0_94, %c0_95] : memref<32x256xf32, #tpu.memory_space<vmem>>, vector<32x256xf32>
    %cst_96 = arith.constant dense<0.000000e+00> : vector<32x256xf32>
    %178 = tpu.matmul %176, %177, %cst_96 {dimension_numbers = #tpu.dot_dimension_numbers<[1], [0], [0], [1], [0, 0, 1, 1], [], []>} : vector<32x32xf32>, vector<32x256xf32>, vector<32x256xf32> -> vector<32x256xf32>
    %c0_97 = arith.constant 0 : index
    %c0_98 = arith.constant 0 : index
    %179 = vector.load %arg5[%c0_97, %c0_98] : memref<32x1xf32, #tpu.memory_space<vmem>>, vector<32x1xf32>
    %180 = vector.broadcast %179 : vector<32x1xf32> to vector<32x256xf32>
    %181 = arith.addf %178, %180 : vector<32x256xf32>
    %c0_99 = arith.constant 0 : index
    %c0_100 = arith.constant 0 : index
    %c0_101 = arith.constant 0 : index
    %182 = vector.load %arg6[%c0_99, %c0_100, %c0_101] : memref<1x32x256xf32, #tpu.memory_space<vmem>>, vector<1x32x256xf32>
    %183 = vector.shape_cast %182 : vector<1x32x256xf32> to vector<32x256xf32>
    %184 = vector.shape_cast %181 : vector<32x256xf32> to vector<1x32x256xf32>
    tpu.vector_store %arg6[%c0_99, %c0_100, %c0_101], %184 {strides = array<i32>} : memref<1x32x256xf32, #tpu.memory_space<vmem>>, vector<1x32x256xf32>,
    return
  }
  func.func @transform_0(%arg0: i32) -> (i32, i32, i32) {
    %c0_i32 = arith.constant 0 : i32
    %c0_i32_0 = arith.constant 0 : i32
    %c0_i32_1 = arith.constant 0 : i32
    return %arg0, %c0_i32, %c0_i32_0 : i32, i32, i32
  }
  func.func @transform_1(%arg0: i32) -> (i32, i32) {
    %c0_i32 = arith.constant 0 : i32
    %c0_i32_0 = arith.constant 0 : i32
    %c0_i32_1 = arith.constant 0 : i32
    return %c0_i32, %c0_i32_0 : i32, i32
  }
  func.func @transform_2(%arg0: i32) -> (i32, i32) {
    %c0_i32 = arith.constant 0 : i32
    %c0_i32_0 = arith.constant 0 : i32
    %c0_i32_1 = arith.constant 0 : i32
    return %c0_i32, %c0_i32_0 : i32, i32
  }
  func.func @transform_3(%arg0: i32) -> (i32, i32) {
    %c0_i32 = arith.constant 0 : i32
    %c0_i32_0 = arith.constant 0 : i32
    %c0_i32_1 = arith.constant 0 : i32
    return %c0_i32, %c0_i32_0 : i32, i32
  }
  func.func @transform_4(%arg0: i32) -> (i32, i32) {
    %c0_i32 = arith.constant 0 : i32
    %c0_i32_0 = arith.constant 0 : i32
    %c0_i32_1 = arith.constant 0 : i32
    return %c0_i32, %c0_i32_0 : i32, i32
  }
  func.func @transform_5(%arg0: i32) -> (i32, i32, i32) {
    %c0_i32 = arith.constant 0 : i32
    %c0_i32_0 = arith.constant 0 : i32
    %c0_i32_1 = arith.constant 0 : i32
    return %arg0, %c0_i32, %c0_i32_0 : i32, i32, i32
  }
}

</mosaic_0001>

<bundles_post_ra>
// kernel: tpu_custom_call.1
= control target key start
LH: loop header
LB: loop body
LE: loop exit
PB: predicated region body
PF: predicated region fallthrough
CT: control target
= control target key end

     0   :  { %10 = vsyncpa [#allocation5], 0  ;;  %s9927_s0 = inlined_call_operand.vmem [shape: f32[2,32,256], index: 0, kind: input, shape index: {}]   ;;  %s9928_s1 = inlined_call_operand.vmem [shape: f32[96,32], index: 1, kind: input, shape index: {}]   ;;  %s9929_s2 = inlined_call_operand.vmem [shape: f32[96,1], index: 2, kind: input, shape index: {}]   ;;  %s9930_s3 = inlined_call_operand.vmem [shape: f32[32,32], index: 3, kind: input, shape index: {}]   ;;  %s9931_s4 = inlined_call_operand.vmem [shape: f32[32,1], index: 4, kind: input, shape index: {}]   ;;  %s9932_s5 = inlined_call_operand.hbm [shape: f32[2,32,256], index: 5, kind: output, shape index: {}]  }
   0x1   :  { %12 = vsyncpa [#allocation5 + $0x1], 0  ;;  %s7083_s18 = smov 0   ;;  %s7085_s19 = smov 0  }
   0x2   :  { %s7087_s20 = smov 0   ;;  %s7089_s21 = smov 0  }
   0x3 LB: > { %s7104_s22 = sadd.s32 4294967295, %s7046_s21   ;;  %s5175_s23 = sadd.s32 4294967294, %s7046_s21   ;;  %s7046_s21 = sphi %s7089_s21, %s10282_s21   ;;  %s7042_s20 = sphi %s7087_s20, %s10281_s20   ;;  %s7038_s19 = sphi %s7085_s19, %s10280_s19   ;;  %s7034_s18 = sphi %s7083_s18, %s10279_s18  }
   0x4   : > { %s7108_s24 = sadd.s32 1, %s7046_s21   ;;  %s135_s25 = sadd.s32 1, %s7042_s20 }
   0x5   : > { %s132_s26 = ssub.s32 %s7046_s21, %s7108_s24  ;;  %p145_p0 = scmp.ne.s32.totalorder %s7042_s20, %s7038_s19 }
   0x6   : > { %p133_p1 = scmp.eq.s32.totalorder %s132_s26, 0  ;;  %p146_p2 = scmp.eq.s32.totalorder %s7104_s22, 1 }
   0x7   : > { %p151_p3 = scmp.ne.s32.totalorder %s7038_s19, %s7034_s18  ;;  %p152_p4 = scmp.eq.s32.totalorder %s5175_s23, 1 }
   0x8   : > { %s7119_s27 = scalar_select %p133_p1, %s7042_s20, %s135_s25  }
   0x9   : > { %p7121_p5 = por %p146_p2, %p145_p0  ;;  %p7125_p6 = por %p152_p4, %p151_p3 }
   0xa   : > { %p5178_p7 = scmp.ge.s32.totalorder %s7046_s21, 1  ;;  %p190_p8 = scmp.lt.s32.totalorder %s7046_s21, 3 }
   0xc   : > { %p191_p9 = pnand %p5178_p7, %p190_p8 }
   0xe   : > { %194 = sbr.rel (%p191_p9) target bundleno = 3620 (0xe24), region = 40 }
  0x13   : > { %p218_p10 = scmp.lt.s32.totalorder %s7104_s22, 1  ;;  %v9933_v0 = vmov 0.0   ;;  %v7049_v1 = vmov 0   ;;  %v247_v2 = vld [vmem:[%s9929_s2 + $0x20] sm:$0xff]  ;;  %vm315_vm0 = vcmask 261120   ;;  %v232_v14 = vld [vmem:[%s9928_s1 + $0x8] sm:$0xff] }
  0x14   : > { %416 = vmatprep.mubr.f32.mxu0 %v9933_v0  ;;  %464 = vmatprep.mubr.f32.mxu1 %v9933_v0  ;;  %v231_v11 = vld [vmem:[%s9928_s1] sm:$0xff]  ;;  %v233_v16 = vld [vmem:[%s9928_s1 + $0x10] sm:$0xff]  ;;  %v248_v17 = vld [vmem:[%s9929_s2 + $0x28] sm:$0xff]  ;;  %vm583_vm1 = vcmask 64512   ;;  %s215_s10 = sand.u32 1, %s7038_s19   ;;  %s5460_s13 = sshll.u32 %s7104_s22, 10 }
  0x15   : > { %s219_s30 = scalar_select %p218_p10, %s7104_s22, 1  ;;  %6456 = vset.pattern.permute.xlu0 %v7049_v1  ;;  %v239_v12 = vld [vmem:[%s9928_s1 + $0x40] sm:$0xff]  ;;  %v234_v18 = vld [vmem:[%s9928_s1 + $0x18] sm:$0xff]  ;;  %v244_v19 = vld [vmem:[%s9929_s2 + $0x8] sm:$0xff] }
  0x16   : > { %277 = vperm.xlu0 %6456, %v247_v2   ;;  %v243_v13 = vld [vmem:[%s9929_s2] sm:$0xff]  ;;  %v236_v21 = vld [vmem:[%s9928_s1 + $0x28] sm:$0xff]  ;;  %v237_v22 = vld [vmem:[%s9928_s1 + $0x30] sm:$0xff]  ;;  %s9881_s17 = scalar_lea.hbm %s9932_s5, %s5460_s13  ;;  %s9887_s22 = scalar_lea.sflag [#allocation5], %s215_s10 }
  0x17   : > { %s5459_s8 = sshll.u32 %s219_s30, 6  ;;  %v251_v15 = vld [vmem:[%s9929_s2 + $0x40] sm:$0xff]  ;;  %v238_v23 = vld [vmem:[%s9928_s1 + $0x38] sm:$0xff]  ;;  %v240_v24 = vld [vmem:[%s9928_s1 + $0x48] sm:$0xff]  ;;  %s7050_s25 = smov [#allocation4]  }
  0x18   : > { %s222_s11 = scalar_lea.vmem %s9927_s0, %s5459_s8  ;;  %v235_v20 = vld [vmem:[%s9928_s1 + $0x20] sm:$0xff]  ;;  %v241_v25 = vld [vmem:[%s9928_s1 + $0x50] sm:$0xff]  ;;  %v242_v26 = vld [vmem:[%s9928_s1 + $0x58] sm:$0xff]  ;;  %s6990_s26 = sshll.u32 %s7050_s25, 4  ;;  %s6991_s26 = int_to_ptr.vmem [resolvable:$false] %s6990_s26 }
  0x19   : > { %v230_v3 = vld [vmem:[%s222_s11 + $0x38] sm:$0xff]  ;;  %v229_v4 = vld [vmem:[%s222_s11 + $0x30] sm:$0xff]  ;;  %v228_v5 = vld [vmem:[%s222_s11 + $0x28] sm:$0xff]  ;;  %s6992_s30 = scalar_lea.vmem %s6991_s26, 2048 }
  0x1a   : > { %376 = vmatprep.subr.mxu0 %v230_v3  ;;  %v227_v6 = vld [vmem:[%s222_s11 + $0x20] sm:$0xff]  ;;  %6405 = vmatprep.subr.mxu1 %v230_v3  ;;  %v226_v7 = vld [vmem:[%s222_s11 + $0x18] sm:$0xff]  ;;  %v225_v8 = vld [vmem:[%s222_s11 + $0x10] sm:$0xff] }
  0x1b   : > { %377 = vmatpush1.msra.mxu0 %v229_v4  ;;  %6409 = vmatpush1.msra.mxu1 %v229_v4  ;;  %v224_v9 = vld [vmem:[%s222_s11 + $0x8] sm:$0xff]  ;;  %v223_v10 = vld [vmem:[%s222_s11] sm:$0xff]  ;;  %s5179_s11 = sshll.u32 %s215_s10, 6 }
  0x1c   : > { %378 = vmatprep.subr.mxu0 %v228_v5  ;;  %6406 = vmatprep.subr.mxu1 %v228_v5  ;;  %v252_v3 = vld [vmem:[%s9929_s2 + $0x48] sm:$0xff]  ;;  %s217_s12 = scalar_lea.vmem [#allocation4], %s5179_s11 }
  0x1d   : > { %379 = vmatpush1.msra.mxu0 %v227_v6  ;;  %6410 = vmatpush1.msra.mxu1 %v227_v6  ;;  %v245_v6 = vld [vmem:[%s9929_s2 + $0x10] sm:$0xff]  ;;  %s5113_s14 = sshll.u32 %s217_s12, 4  ;;  %s9883_s14 = int_to_ptr.vmem [resolvable:$true] %s5113_s14 }
  0x1e   : > { %380 = vmatprep.subr.mxu0 %v226_v7  ;;  %6407 = vmatprep.subr.mxu1 %v226_v7  ;;  %s6986_s23 = scalar_lea.vmem %s9883_s14, 1024  ;;  %p6993_p0 = scmp.lt.s32.totalorder %s9883_s14, %s6991_s26 }
  0x1f   : > { %381 = vmatpush1.msra.mxu0 %v225_v8  ;;  %6411 = vmatpush1.msra.mxu1 %v225_v8  ;;  %p6987_p11 = scmp.ne.s32.totalorder %s9883_s14, %s6986_s23  ;;  %p6994_p1 = scmp.lt.s32.totalorder %s6992_s30, %s6986_s23 }
  0x20   : > { %382 = vmatprep.subr.mxu0 %v224_v9  ;;  %6408 = vmatprep.subr.mxu1 %v224_v9 }
  0x21   : > { %383 = vmatpush1.msra.mxu0 %v223_v10  ;;  %6412 = vmatpush1.msra.mxu1 %v223_v10  ;;  %p6988_p12 = pnand %p6987_p11, %p7121_p5  ;;  %p6995_p2 = por %p6994_p1, %p6993_p0 }
  0x22   : > { %5182 = vmatmul.mubr.msk.f32.vlgmr.msra.gmra.mxu0 %vm315_vm0, %v231_v11  ;;  %5190 = vmatmul.mubr.msk.f32.vlgmr.msra.gmra.mxu1 %vm315_vm0, %v239_v12  ;;  %v249_v12 = vld [vmem:[%s9929_s2 + $0x30] sm:$0xff] }
  0x23   : > { %422 = vmatprep.mubr.f32.mxu0 %v9933_v0  ;;  %257 = vperm.xlu0 %6456, %v243_v13   ;;  %p6989_p13 = pneg %p6988_p12 }
  0x24   : > { %470 = vmatprep.mubr.f32.mxu1 %v9933_v0 }
  0x25   : > { %p6996_p3 = pnand %p6995_p2, %p6989_p13 }
  0x26   : > { %5183 = vmatmul.mubr.msk.f32.gmra.mxu0 %vm315_vm0, %v232_v14  ;;  %5191 = vmatmul.mubr.msk.f32.gmra.mxu1 %vm315_vm0, %v240_v24 }
  0x27   : > { %428 = vmatprep.mubr.f32.mxu0 %v9933_v0  ;;  %297 = vperm.xlu0 %6456, %v251_v15   ;;  %v253_v15 = vld [vmem:[%s9929_s2 + $0x50] sm:$0xff] }
  0x28   : > { %476 = vmatprep.mubr.f32.mxu1 %v9933_v0 }
  0x2a   : > { %5184 = vmatmul.mubr.msk.f32.gmra.mxu0 %vm315_vm0, %v233_v16  ;;  %5192 = vmatmul.mubr.msk.f32.gmra.mxu1 %vm315_vm0, %v241_v25 }
  0x2b   : > { %434 = vmatprep.mubr.f32.mxu0 %v9933_v0  ;;  %282 = vperm.xlu0 %6456, %v248_v17  }
  0x2c   : > { %482 = vmatprep.mubr.f32.mxu1 %v9933_v0 }
  0x2e   : > { %5185 = vmatmul.mubr.msk.f32.gmra.mxu0 %vm315_vm0, %v234_v18  ;;  %5193 = vmatmul.mubr.msk.f32.gmra.mxu1 %vm315_vm0, %v242_v26  ;;  %v250_v18 = vld [vmem:[%s9929_s2 + $0x38] sm:$0xff] }
  0x2f   : > { %440 = vmatprep.mubr.f32.mxu0 %v9933_v0  ;;  %262 = vperm.xlu0 %6456, %v244_v19  }
  0x32   : > { %5186 = vmatmul.mubr.msk.f32.gmra.mxu0 %vm315_vm0, %v235_v20 }
  0x33   : > { %446 = vmatprep.mubr.f32.mxu0 %v9933_v0 }
  0x36   : > { %5187 = vmatmul.mubr.msk.f32.gmra.mxu0 %vm315_vm0, %v236_v21  ;;  %v246_v21 = vld [vmem:[%s9929_s2 + $0x18] sm:$0xff] }
  0x37   : > { %452 = vmatprep.mubr.f32.mxu0 %v9933_v0 }
  0x3a   : > { %5188 = vmatmul.mubr.msk.f32.gmra.mxu0 %vm315_vm0, %v237_v22 }
  0x3b   : > { %458 = vmatprep.mubr.f32.mxu0 %v9933_v0 }
  0x3e   : > { %5189 = vmatmul.mubr.msk.f32.gmra.mxu0 %vm315_vm0, %v238_v23 }
  0x91   : > { %v278_v27 = vpop.permute.xlu0 %277 }
  0x9e   : > { %v7212_v28 = vpop.permute.xlu0 %257 }
  0xa2   : > { %v298_v29 = vpop.permute.xlu0 %297 }
  0xa6   : > { %v283_v47 = vpop.permute.xlu0 %282 }
  0xaa   : > { %v7235_v53 = vpop.permute.xlu0 %262 }
  0xab   : > { %10038 = vst [vmem:[#allocation13_spill] sm:$0xff] %v7235_v53 }
  0xe2   : > { %v418_v30 = vpop.f32.mrf.mxu0  ;;  %v466_v31 = vpop.f32.mrf.mxu1 }
  0xe3   : > { %v419_v32 = vadd.f32 %v418_v30, %v7212_v28  ;;  %v7215_v33 = vadd.f32 %v466_v31, %v298_v29 }
  0xe4   : > { %v7217_v34 = vpop.f32.mrf.mxu0  ;;  %v468_v35 = vpop.f32.mrf.mxu1 }
  0xe5   : > { %v518_v36 = vmul.f32 0.35355338, %v419_v32  ;;  %v7219_v37 = vadd.f32 %v468_v35, %v298_v29 }
  0xe6   : > { %v7221_v38 = vpop.f32.mrf.mxu0 }
  0xe7   : > { %10032 = vst [vmem:[#allocation7_spill] sm:$0xff] %v7221_v38  ;;  %6005 = vmatprep.subr.mxu1 %v518_v36  ;;  %1139 = vmatprep.mubr.f32.mxu0 %v7219_v37 }
  0xe8   : > { %v7224_v39 = vpop.f32.mrf.mxu0  ;;  %6006 = vmatpush3.msra.mxu1 %v518_v36 }
  0xe9   : > { %10033 = vst [vmem:[#allocation8_spill] sm:$0xff] %v7224_v39 }
  0xea   : > { %v7226_v40 = vpop.f32.mrf.mxu0 }
  0xeb   : > { %10034 = vst [vmem:[#allocation9_spill] sm:$0xff] %v7226_v40 }
  0xec   : > { %v7228_v41 = vpop.f32.mrf.mxu0 }
  0xed   : > { %10035 = vst [vmem:[#allocation10_spill] sm:$0xff] %v7228_v41 }
  0xee   : > { %v7230_v42 = vpop.f32.mrf.mxu0 }
  0xef   : > { %10036 = vst [vmem:[#allocation11_spill] sm:$0xff] %v7230_v42 }
  0xf0   : > { %v7232_v43 = vpop.f32.mrf.mxu0 }
  0xf1   : > { %10037 = vst [vmem:[#allocation12_spill] sm:$0xff] %v7232_v43 }
  0xf2   : > { %v442_v44 = vpop.f32.mrf.mxu0 }
  0xf3   : > { %v443_v45 = vadd.f32 %v442_v44, %v278_v27 }
  0xf4   : > { %v444_v46 = vpop.f32.mrf.mxu0 }
  0xf5   : > { %519 = vxpose.xlu1.b32.start.end [1/1] (short) %v443_v45, 128  ;;  %v445_v50 = vadd.f32 %v444_v46, %v278_v27 }
  0xf6   : > { %v448_v48 = vpop.f32.mrf.mxu0 }
  0xf7   : > { %v449_v49 = vadd.f32 %v448_v48, %v283_v47 }
  0xf8   : > { %v450_v51 = vpop.f32.mrf.mxu0 }
  0xf9   : > { %1630 = vxpose.xlu0.b32.start.end [1/1] (short) %v449_v49, 128  ;;  %v451_v52 = vadd.f32 %v450_v51, %v283_v47 }
 0x132   : > { %551 = vxpose.xlu1.b32.start.end [1/1] (short) %v445_v50, 128 }
 0x136   : > { %1662 = vxpose.xlu0.b32.start.end [1/1] (short) %v451_v52, 128 }
 0x150   : > { %6457 = vset.pattern.permute.xlu1 %v7049_v1 }
 0x171   : > { %v7237_v54 = vpop.trf.xlu1 }
 0x172   : > { %6007 = vmatprep.mubr.msk.f32.mxu1 %vm583_vm1, %v7237_v54 }
 0x175   : > { %v7241_v55 = vpop.trf.xlu1  ;;  %v7243_v56 = vpop.trf.xlu0 }
 0x176   : > { %10039 = vst [vmem:[#allocation14_spill] sm:$0xff] %v7243_v56  ;;  %6008 = vmatmul.mubr.msk.f32.vlgmr.msra.gmra.mxu1 %vm583_vm1, %v7241_v55 }
 0x179   : > { %v7247_v57 = vpop.trf.xlu1  ;;  %v7249_v58 = vpop.trf.xlu0 }
 0x17a   : > { %10040 = vst [vmem:[#allocation15_spill] sm:$0xff] %v7249_v58  ;;  %6010 = vmatprep.mubr.msk.f32.mxu1 %vm583_vm1, %v7247_v57 }
 0x17d   : > { %v7253_v59 = vpop.trf.xlu1  ;;  %v7255_v60 = vpop.trf.xlu0 }
 0x17e   : > { %10041 = vst [vmem:[#allocation16_spill] sm:$0xff] %v7255_v60  ;;  %6011 = vmatmul.mubr.msk.f32.gmra.mxu1 %vm583_vm1, %v7253_v59 }
 0x181   : > { %v7259_v61 = vpop.trf.xlu1  ;;  %v7261_v62 = vpop.trf.xlu0 }
 0x182   : > { %10042 = vst [vmem:[#allocation17_spill] sm:$0xff] %v7261_v62  ;;  %6013 = vmatprep.mubr.msk.f32.mxu1 %vm583_vm1, %v7259_v61 }
 0x185   : > { %v7265_v63 = vpop.trf.xlu1  ;;  %v7267_v1 = vpop.trf.xlu0 }
 0x186   : > { %10043 = vst [vmem:[#allocation18_spill] sm:$0xff] %v7267_v1  ;;  %6014 = vmatmul.mubr.msk.f32.gmra.mxu1 %vm583_vm1, %v7265_v63 }
 0x189   : > { %v7271_v2 = vpop.trf.xlu1  ;;  %v7276_v4 = vpop.trf.xlu0 }
 0x18a   : > { %10044 = vst [vmem:[#allocation19_spill] sm:$0xff] %v7276_v4  ;;  %6016 = vmatprep.mubr.msk.f32.mxu1 %vm583_vm1, %v7271_v2 }
 0x18c   : > { %302 = vperm.xlu1 %6457, %v252_v3  }
 0x18d   : > { %v7280_v5 = vpop.trf.xlu1  ;;  %v7285_v7 = vpop.trf.xlu0 }
 0x18e   : > { %10045 = vst [vmem:[#allocation20_spill] sm:$0xff] %v7285_v7  ;;  %6017 = vmatmul.mubr.msk.f32.gmra.mxu1 %vm583_vm1, %v7280_v5 }
 0x190   : > { %267 = vperm.xlu1 %6457, %v245_v6  }
 0x191   : > { %v7289_v8 = vpop.trf.xlu1  ;;  %v7291_v9 = vpop.trf.xlu0 }
 0x192   : > { %10046 = vst [vmem:[#allocation21_spill] sm:$0xff] %v7291_v9  ;;  %6019 = vmatprep.mubr.msk.f32.mxu1 %vm583_vm1, %v7289_v8 }
 0x195   : > { %v7295_v10 = vpop.trf.xlu1  ;;  %v7297_v11 = vpop.trf.xlu0 }
 0x196   : > { %10047 = vst [vmem:[#allocation22_spill] sm:$0xff] %v7297_v11  ;;  %6020 = vmatmul.mubr.msk.f32.gmra.mxu1 %vm583_vm1, %v7295_v10 }
 0x199   : > { %v7304_v13 = vpop.trf.xlu1  ;;  %v7306_v14 = vpop.trf.xlu0 }
 0x19a   : > { %10048 = vst [vmem:[#allocation23_spill] sm:$0xff] %v7306_v14  ;;  %6022 = vmatprep.mubr.msk.f32.mxu1 %vm583_vm1, %v7304_v13 }
 0x19b   : > { %287 = vperm.xlu0 %6456, %v249_v12  }
 0x19d   : > { %v7313_v16 = vpop.trf.xlu1  ;;  %v7315_v17 = vpop.trf.xlu0 }
 0x19e   : > { %10049 = vst [vmem:[#allocation24_spill] sm:$0xff] %v7313_v16  ;;  %10050 = vst [vmem:[#allocation25_spill] sm:$0xff] %v7315_v17  ;;  %6023 = vmatmul.mubr.msk.f32.gmra.mxu1 %vm583_vm1, %v7313_v16 }
 0x19f   : > { %307 = vperm.xlu0 %6456, %v253_v15  }
 0x1a1   : > { %v7322_v19 = vpop.trf.xlu1  ;;  %v7324_v20 = vpop.trf.xlu0 }
 0x1a2   : > { %10051 = vst [vmem:[#allocation26_spill] sm:$0xff] %v7322_v19  ;;  %10052 = vst [vmem:[#allocation27_spill] sm:$0xff] %v7324_v20  ;;  %6025 = vmatprep.mubr.msk.f32.mxu1 %vm583_vm1, %v7322_v19 }
 0x1a3   : > { %292 = vperm.xlu0 %6456, %v250_v18  }
 0x1a5   : > { %v7331_v22 = vpop.trf.xlu1  ;;  %v7333_v23 = vpop.trf.xlu0 }
 0x1a6   : > { %10053 = vst [vmem:[#allocation28_spill] sm:$0xff] %v7331_v22  ;;  %10054 = vst [vmem:[#allocation29_spill] sm:$0xff] %v7333_v23  ;;  %6026 = vmatmul.mubr.msk.f32.gmra.mxu1 %vm583_vm1, %v7331_v22 }
 0x1a7   : > { %272 = vperm.xlu0 %6456, %v246_v21  }
 0x1a9   : > { %v7337_v24 = vpop.trf.xlu1  ;;  %v7339_v25 = vpop.trf.xlu0 }
 0x1aa   : > { %10055 = vst [vmem:[#allocation30_spill] sm:$0xff] %v7337_v24  ;;  %10056 = vst [vmem:[#allocation31_spill] sm:$0xff] %v7339_v25  ;;  %6028 = vmatprep.mubr.msk.f32.mxu1 %vm583_vm1, %v7337_v24 }
 0x1ad   : > { %v7343_v26 = vpop.trf.xlu1  ;;  %v7345_v27 = vpop.trf.xlu0 }
 0x1ae   : > { %10057 = vst [vmem:[#allocation32_spill] sm:$0xff] %v7343_v26  ;;  %10058 = vst [vmem:[#allocation33_spill] sm:$0xff] %v7345_v27  ;;  %6029 = vmatmul.mubr.msk.f32.gmra.mxu1 %vm583_vm1, %v7343_v26 }
 0x1b1   : > { %v7349_v29 = vpop.trf.xlu1  ;;  %v7351_v30 = vpop.trf.xlu0 }
 0x1b2   : > { %10059 = vst [vmem:[#allocation34_spill] sm:$0xff] %v7349_v29  ;;  %10060 = vst [vmem:[#allocation35_spill] sm:$0xff] %v7351_v30  ;;  %6031 = vmatprep.mubr.msk.f32.mxu1 %vm583_vm1, %v7349_v29 }
 0x1b5   : > { %v7355_v31 = vpop.trf.xlu1  ;;  %v7359_v32 = vpop.trf.xlu0 }
 0x1b6   : > { %10061 = vst [vmem:[#allocation36_spill] sm:$0xff] %v7355_v31  ;;  %6032 = vmatmul.mubr.msk.f32.gmra.mxu1 %vm583_vm1, %v7355_v31  ;;  %10062 = vst [vmem:[#allocation37_spill] sm:$0xff] %v7359_v32 }
 0x1b9   : > { %v7361_v35 = vpop.trf.xlu1  ;;  %v7365_v36 = vpop.trf.xlu0 }
 0x1ba   : > { %10063 = vst [vmem:[#allocation38_spill] sm:$0xff] %v7361_v35  ;;  %6034 = vmatprep.mubr.msk.f32.mxu1 %vm583_vm1, %v7361_v35  ;;  %10064 = vst [vmem:[#allocation39_spill] sm:$0xff] %v7365_v36 }
 0x1bd   : > { %v7367_v44 = vpop.trf.xlu1  ;;  %v7375_v46 = vpop.trf.xlu0 }
 0x1be   : > { %10065 = vst [vmem:[#allocation40_spill] sm:$0xff] %v7367_v44  ;;  %6035 = vmatmul.mubr.msk.f32.gmra.mxu1 %vm583_vm1, %v7367_v44  ;;  %10067 = vst [vmem:[#allocation42_spill] sm:$0xff] %v7375_v46 }
 0x1c1   : > { %v7371_v45 = vpop.trf.xlu1  ;;  %v7381_v48 = vpop.trf.xlu0 }
 0x1c2   : > { %10066 = vst [vmem:[#allocation41_spill] sm:$0xff] %v7371_v45  ;;  %6037 = vmatprep.mubr.msk.f32.mxu1 %vm583_vm1, %v7371_v45  ;;  %10069 = vst [vmem:[#allocation44_spill] sm:$0xff] %v7381_v48 }
 0x1c5   : > { %v7377_v47 = vpop.trf.xlu1  ;;  %v7391_v51 = vpop.trf.xlu0 }
 0x1c6   : > { %10068 = vst [vmem:[#allocation43_spill] sm:$0xff] %v7377_v47  ;;  %6038 = vmatmul.mubr.msk.f32.gmra.mxu1 %vm583_vm1, %v7377_v47  ;;  %10072 = vst [vmem:[#allocation47_spill] sm:$0xff] %v7391_v51 }
 0x1c9   : > { %v7383_v49 = vpop.trf.xlu1  ;;  %v7397_v3 = vpop.trf.xlu0 }
 0x1ca   : > { %10070 = vst [vmem:[#allocation45_spill] sm:$0xff] %v7383_v49  ;;  %6040 = vmatprep.mubr.msk.f32.mxu1 %vm583_vm1, %v7383_v49  ;;  %10074 = vst [vmem:[#allocation49_spill] sm:$0xff] %v7397_v3 }
 0x1cd   : > { %v7387_v50 = vpop.trf.xlu1  ;;  %v7407_v15 = vpop.trf.xlu0 }
 0x1ce   : > { %10071 = vst [vmem:[#allocation46_spill] sm:$0xff] %v7387_v50  ;;  %6041 = vmatmul.mubr.msk.f32.gmra.mxu1 %vm583_vm1, %v7387_v50  ;;  %10077 = vst [vmem:[#allocation52_spill] sm:$0xff] %v7407_v15 }
 0x1d1   : > { %v7393_v52 = vpop.trf.xlu1  ;;  %v7413_v21 = vpop.trf.xlu0 }
 0x1d2   : > { %10073 = vst [vmem:[#allocation48_spill] sm:$0xff] %v7393_v52  ;;  %6043 = vmatprep.mubr.msk.f32.mxu1 %vm583_vm1, %v7393_v52  ;;  %10079 = vst [vmem:[#allocation54_spill] sm:$0xff] %v7413_v21 }
 0x1d5   : > { %v7399_v6 = vpop.trf.xlu1  ;;  %v7423_v42 = vpop.trf.xlu0 }
 0x1d6   : > { %10075 = vst [vmem:[#allocation50_spill] sm:$0xff] %v7399_v6  ;;  %6044 = vmatmul.mubr.msk.f32.gmra.mxu1 %vm583_vm1, %v7399_v6  ;;  %10082 = vst [vmem:[#allocation57_spill] sm:$0xff] %v7423_v42 }
 0x1d9   : > { %v7403_v12 = vpop.trf.xlu1  ;;  %v7429_v40 = vpop.trf.xlu0 }
 0x1da   : > { %10076 = vst [vmem:[#allocation51_spill] sm:$0xff] %v7403_v12  ;;  %6046 = vmatprep.mubr.msk.f32.mxu1 %vm583_vm1, %v7403_v12  ;;  %10084 = vst [vmem:[#allocation59_spill] sm:$0xff] %v7429_v40  ;;  %v454_v40 = vpop.f32.mrf.mxu0 }
 0x1dc   : > { %v456_v30 = vpop.f32.mrf.mxu0 }
 0x1dd   : > { %v7409_v18 = vpop.trf.xlu1  ;;  %v7436_v21 = vpop.trf.xlu0 }
 0x1de   : > { %10078 = vst [vmem:[#allocation53_spill] sm:$0xff] %v7409_v18  ;;  %6047 = vmatmul.mubr.msk.f32.gmra.mxu1 %vm583_vm1, %v7409_v18  ;;  %10086 = vst [vmem:[#allocation61_spill] sm:$0xff] %v7436_v21 }
 0x1e1   : > { %v7415_v0 = vpop.trf.xlu1  ;;  %v7438_v15 = vpop.trf.xlu0 }
 0x1e2   : > { %10080 = vst [vmem:[#allocation55_spill] sm:$0xff] %v7415_v0  ;;  %6049 = vmatprep.mubr.msk.f32.mxu1 %vm583_vm1, %v7415_v0  ;;  %10087 = vst [vmem:[#allocation62_spill] sm:$0xff] %v7438_v15  ;;  %v7450_v15 = vpop.f32.mrf.mxu1 }
 0x1e3   : > { %10093 = vst [vmem:[#allocation68_spill] sm:$0xff] %v7450_v15 }
 0x1e5   : > { %v7419_v43 = vpop.trf.xlu1  ;;  %v7440_v3 = vpop.trf.xlu0 }
 0x1e6   : > { %10081 = vst [vmem:[#allocation56_spill] sm:$0xff] %v7419_v43  ;;  %6050 = vmatmul.mubr.msk.f32.gmra.mxu1 %vm583_vm1, %v7419_v43  ;;  %10088 = vst [vmem:[#allocation63_spill] sm:$0xff] %v7440_v3  ;;  %v7452_v3 = vpop.f32.mrf.mxu1 }
 0x1e7   : > { %10094 = vst [vmem:[#allocation69_spill] sm:$0xff] %v7452_v3 }
 0x1e9   : > { %v7425_v41 = vpop.trf.xlu1  ;;  %v7442_v42 = vpop.trf.xlu0 }
 0x1ea   : > { %10083 = vst [vmem:[#allocation58_spill] sm:$0xff] %v7425_v41  ;;  %6052 = vmatprep.mubr.msk.f32.mxu1 %vm583_vm1, %v7425_v41  ;;  %10089 = vst [vmem:[#allocation64_spill] sm:$0xff] %v7442_v42  ;;  %v7454_v42 = vpop.f32.mrf.mxu1 }
 0x1eb   : > { %10095 = vst [vmem:[#allocation70_spill] sm:$0xff] %v7454_v42 }
 0x1ed   : > { %v7431_v39 = vpop.trf.xlu1  ;;  %v7444_v51 = vpop.trf.xlu0 }
 0x1ee   : > { %10085 = vst [vmem:[#allocation60_spill] sm:$0xff] %v7431_v39  ;;  %6053 = vmatmul.mubr.msk.f32.gmra.mxu1 %vm583_vm1, %v7431_v39  ;;  %10090 = vst [vmem:[#allocation65_spill] sm:$0xff] %v7444_v51  ;;  %v7456_v51 = vpop.f32.mrf.mxu1 }
 0x1ef   : > { %1612 = vmatprep.mubr.f32.mxu1 %v7219_v37  ;;  %v460_v37 = vpop.f32.mrf.mxu0  ;;  %10096 = vst [vmem:[#allocation71_spill] sm:$0xff] %v7456_v51 }
 0x1f1   : > { %v7446_v48 = vpop.trf.xlu0 }
 0x1f2   : > { %10091 = vst [vmem:[#allocation66_spill] sm:$0xff] %v7446_v48  ;;  %v7458_v48 = vpop.f32.mrf.mxu1 }
 0x1f3   : > { %10097 = vst [vmem:[#allocation72_spill] sm:$0xff] %v7458_v48 }
 0x1f4   : > { %v7460_v25 = vpop.f32.mrf.mxu1 }
 0x1f5   : > { %10098 = vst [vmem:[#allocation73_spill] sm:$0xff] %v7460_v25 }
 0x216   : > { %v288_v46 = vpop.permute.xlu0 %287 }
 0x217   : > { %v455_v36 = vadd.f32 %v454_v40, %v288_v46  ;;  %v457_v40 = vadd.f32 %v456_v30, %v288_v46 }
 0x219   : > { %2740 = vxpose.xlu1.b32.start.end [1/1] (short) %v455_v36, 128 }
 0x21a   : > { %v7448_v32 = vpop.permute.xlu0 %307 }
 0x21b   : > { %10092 = vst [vmem:[#allocation67_spill] sm:$0xff] %v7448_v32 }
 0x21e   : > { %v293_v27 = vpop.permute.xlu0 %292 }
 0x21f   : > { %v461_v21 = vadd.f32 %v460_v37, %v293_v27  ;;  %v462_v37 = vpop.f32.mrf.mxu0 }
 0x220   : > { %v463_v15 = vadd.f32 %v462_v37, %v293_v27 }
 0x221   : > { %3850 = vxpose.xlu0.b32.start.end [1/1] (short) %v461_v21, 128 }
 0x236   : > { %v7462_v36 = vpop.f32.mrf.mxu1 }
 0x238   : > { %v7464_v32 = vpop.f32.mrf.mxu1 }
 0x23e   : > { %v7466_v21 = vpop.f32.mrf.mxu1 }
 0x240   : > { %v7468_v23 = vpop.f32.mrf.mxu1 }
 0x246   : > { %v7470_v42 = vpop.f32.mrf.mxu1 }
 0x247   : > { %v906_v39 = vmax.f32 %v7462_v36, %v7470_v42 }
 0x248   : > { %v7472_v51 = vpop.f32.mrf.mxu1 }
 0x249   : > { %v905_v53 = vmax.f32 %v7464_v32, %v7472_v51 }
 0x24e   : > { %v7474_v48 = vpop.f32.mrf.mxu1 }
 0x24f   : > { %v908_v3 = vmax.f32 %v7466_v21, %v7474_v48 }
 0x250   : > { %v7476_v25 = vpop.f32.mrf.mxu1 }
 0x251   : > { %v907_v41 = vmax.f32 %v7468_v23, %v7476_v25 }
 0x256   : > { %2772 = vxpose.xlu1.b32.start.end [1/1] (short) %v457_v40, 128  ;;  %v7478_v30 = vpop.f32.mrf.mxu1 }
 0x257   : > { %v910_v18 = vmax.f32 %v906_v39, %v7478_v30 }
 0x258   : > { %v7480_v46 = vpop.f32.mrf.mxu1 }
 0x259   : > { %v909_v43 = vmax.f32 %v905_v53, %v7480_v46 }
 0x25e   : > { %3882 = vxpose.xlu0.b32.start.end [1/1] (short) %v463_v15, 128  ;;  %v7482_v40 = vpop.f32.mrf.mxu1 }
 0x25f   : > { %v912_v12 = vmax.f32 %v908_v3, %v7482_v40 }
 0x260   : > { %v7484_v20 = vpop.f32.mrf.mxu1 }
 0x261   : > { %v911_v6 = vmax.f32 %v907_v41, %v7484_v20 }
 0x266   : > { %v7486_v27 = vpop.f32.mrf.mxu1 }
 0x267   : > { %v914_v49 = vmax.f32 %v910_v18, %v7486_v27 }
 0x268   : > { %v7488_v37 = vpop.f32.mrf.mxu1 }
 0x269   : > { %v913_v52 = vmax.f32 %v909_v43, %v7488_v37 }
 0x26e   : > { %v7490_v15 = vpop.f32.mrf.mxu1 }
 0x26f   : > { %v916_v47 = vmax.f32 %v912_v12, %v7490_v15 }
 0x270   : > { %v7492_v17 = vpop.f32.mrf.mxu1 }
 0x271   : > { %v915_v45 = vmax.f32 %v911_v6, %v7492_v17 }
 0x276   : > { %v7494_v14 = vpop.f32.mrf.mxu1 }
 0x277   : > { %v918_v44 = vmax.f32 %v914_v49, %v7494_v14  ;;  %v254_v49 = vld [vmem:[%s9929_s2 + $0x58] sm:$0xff] }
 0x278   : > { %v7496_v11 = vpop.f32.mrf.mxu1 }
 0x279   : > { %v917_v53 = vmax.f32 %v913_v52, %v7496_v11 }
 0x27e   : > { %v7498_v9 = vpop.f32.mrf.mxu1 }
 0x27f   : > { %v920_v39 = vmax.f32 %v916_v47, %v7498_v9 }
 0x280   : > { %v7500_v7 = vpop.f32.mrf.mxu1 }
 0x281   : > { %v919_v3 = vmax.f32 %v915_v45, %v7500_v7 }
 0x286   : > { %v7502_v4 = vpop.f32.mrf.mxu1 }
 0x287   : > { %v922_v43 = vmax.f32 %v918_v44, %v7502_v4 }
 0x288   : > { %v7504_v1 = vpop.f32.mrf.mxu1 }
 0x289   : > { %v921_v41 = vmax.f32 %v917_v53, %v7504_v1 }
 0x28e   : > { %v7506_v62 = vpop.f32.mrf.mxu1 }
 0x28f   : > { %v924_v18 = vmax.f32 %v920_v39, %v7506_v62 }
 0x290   : > { %v7508_v60 = vpop.f32.mrf.mxu1 }
 0x291   : > { %v923_v12 = vmax.f32 %v919_v3, %v7508_v60 }
 0x296   : > { %v7510_v58 = vpop.f32.mrf.mxu1 }
 0x297   : > { %v926_v45 = vmax.f32 %v922_v43, %v7510_v58 }
 0x298   : > { %v7512_v56 = vpop.f32.mrf.mxu1 }
 0x299   : > { %v925_v6 = vmax.f32 %v921_v41, %v7512_v56 }
 0x29e   : > { %v7514_v38 = vpop.f32.mrf.mxu1 }
 0x29f   : > { %v928_v47 = vmax.f32 %v924_v18, %v7514_v38 }
 0x2a0   : > { %v7525_v0 = vpop.f32.mrf.mxu1 }
 0x2a1   : > { %v927_v53 = vmax.f32 %v923_v12, %v7525_v0  ;;  %v4966_v12 = vld [vmem:[%s9931_s4] sm:$0xff] }
 0x2a6   : > { %v7531_v50 = vpop.f32.mrf.mxu1 }
 0x2a7   : > { %v930_v3 = vmax.f32 %v926_v45, %v7531_v50 }
 0x2a8   : > { %v7541_v35 = vpop.f32.mrf.mxu1 }
 0x2a9   : > { %v929_v44 = vmax.f32 %v925_v6, %v7541_v35 }
 0x2ab   : > { %v933_v29 = vmax.f32 %v929_v44, %v930_v3 }
 0x2ae   : > { %v7550_v52 = vpop.f32.mrf.mxu1 }
 0x2af   : > { %v932_v41 = vmax.f32 %v928_v47, %v7550_v52 }
 0x2b0   : > { %312 = vperm.xlu1 %6457, %v254_v49   ;;  %v7556_v39 = vpop.f32.mrf.mxu1 }
 0x2b1   : > { %v931_v31 = vmax.f32 %v927_v53, %v7556_v39 }
 0x2b3   : > { %v934_v26 = vmax.f32 %v931_v31, %v932_v41 }
 0x2b5   : > { %v935_v24 = vmax.f32 %v933_v29, %v934_v26 }
 0x2b7   : > { %v936_v22 = vrot.slane %v935_v24, 4 }
 0x2b9   : > { %v937_v43 = vmax.f32 %v935_v24, %v936_v22 }
 0x2bb   : > { %v938_v19 = vrot.slane %v937_v43, 2 }
 0x2bd   : > { %v939_v18 = vmax.f32 %v937_v43, %v938_v19 }
 0x2bf   : > { %v940_v16 = vrot.slane %v939_v18, 1 }
 0x2c1   : > { %v7564_v6 = vmax.f32 %v939_v18, %v940_v16 }
 0x2c3   : > { %4972 = vperm.xlu0 %6456, %v4966_v12   ;;  %v942_v49 = vsub.f32 %v7464_v32, %v7564_v6  ;;  %v943_v45 = vsub.f32 %v7462_v36, %v7564_v6  ;;  %v944_v26 = vsub.f32 %v7468_v23, %v7564_v6  ;;  %v945_v19 = vsub.f32 %v7466_v21, %v7564_v6 }
 0x2c4   : > { %v946_v29 = vsub.f32 %v7472_v51, %v7564_v6  ;;  %v947_v31 = vsub.f32 %v7470_v42, %v7564_v6  ;;  %v948_v36 = vsub.f32 %v7476_v25, %v7564_v6  ;;  %v949_v23 = vsub.f32 %v7474_v48, %v7564_v6 }
 0x2c5   : > { %v974_v22 = vmul.f32 1.442695, %v942_v49  ;;  %v976_v24 = vmul.f32 1.442695, %v943_v45  ;;  %v978_v16 = vmul.f32 1.442695, %v944_v26  ;;  %v950_v51 = vsub.f32 %v7480_v46, %v7564_v6 }
 0x2c6   : > { %v980_v32 = vmul.f32 1.442695, %v945_v19  ;;  %v982_v47 = vmul.f32 1.442695, %v946_v29  ;;  %v984_v21 = vmul.f32 1.442695, %v947_v31  ;;  %v951_v42 = vsub.f32 %v7478_v30, %v7564_v6 }
 0x2c7   : > { %6458 = vpow2.f32 %v974_v22  ;;  %v986_v53 = vmul.f32 1.442695, %v948_v36  ;;  %v988_v44 = vmul.f32 1.442695, %v949_v23  ;;  %v952_v25 = vsub.f32 %v7484_v20, %v7564_v6 }
 0x2c8   : > { %6460 = vpow2.f32 %v976_v24  ;;  %v990_v3 = vmul.f32 1.442695, %v950_v51  ;;  %v953_v48 = vsub.f32 %v7482_v40, %v7564_v6  ;;  %v992_v43 = vmul.f32 1.442695, %v951_v42 }
 0x2c9   : > { %6462 = vpow2.f32 %v978_v16  ;;  %v954_v18 = vsub.f32 %v7488_v37, %v7564_v6  ;;  %v994_v30 = vmul.f32 1.442695, %v952_v25  ;;  %v955_v49 = vsub.f32 %v7486_v27, %v7564_v6 }
 0x2ca   : > { %6464 = vpow2.f32 %v980_v32  ;;  %v996_v45 = vmul.f32 1.442695, %v953_v48  ;;  %v956_v19 = vsub.f32 %v7492_v17, %v7564_v6  ;;  %v957_v29 = vsub.f32 %v7490_v15, %v7564_v6 }
 0x2cb   : > { %6466 = vpow2.f32 %v982_v47  ;;  %v998_v37 = vmul.f32 1.442695, %v954_v18  ;;  %v1000_v16 = vmul.f32 1.442695, %v955_v49  ;;  %v973_v32 = vsub.f32 %v7550_v52, %v7564_v6 }
 0x2cc   : > { %6468 = vpow2.f32 %v984_v21  ;;  %v958_v17 = vsub.f32 %v7496_v11, %v7564_v6  ;;  %v1002_v36 = vmul.f32 1.442695, %v956_v19  ;;  %v972_v15 = vsub.f32 %v7556_v39, %v7564_v6 }
 0x2cd   : > { %6470 = vpow2.f32 %v986_v53  ;;  %v959_v21 = vsub.f32 %v7494_v14, %v7564_v6  ;;  %v1004_v51 = vmul.f32 1.442695, %v957_v29  ;;  %v971_v11 = vsub.f32 %v7531_v50, %v7564_v6 }
 0x2ce   : > { %6472 = vpow2.f32 %v988_v44  ;;  %v1036_v42 = vmul.f32 1.442695, %v973_v32  ;;  %v960_v44 = vsub.f32 %v7500_v7, %v7564_v6  ;;  %v1006_v25 = vmul.f32 1.442695, %v958_v17 }
 0x2cf   : > { %6474 = vpow2.f32 %v990_v3  ;;  %v1034_v14 = vmul.f32 1.442695, %v972_v15  ;;  %v970_v48 = vsub.f32 %v7541_v35, %v7564_v6  ;;  %v1008_v18 = vmul.f32 1.442695, %v959_v21 }
 0x2d0   : > { %6476 = vpow2.f32 %v992_v43  ;;  %v961_v43 = vsub.f32 %v7498_v9, %v7564_v6  ;;  %v969_v7 = vsub.f32 %v7514_v38, %v7564_v6  ;;  %v962_v49 = vsub.f32 %v7504_v1, %v7564_v6 }
 0x2d1   : > { %6478 = vpow2.f32 %v994_v30  ;;  %v968_v9 = vsub.f32 %v7525_v0, %v7564_v6  ;;  %v1030_v19 = vmul.f32 1.442695, %v970_v48  ;;  %v967_v1 = vsub.f32 %v7510_v58, %v7564_v6 }
 0x2d2   : > { %6480 = vpow2.f32 %v996_v45  ;;  %v1010_v45 = vmul.f32 1.442695, %v960_v44  ;;  %v1012_v38 = vmul.f32 1.442695, %v961_v43  ;;  %v1014_v32 = vmul.f32 1.442695, %v962_v49 }
 0x2d3   : > { %6482 = vpow2.f32 %v998_v37  ;;  %v963_v37 = vsub.f32 %v7502_v4, %v7564_v6  ;;  %v966_v4 = vsub.f32 %v7512_v56, %v7564_v6 }
 0x2d4   : > { %v7588_v41 = vpop.eup %6458  ;;  %6484 = vpow2.f32 %v1000_v16  ;;  %v1028_v16 = vmul.f32 1.442695, %v969_v7 }
 0x2d5   : > { %v7592_v46 = vpop.eup %6460  ;;  %6486 = vpow2.f32 %v1002_v36  ;;  %v1026_v36 = vmul.f32 1.442695, %v968_v9  ;;  %v1016_v15 = vmul.f32 1.442695, %v963_v37 }
 0x2d6   : > { %v1038_v12 = vadd.f32 %v7592_v46, %v7588_v41  ;;  %v7598_v20 = vpop.eup %6462  ;;  %6488 = vpow2.f32 %v1004_v51  ;;  %v1024_v51 = vmul.f32 1.442695, %v967_v1 }
 0x2d7   : > { %v7603_v26 = vpop.eup %6464  ;;  %6490 = vpow2.f32 %v1036_v42  ;;  %v1022_v42 = vmul.f32 1.442695, %v966_v4 }
 0x2d8   : > { %v1039_v40 = vadd.f32 %v7598_v20, %v1038_v12  ;;  %v7608_v24 = vpop.eup %6466  ;;  %v1032_v12 = vmul.f32 1.442695, %v971_v11  ;;  %6492 = vpow2.f32 %v1006_v25 }
 0x2d9   : > { %v7613_v31 = vpop.eup %6468  ;;  %6494 = vpow2.f32 %v1034_v14 }
 0x2da   : > { %v1040_v22 = vadd.f32 %v7603_v26, %v1039_v40  ;;  %v7620_v23 = vpop.eup %6470  ;;  %6496 = vpow2.f32 %v1008_v18 }
 0x2db   : > { %v7627_v52 = vpop.eup %6472  ;;  %6498 = vpow2.f32 %v1032_v12 }
 0x2dc   : > { %v1041_v27 = vadd.f32 %v7608_v24, %v1040_v22  ;;  %v7634_v3 = vpop.eup %6474  ;;  %6500 = vpow2.f32 %v1010_v45 }
 0x2dd   : > { %v7641_v30 = vpop.eup %6476  ;;  %6502 = vpow2.f32 %v1030_v19 }
 0x2de   : > { %v1042_v47 = vadd.f32 %v7613_v31, %v1041_v27  ;;  %v7648_v40 = vpop.eup %6478  ;;  %v964_v27 = vsub.f32 %v7508_v60, %v7564_v6  ;;  %6504 = vpow2.f32 %v1012_v38 }
 0x2df   : > { %v6481_v29 = vpop.eup %6480  ;;  %6506 = vpow2.f32 %v1028_v16 }
 0x2e0   : > { %v1043_v53 = vadd.f32 %v7620_v23, %v1042_v47  ;;  %v6483_v17 = vpop.eup %6482  ;;  %v965_v47 = vsub.f32 %v7506_v62, %v7564_v6  ;;  %6508 = vpow2.f32 %v1014_v32 }
 0x2e1   : > { %v6485_v21 = vpop.eup %6484  ;;  %6510 = vpow2.f32 %v1026_v36 }
 0x2e2   : > { %v1044_v39 = vadd.f32 %v7627_v52, %v1043_v53  ;;  %v1018_v53 = vmul.f32 1.442695, %v964_v27  ;;  %v6487_v11 = vpop.eup %6486  ;;  %v1020_v44 = vmul.f32 1.442695, %v965_v47  ;;  %6512 = vpow2.f32 %v1016_v15  ;;  %v10116_v15 = vld [vmem:[#allocation55_spill] sm:$0xff] }
 0x2e3   : > { %v6489_v25 = vpop.eup %6488  ;;  %6514 = vpow2.f32 %v1024_v51  ;;  %v7747_v51 = vpop.permute.xlu1 %302 }
 0x2e4   : > { %v1045_v50 = vadd.f32 %v7634_v3, %v1044_v39  ;;  %v7663_v39 = vpop.eup %6490  ;;  %6516 = vpow2.f32 %v1018_v53  ;;  %v10119_v53 = vld [vmem:[#allocation69_spill] sm:$0xff] }
 0x2e5   : > { %v7665_v6 = vpop.eup %6492  ;;  %6518 = vpow2.f32 %v1022_v42  ;;  %5494 = vmatprep.subr.mxu0 %v7663_v39 }
 0x2e6   : > { %v1046_v35 = vadd.f32 %v7641_v30, %v1045_v50  ;;  %v6495_v14 = vpop.eup %6494  ;;  %6520 = vpow2.f32 %v1020_v44  ;;  %5495 = vmatpush3.msra.mxu0 %v6489_v25 }
 0x2e7   : > { %v6497_v43 = vpop.eup %6496  ;;  %5496 = vmatprep.subr.mxu0 %v6495_v14 }
 0x2e8   : > { %v1047_v22 = vadd.f32 %v7648_v40, %v1046_v35  ;;  %v6499_v18 = vpop.eup %6498  ;;  %5497 = vmatpush3.msra.mxu0 %v6487_v11 }
 0x2e9   : > { %v6501_v7 = vpop.eup %6500  ;;  %5498 = vmatprep.subr.mxu0 %v6499_v18 }
 0x2ea   : > { %v1048_v0 = vadd.f32 %v6481_v29, %v1047_v22  ;;  %v6503_v12 = vpop.eup %6502  ;;  %5499 = vmatpush3.msra.mxu0 %v6485_v21 }
 0x2eb   : > { %v6505_v45 = vpop.eup %6504  ;;  %5500 = vmatprep.subr.mxu0 %v6503_v12 }
 0x2ec   : > { %v1049_v58 = vadd.f32 %v6483_v17, %v1048_v0  ;;  %v6507_v35 = vpop.eup %6506  ;;  %5501 = vmatpush3.msra.mxu0 %v6483_v17 }
 0x2ed   : > { %v6509_v19 = vpop.eup %6508  ;;  %5502 = vmatprep.subr.mxu0 %v6507_v35 }
 0x2ee   : > { %v1050_v60 = vadd.f32 %v6485_v21, %v1049_v58  ;;  %v6511_v37 = vpop.eup %6510  ;;  %5503 = vmatpush3.msra.mxu0 %v6481_v29  ;;  %v10117_v58 = vld [vmem:[#allocation56_spill] sm:$0xff]  ;;  %v10118_v21 = vld [vmem:[#allocation58_spill] sm:$0xff] }
 0x2ef   : > { %v6513_v22 = vpop.eup %6512  ;;  %5504 = vmatprep.subr.mxu0 %v6511_v37 }
 0x2f0   : > { %v1051_v56 = vadd.f32 %v6487_v11, %v1050_v60  ;;  %v6515_v1 = vpop.eup %6514  ;;  %5505 = vmatpush3.msra.mxu0 %v7648_v40  ;;  %v7751_v60 = vadd.f32 %v10119_v53, %v7747_v51  ;;  %v10120_v11 = vld [vmem:[#allocation60_spill] sm:$0xff] }
 0x2f1   : > { %v6517_v27 = vpop.eup %6516  ;;  %5506 = vmatprep.subr.mxu0 %v6515_v1 }
 0x2f2   : > { %v1052_v62 = vadd.f32 %v6489_v25, %v1051_v56  ;;  %v6519_v32 = vpop.eup %6518  ;;  %5507 = vmatpush3.msra.mxu0 %v7641_v30 }
 0x2f3   : > { %v6521_v4 = vpop.eup %6520  ;;  %5508 = vmatprep.subr.mxu0 %v6519_v32 }
 0x2f4   : > { %v1053_v48 = vadd.f32 %v7665_v6, %v1052_v62  ;;  %5509 = vmatpush3.msra.mxu0 %v7634_v3  ;;  %v421_v3 = vadd.f32 %v7217_v34, %v7212_v28  ;;  %v10099_v28 = vld [vmem:[#allocation24_spill] sm:$0xff]  ;;  %v10100_v34 = vld [vmem:[#allocation26_spill] sm:$0xff] }
 0x2f5   : > { %5510 = vmatprep.subr.mxu0 %v6521_v4 }
 0x2f6   : > { %v1054_v50 = vadd.f32 %v6497_v43, %v1053_v48  ;;  %5511 = vmatpush3.msra.mxu0 %v7627_v52 }
 0x2f7   : > { %5512 = vmatprep.subr.mxu0 %v6517_v27 }
 0x2f8   : > { %v1055_v49 = vadd.f32 %v6501_v7, %v1054_v50  ;;  %5513 = vmatpush3.msra.mxu0 %v7620_v23 }
 0x2f9   : > { %5514 = vmatprep.subr.mxu0 %v6513_v22 }
 0x2fa   : > { %v1056_v9 = vadd.f32 %v6505_v45, %v1055_v49  ;;  %5515 = vmatpush3.msra.mxu0 %v7613_v31  ;;  %v1152_v31 = vmul.f32 0.35355338, %v421_v3 }
 0x2fb   : > { %5516 = vmatprep.subr.mxu0 %v6509_v19 }
 0x2fc   : > { %v1057_v38 = vadd.f32 %v6509_v19, %v1056_v9  ;;  %5517 = vmatpush3.msra.mxu0 %v7608_v24 }
 0x2fd   : > { %5518 = vmatprep.subr.mxu0 %v6505_v45 }
 0x2fe   : > { %v1058_v16 = vadd.f32 %v6513_v22, %v1057_v38  ;;  %5519 = vmatpush3.msra.mxu0 %v7603_v26  ;;  %v10115_v26 = vld [vmem:[#allocation53_spill] sm:$0xff] }
 0x2ff   : > { %5520 = vmatprep.subr.mxu0 %v6501_v7 }
 0x300   : > { %v1059_v0 = vadd.f32 %v6517_v27, %v1058_v16  ;;  %5521 = vmatpush3.msra.mxu0 %v7598_v20  ;;  %v10114_v20 = vld [vmem:[#allocation51_spill] sm:$0xff] }
 0x301   : > { %5522 = vmatprep.subr.mxu0 %v6497_v43 }
 0x302   : > { %v1060_v17 = vadd.f32 %v6521_v4, %v1059_v0  ;;  %5523 = vmatpush3.msra.mxu0 %v7592_v46  ;;  %v10113_v46 = vld [vmem:[#allocation50_spill] sm:$0xff] }
 0x303   : > { %5524 = vmatprep.subr.mxu0 %v7665_v6 }
 0x304   : > { %v1061_v36 = vadd.f32 %v6519_v32, %v1060_v17  ;;  %5525 = vmatpush3.msra.mxu0 %v7588_v41  ;;  %v10112_v41 = vld [vmem:[#allocation48_spill] sm:$0xff] }
 0x305   : > { %1140 = vmatmul.mubr.f32.vlgmr.msra.gmra.mxu0 %v7215_v33  ;;  %6055 = vmatprep.subr.mxu0 %v1152_v31 }
 0x306   : > { %v1062_v29 = vadd.f32 %v6515_v1, %v1061_v36  ;;  %6056 = vmatpush3.msra.mxu0 %v1152_v31  ;;  %6057 = vmatprep.mubr.msk.f32.mxu0 %vm583_vm1, %v7237_v54  ;;  %v10101_v54 = vld [vmem:[#allocation28_spill] sm:$0xff] }
 0x308   : > { %v1063_v40 = vadd.f32 %v6511_v37, %v1062_v29 }
 0x309   : > { %6058 = vmatmul.mubr.msk.f32.vlgmr.msra.gmra.mxu0 %vm583_vm1, %v7241_v55  ;;  %v10102_v55 = vld [vmem:[#allocation30_spill] sm:$0xff] }
 0x30a   : > { %v1064_v47 = vadd.f32 %v6507_v35, %v1063_v40  ;;  %6060 = vmatprep.mubr.msk.f32.mxu0 %vm583_vm1, %v7247_v57  ;;  %v10103_v57 = vld [vmem:[#allocation32_spill] sm:$0xff] }
 0x30c   : > { %v1065_v30 = vadd.f32 %v6503_v12, %v1064_v47 }
 0x30d   : > { %6061 = vmatmul.mubr.msk.f32.gmra.mxu0 %vm583_vm1, %v7253_v59  ;;  %v10104_v59 = vld [vmem:[#allocation34_spill] sm:$0xff] }
 0x30e   : > { %v1066_v52 = vadd.f32 %v6499_v18, %v1065_v30  ;;  %6063 = vmatprep.mubr.msk.f32.mxu0 %vm583_vm1, %v7259_v61  ;;  %v10105_v61 = vld [vmem:[#allocation36_spill] sm:$0xff] }
 0x310   : > { %v1067_v23 = vadd.f32 %v6495_v14, %v1066_v52 }
 0x311   : > { %6064 = vmatmul.mubr.msk.f32.gmra.mxu0 %vm583_vm1, %v7265_v63  ;;  %v10106_v63 = vld [vmem:[#allocation38_spill] sm:$0xff] }
 0x312   : > { %v1068_v24 = vadd.f32 %v7663_v39, %v1067_v23  ;;  %6066 = vmatprep.mubr.msk.f32.mxu0 %vm583_vm1, %v7271_v2  ;;  %v10107_v2 = vld [vmem:[#allocation40_spill] sm:$0xff] }
 0x314   : > { %v1069_v42 = vrot.slane %v1068_v24, 4 }
 0x315   : > { %6067 = vmatmul.mubr.msk.f32.gmra.mxu0 %vm583_vm1, %v7280_v5  ;;  %v10108_v5 = vld [vmem:[#allocation41_spill] sm:$0xff] }
 0x316   : > { %6069 = vmatprep.mubr.msk.f32.mxu0 %vm583_vm1, %v7289_v8  ;;  %v10109_v8 = vld [vmem:[#allocation43_spill] sm:$0xff]  ;;  %v1070_v44 = vadd.f32 %v1069_v42, %v1068_v24 }
 0x318   : > { %v1071_v56 = vrot.slane %v1070_v44, 2 }
 0x319   : > { %6070 = vmatmul.mubr.msk.f32.gmra.mxu0 %vm583_vm1, %v7295_v10  ;;  %v10110_v10 = vld [vmem:[#allocation45_spill] sm:$0xff] }
 0x31a   : > { %6072 = vmatprep.mubr.msk.f32.mxu0 %vm583_vm1, %v7304_v13  ;;  %v10111_v13 = vld [vmem:[#allocation46_spill] sm:$0xff]  ;;  %v1072_v25 = vadd.f32 %v1071_v56, %v1070_v44 }
 0x31c   : > { %v1073_v39 = vrot.slane %v1072_v25, 1 }
 0x31d   : > { %6073 = vmatmul.mubr.msk.f32.gmra.mxu0 %vm583_vm1, %v10099_v28 }
 0x31e   : > { %6075 = vmatprep.mubr.msk.f32.mxu0 %vm583_vm1, %v10100_v34  ;;  %v1074_v62 = vadd.f32 %v1073_v39, %v1072_v25 }
 0x320   : > { %6522 = vrcp.f32 %v1074_v62 }
 0x321   : > { %6076 = vmatmul.mubr.msk.f32.gmra.mxu0 %vm583_vm1, %v10101_v54 }
 0x322   : > { %6078 = vmatprep.mubr.msk.f32.mxu0 %vm583_vm1, %v10102_v55 }
 0x325   : > { %6079 = vmatmul.mubr.msk.f32.gmra.mxu0 %vm583_vm1, %v10103_v57 }
 0x326   : > { %6081 = vmatprep.mubr.msk.f32.mxu0 %vm583_vm1, %v10104_v59 }
 0x329   : > { %6082 = vmatmul.mubr.msk.f32.gmra.mxu0 %vm583_vm1, %v10105_v61 }
 0x32a   : > { %6084 = vmatprep.mubr.msk.f32.mxu0 %vm583_vm1, %v10106_v63 }
 0x32d   : > { %6085 = vmatmul.mubr.msk.f32.gmra.mxu0 %vm583_vm1, %v10107_v2  ;;  %v6523_v6 = vpop.eup %6522 }
 0x32e   : > { %6087 = vmatprep.mubr.msk.f32.mxu0 %vm583_vm1, %v10108_v5  ;;  %v1146_v14 = vmul.f32 %v6523_v6, %v1074_v62 }
 0x330   : > { %v1147_v48 = vsub.f32 2.0, %v1146_v14 }
 0x331   : > { %6088 = vmatmul.mubr.msk.f32.gmra.mxu0 %vm583_vm1, %v10109_v8 }
 0x332   : > { %6090 = vmatprep.mubr.msk.f32.mxu0 %vm583_vm1, %v10110_v10  ;;  %v1148_v7 = vmul.f32 %v6523_v6, %v1147_v48 }
 0x335   : > { %6091 = vmatmul.mubr.msk.f32.gmra.mxu0 %vm583_vm1, %v10111_v13 }
 0x336   : > { %6093 = vmatprep.mubr.msk.f32.mxu0 %vm583_vm1, %v10112_v41 }
 0x339   : > { %6094 = vmatmul.mubr.msk.f32.gmra.mxu0 %vm583_vm1, %v10113_v46 }
 0x33a   : > { %6096 = vmatprep.mubr.msk.f32.mxu0 %vm583_vm1, %v10114_v20 }
 0x33d   : > { %6097 = vmatmul.mubr.msk.f32.gmra.mxu0 %vm583_vm1, %v10115_v26 }
 0x33e   : > { %6099 = vmatprep.mubr.msk.f32.mxu0 %vm583_vm1, %v10116_v15 }
 0x341   : > { %6100 = vmatmul.mubr.msk.f32.gmra.mxu0 %vm583_vm1, %v10117_v58 }
 0x342   : > { %6102 = vmatprep.mubr.msk.f32.mxu0 %vm583_vm1, %v10118_v21 }
 0x345   : > { %6103 = vmatmul.mubr.msk.f32.gmra.mxu0 %vm583_vm1, %v10120_v11 }
 0x346   : > { %2249 = vmatprep.mubr.f32.mxu0 %v7751_v60 }
 0x3c5   : > { %v5526_v43 = vpop.f32.mrf.mxu0 }
 0x3c7   : > { %v5527_v18 = vpop.f32.mrf.mxu0 }
 0x3c8   : > { %v5528_v50 = vadd.f32 %v5527_v18, %v5526_v43 }
 0x3c9   : > { %v7756_v12 = vpop.f32.mrf.mxu0 }
 0x3ca   : > { %v7758_v49 = vmul.f32 %v5528_v50, %v1148_v7 }
 0x3cb   : > { %v7760_v45 = vpop.f32.mrf.mxu0 }
 0x3cc   : > { %10121 = vst [vmem:[#allocation24_spill] sm:$0xff] %v7758_v49 }
 0x3cd   : > { %v7762_v35 = vpop.f32.mrf.mxu0 }
 0x3cf   : > { %v7764_v9 = vpop.f32.mrf.mxu0 }
 0x3d1   : > { %v7766_v19 = vpop.f32.mrf.mxu0 }
 0x3d2   : > { %v1379_v54 = vmax.f32 %v7756_v12, %v7766_v19 }
 0x3d3   : > { %v7768_v37 = vpop.f32.mrf.mxu0 }
 0x3d4   : > { %v1378_v28 = vmax.f32 %v7760_v45, %v7768_v37 }
 0x3d5   : > { %v7770_v38 = vpop.f32.mrf.mxu0 }
 0x3d6   : > { %v1381_v55 = vmax.f32 %v7762_v35, %v7770_v38 }
 0x3d7   : > { %v7772_v22 = vpop.f32.mrf.mxu0 }
 0x3d8   : > { %v1380_v57 = vmax.f32 %v7764_v9, %v7772_v22 }
 0x3d9   : > { %v7774_v1 = vpop.f32.mrf.mxu0 }
 0x3da   : > { %v1383_v63 = vmax.f32 %v1379_v54, %v7774_v1 }
 0x3db   : > { %v7776_v16 = vpop.f32.mrf.mxu0 }
 0x3dc   : > { %v1382_v59 = vmax.f32 %v1378_v28, %v7776_v16 }
 0x3dd   : > { %v7778_v27 = vpop.f32.mrf.mxu0 }
 0x3de   : > { %v1385_v2 = vmax.f32 %v1381_v55, %v7778_v27 }
 0x3df   : > { %v7780_v32 = vpop.f32.mrf.mxu0 }
 0x3e0   : > { %v1384_v5 = vmax.f32 %v1380_v57, %v7780_v32 }
 0x3e1   : > { %v7782_v0 = vpop.f32.mrf.mxu0 }
 0x3e2   : > { %v1387_v13 = vmax.f32 %v1383_v63, %v7782_v0 }
 0x3e3   : > { %v7784_v4 = vpop.f32.mrf.mxu0 }
 0x3e4   : > { %v1386_v8 = vmax.f32 %v1382_v59, %v7784_v4 }
 0x3e5   : > { %v7786_v17 = vpop.f32.mrf.mxu0 }
 0x3e6   : > { %v1389_v41 = vmax.f32 %v1385_v2, %v7786_v17 }
 0x3e7   : > { %v7788_v36 = vpop.f32.mrf.mxu0 }
 0x3e8   : > { %v1388_v46 = vmax.f32 %v1384_v5, %v7788_v36 }
 0x3e9   : > { %v7790_v29 = vpop.f32.mrf.mxu0 }
 0x3ea   : > { %v1391_v15 = vmax.f32 %v1387_v13, %v7790_v29 }
 0x3eb   : > { %v7792_v40 = vpop.f32.mrf.mxu0 }
 0x3ec   : > { %v1390_v20 = vmax.f32 %v1386_v8, %v7792_v40 }
 0x3ed   : > { %v7794_v47 = vpop.f32.mrf.mxu0 }
 0x3ee   : > { %v1393_v58 = vmax.f32 %v1389_v41, %v7794_v47 }
 0x3ef   : > { %v7796_v30 = vpop.f32.mrf.mxu0 }
 0x3f0   : > { %v1392_v21 = vmax.f32 %v1388_v46, %v7796_v30 }
 0x3f1   : > { %v7798_v3 = vpop.f32.mrf.mxu0 }
 0x3f2   : > { %v1395_v42 = vmax.f32 %v1391_v15, %v7798_v3 }
 0x3f3   : > { %v7800_v52 = vpop.f32.mrf.mxu0 }
 0x3f4   : > { %v1394_v53 = vmax.f32 %v1390_v20, %v7800_v52 }
 0x3f5   : > { %v7802_v23 = vpop.f32.mrf.mxu0 }
 0x3f6   : > { %v1397_v44 = vmax.f32 %v1393_v58, %v7802_v23 }
 0x3f7   : > { %v7804_v31 = vpop.f32.mrf.mxu0 }
 0x3f8   : > { %v1396_v56 = vmax.f32 %v1392_v21, %v7804_v31 }
 0x3f9   : > { %v7806_v24 = vpop.f32.mrf.mxu0 }
 0x3fa   : > { %v1399_v62 = vmax.f32 %v1395_v42, %v7806_v24 }
 0x3fb   : > { %v7810_v34 = vpop.f32.mrf.mxu0 }
 0x3fc   : > { %v1398_v25 = vmax.f32 %v1394_v53, %v7810_v34 }
 0x3fd   : > { %v7819_v61 = vpop.f32.mrf.mxu0 }
 0x3fe   : > { %v1401_v6 = vmax.f32 %v1397_v44, %v7819_v61 }
 0x3ff   : > { %v7825_v10 = vpop.f32.mrf.mxu0 }
 0x400   : > { %v1400_v14 = vmax.f32 %v1396_v56, %v7825_v10 }
 0x401   : > { %v7831_v26 = vpop.f32.mrf.mxu0 }
 0x402   : > { %v1403_v18 = vmax.f32 %v1399_v62, %v7831_v26 }
 0x403   : > { %v7837_v11 = vpop.f32.mrf.mxu0 }
 0x404   : > { %v1402_v48 = vmax.f32 %v1398_v25, %v7837_v11 }
 0x405   : > { %v7843_v39 = vpop.f32.mrf.mxu0 }
 0x406   : > { %v1405_v50 = vmax.f32 %v1401_v6, %v7843_v39  ;;  %v1406_v28 = vmax.f32 %v1402_v48, %v1403_v18 }
 0x407   : > { %v7849_v43 = vpop.f32.mrf.mxu0 }
 0x408   : > { %v1404_v7 = vmax.f32 %v1400_v14, %v7849_v43 }
 0x40a   : > { %v1407_v54 = vmax.f32 %v1404_v7, %v1405_v50 }
 0x40c   : > { %v1408_v55 = vmax.f32 %v1406_v28, %v1407_v54 }
 0x40e   : > { %v1409_v57 = vrot.slane %v1408_v55, 4 }
 0x410   : > { %v1410_v59 = vmax.f32 %v1408_v55, %v1409_v57 }
 0x412   : > { %v1411_v63 = vrot.slane %v1410_v59, 2 }
 0x414   : > { %v1412_v2 = vmax.f32 %v1410_v59, %v1411_v63 }
 0x416   : > { %v1413_v5 = vrot.slane %v1412_v2, 1 }
 0x418   : > { %v7854_v8 = vmax.f32 %v1412_v2, %v1413_v5 }
 0x41a   : > { %v1415_v13 = vsub.f32 %v7760_v45, %v7854_v8  ;;  %v1416_v41 = vsub.f32 %v7756_v12, %v7854_v8  ;;  %v1417_v46 = vsub.f32 %v7764_v9, %v7854_v8  ;;  %v1418_v20 = vsub.f32 %v7762_v35, %v7854_v8 }
 0x41b   : > { %v1419_v58 = vsub.f32 %v7768_v37, %v7854_v8  ;;  %v1420_v42 = vsub.f32 %v7766_v19, %v7854_v8  ;;  %v1421_v12 = vsub.f32 %v7772_v22, %v7854_v8  ;;  %v1422_v35 = vsub.f32 %v7770_v38, %v7854_v8 }
 0x41c   : > { %v1447_v15 = vmul.f32 1.442695, %v1415_v13  ;;  %v1449_v21 = vmul.f32 1.442695, %v1416_v41  ;;  %v1451_v53 = vmul.f32 1.442695, %v1417_v46  ;;  %v1423_v37 = vsub.f32 %v7776_v16, %v7854_v8 }
 0x41d   : > { %v1453_v45 = vmul.f32 1.442695, %v1418_v20  ;;  %v1455_v9 = vmul.f32 1.442695, %v1419_v58  ;;  %v1457_v44 = vmul.f32 1.442695, %v1420_v42  ;;  %v1424_v19 = vsub.f32 %v7774_v1, %v7854_v8 }
 0x41e   : > { %6524 = vpow2.f32 %v1447_v15  ;;  %v1459_v56 = vmul.f32 1.442695, %v1421_v12  ;;  %v1461_v25 = vmul.f32 1.442695, %v1422_v35  ;;  %v1425_v22 = vsub.f32 %v7780_v32, %v7854_v8  ;;  %v4967_v1 = vld [vmem:[%s9931_s4 + $0x8] sm:$0xff] }
 0x41f   : > { %6526 = vpow2.f32 %v1449_v21  ;;  %v1463_v62 = vmul.f32 1.442695, %v1423_v37  ;;  %v1426_v38 = vsub.f32 %v7778_v27, %v7854_v8  ;;  %v1465_v14 = vmul.f32 1.442695, %v1424_v19  ;;  %4977 = vperm.xlu1 %6457, %v4967_v1  }
 0x420   : > { %6528 = vpow2.f32 %v1451_v53  ;;  %v1427_v48 = vsub.f32 %v7784_v4, %v7854_v8  ;;  %v1467_v32 = vmul.f32 1.442695, %v1425_v22  ;;  %v1428_v27 = vsub.f32 %v7782_v0, %v7854_v8 }
 0x421   : > { %6530 = vpow2.f32 %v1453_v45  ;;  %v1469_v7 = vmul.f32 1.442695, %v1426_v38  ;;  %v1429_v4 = vsub.f32 %v7788_v36, %v7854_v8  ;;  %v1430_v63 = vsub.f32 %v7786_v17, %v7854_v8 }
 0x422   : > { %6532 = vpow2.f32 %v1455_v9  ;;  %v1471_v55 = vmul.f32 1.442695, %v1427_v48  ;;  %v1473_v0 = vmul.f32 1.442695, %v1428_v27  ;;  %v1431_v13 = vsub.f32 %v7792_v40, %v7854_v8 }
 0x423   : > { %6534 = vpow2.f32 %v1457_v44  ;;  %v1475_v36 = vmul.f32 1.442695, %v1429_v4  ;;  %v1446_v46 = vsub.f32 %v7843_v39, %v7854_v8  ;;  %v1432_v17 = vsub.f32 %v7790_v29, %v7854_v8 }
 0x424   : > { %6536 = vpow2.f32 %v1459_v56  ;;  %v1445_v15 = vsub.f32 %v7849_v43, %v7854_v8  ;;  %v1477_v58 = vmul.f32 1.442695, %v1430_v63  ;;  %v1433_v53 = vsub.f32 %v7796_v30, %v7854_v8 }
 0x425   : > { %6538 = vpow2.f32 %v1461_v25  ;;  %v1479_v42 = vmul.f32 1.442695, %v1431_v13  ;;  %v1444_v39 = vsub.f32 %v7831_v26, %v7854_v8  ;;  %v1509_v29 = vmul.f32 1.442695, %v1446_v46 }
 0x426   : > { %6540 = vpow2.f32 %v1463_v62  ;;  %v1434_v43 = vsub.f32 %v7794_v47, %v7854_v8  ;;  %v1481_v9 = vmul.f32 1.442695, %v1432_v17  ;;  %v1443_v35 = vsub.f32 %v7837_v11, %v7854_v8 }
 0x427   : > { %6542 = vpow2.f32 %v1465_v14  ;;  %v1507_v44 = vmul.f32 1.442695, %v1445_v15  ;;  %v1435_v26 = vsub.f32 %v7800_v52, %v7854_v8  ;;  %v1483_v56 = vmul.f32 1.442695, %v1433_v53 }
 0x428   : > { %6544 = vpow2.f32 %v1467_v32  ;;  %v1442_v19 = vsub.f32 %v7819_v61, %v7854_v8  ;;  %v1505_v25 = vmul.f32 1.442695, %v1444_v39  ;;  %v1436_v11 = vsub.f32 %v7798_v3, %v7854_v8 }
 0x429   : > { %6546 = vpow2.f32 %v1469_v7  ;;  %v1485_v62 = vmul.f32 1.442695, %v1434_v43  ;;  %v1441_v38 = vsub.f32 %v7825_v10, %v7854_v8  ;;  %v1503_v52 = vmul.f32 1.442695, %v1443_v35 }
 0x42a   : > { %6548 = vpow2.f32 %v1471_v55  ;;  %v1437_v61 = vsub.f32 %v7804_v31, %v7854_v8  ;;  %v1487_v48 = vmul.f32 1.442695, %v1435_v26  ;;  %v1440_v32 = vsub.f32 %v7806_v24, %v7854_v8 }
 0x42b   : > { %v7878_v6 = vpop.eup %6524  ;;  %6550 = vpow2.f32 %v1473_v0  ;;  %v1438_v10 = vsub.f32 %v7802_v23, %v7854_v8  ;;  %v1489_v7 = vmul.f32 1.442695, %v1436_v11  ;;  %v1499_v4 = vmul.f32 1.442695, %v1441_v38 }
 0x42c   : > { %v7882_v16 = vpop.eup %6526  ;;  %6552 = vpow2.f32 %v1475_v36  ;;  %v1497_v63 = vmul.f32 1.442695, %v1440_v32  ;;  %v10128_v32 = vld [vmem:[#allocation18_spill] sm:$0xff] }
 0x42d   : > { %v1511_v18 = vadd.f32 %v7882_v16, %v7878_v6  ;;  %v7891_v50 = vpop.eup %6528  ;;  %6554 = vpow2.f32 %v1477_v58 }
 0x42e   : > { %v7896_v54 = vpop.eup %6530  ;;  %6556 = vpow2.f32 %v1479_v42 }
 0x42f   : > { %v1512_v28 = vadd.f32 %v7891_v50, %v1511_v18  ;;  %v7901_v59 = vpop.eup %6532  ;;  %6558 = vpow2.f32 %v1509_v29  ;;  %v1501_v18 = vmul.f32 1.442695, %v1442_v19 }
 0x430   : > { %v7906_v5 = vpop.eup %6534  ;;  %6560 = vpow2.f32 %v1481_v9 }
 0x431   : > { %v1513_v57 = vadd.f32 %v7896_v54, %v1512_v28  ;;  %v7913_v20 = vpop.eup %6536  ;;  %6562 = vpow2.f32 %v1507_v44  ;;  %v1439_v28 = vsub.f32 %v7810_v34, %v7854_v8 }
 0x432   : > { %v7920_v40 = vpop.eup %6538  ;;  %6564 = vpow2.f32 %v1483_v56 }
 0x433   : > { %v1514_v2 = vadd.f32 %v7901_v59, %v1513_v57  ;;  %v7927_v12 = vpop.eup %6540  ;;  %6566 = vpow2.f32 %v1505_v25  ;;  %v1491_v57 = vmul.f32 1.442695, %v1437_v61  ;;  %v1495_v13 = vmul.f32 1.442695, %v1439_v28  ;;  %v10136_v28 = vld [vmem:[#allocation29_spill] sm:$0xff] }
 0x434   : > { %v7934_v37 = vpop.eup %6542  ;;  %6568 = vpow2.f32 %v1485_v62 }
 0x435   : > { %v1515_v41 = vadd.f32 %v7906_v5, %v1514_v2  ;;  %v7941_v22 = vpop.eup %6544  ;;  %6570 = vpow2.f32 %v1503_v52  ;;  %v1493_v2 = vmul.f32 1.442695, %v1438_v10  ;;  %v10134_v10 = vld [vmem:[#allocation25_spill] sm:$0xff] }
 0x436   : > { %v6547_v1 = vpop.eup %6546  ;;  %6572 = vpow2.f32 %v1487_v48  ;;  %v10125_v48 = vld [vmem:[#allocation15_spill] sm:$0xff] }
 0x437   : > { %v1516_v21 = vadd.f32 %v7913_v20, %v1515_v41  ;;  %v6549_v27 = vpop.eup %6548  ;;  %6574 = vpow2.f32 %v1501_v18  ;;  %v10131_v18 = vld [vmem:[#allocation21_spill] sm:$0xff] }
 0x438   : > { %v6551_v55 = vpop.eup %6550  ;;  %6576 = vpow2.f32 %v1489_v7  ;;  %v10135_v7 = vld [vmem:[#allocation27_spill] sm:$0xff] }
 0x439   : > { %v1517_v45 = vadd.f32 %v7920_v40, %v1516_v21  ;;  %v6553_v0 = vpop.eup %6552  ;;  %6578 = vpow2.f32 %v1499_v4  ;;  %v10137_v4 = vld [vmem:[#allocation31_spill] sm:$0xff] }
 0x43a   : > { %v6555_v36 = vpop.eup %6554  ;;  %6580 = vpow2.f32 %v1491_v57  ;;  %v10140_v57 = vld [vmem:[#allocation37_spill] sm:$0xff] }
 0x43b   : > { %v1518_v30 = vadd.f32 %v7927_v12, %v1517_v45  ;;  %v7956_v41 = vpop.eup %6556  ;;  %6582 = vpow2.f32 %v1497_v63  ;;  %v10141_v63 = vld [vmem:[#allocation39_spill] sm:$0xff] }
 0x43c   : > { %v7958_v8 = vpop.eup %6558  ;;  %6584 = vpow2.f32 %v1493_v2  ;;  %v10144_v2 = vld [vmem:[#allocation47_spill] sm:$0xff] }
 0x43d   : > { %v1519_v47 = vadd.f32 %v7934_v37, %v1518_v30  ;;  %v6561_v46 = vpop.eup %6560  ;;  %6586 = vpow2.f32 %v1495_v13  ;;  %5562 = vmatprep.subr.mxu1 %v7958_v8  ;;  %v10145_v13 = vld [vmem:[#allocation49_spill] sm:$0xff] }
 0x43e   : > { %v6563_v15 = vpop.eup %6562  ;;  %5563 = vmatpush3.msra.mxu1 %v6555_v36 }
 0x43f   : > { %v1520_v14 = vadd.f32 %v7941_v22, %v1519_v47  ;;  %v6565_v58 = vpop.eup %6564  ;;  %5564 = vmatprep.subr.mxu1 %v6563_v15 }
 0x440   : > { %v6567_v53 = vpop.eup %6566  ;;  %5565 = vmatpush3.msra.mxu1 %v6553_v0 }
 0x441   : > { %v1521_v3 = vadd.f32 %v6547_v1, %v1520_v14  ;;  %v6569_v42 = vpop.eup %6568  ;;  %5566 = vmatprep.subr.mxu1 %v6567_v53 }
 0x442   : > { %v6571_v45 = vpop.eup %6570  ;;  %5567 = vmatpush3.msra.mxu1 %v6551_v55 }
 0x443   : > { %v1522_v31 = vadd.f32 %v6549_v27, %v1521_v3  ;;  %v6573_v29 = vpop.eup %6572  ;;  %5568 = vmatprep.subr.mxu1 %v6571_v45  ;;  %v10132_v3 = vld [vmem:[#allocation22_spill] sm:$0xff] }
 0x444   : > { %v6575_v9 = vpop.eup %6574  ;;  %5569 = vmatpush3.msra.mxu1 %v6549_v27  ;;  %v10133_v27 = vld [vmem:[#allocation23_spill] sm:$0xff] }
 0x445   : > { %v1523_v24 = vadd.f32 %v6551_v55, %v1522_v31  ;;  %v6577_v35 = vpop.eup %6576  ;;  %5570 = vmatprep.subr.mxu1 %v6575_v9  ;;  %v10138_v31 = vld [vmem:[#allocation33_spill] sm:$0xff]  ;;  %v10139_v55 = vld [vmem:[#allocation35_spill] sm:$0xff] }
 0x446   : > { %v6579_v30 = vpop.eup %6578  ;;  %5571 = vmatpush3.msra.mxu1 %v6547_v1  ;;  %v10123_v1 = vld [vmem:[#allocation7_spill] sm:$0xff] }
 0x447   : > { %v1524_v23 = vadd.f32 %v6553_v0, %v1523_v24  ;;  %v6581_v26 = vpop.eup %6580  ;;  %5572 = vmatprep.subr.mxu1 %v6579_v30  ;;  %v10142_v24 = vld [vmem:[#allocation42_spill] sm:$0xff]  ;;  %v10143_v0 = vld [vmem:[#allocation44_spill] sm:$0xff] }
 0x448   : > { %v6583_v19 = vpop.eup %6582  ;;  %5573 = vmatpush3.msra.mxu1 %v7941_v22 }
 0x449   : > { %v1525_v34 = vadd.f32 %v6555_v36, %v1524_v23  ;;  %v6585_v25 = vpop.eup %6584  ;;  %5574 = vmatprep.subr.mxu1 %v6583_v19  ;;  %v10146_v23 = vld [vmem:[#allocation52_spill] sm:$0xff]  ;;  %v10147_v36 = vld [vmem:[#allocation54_spill] sm:$0xff] }
 0x44a   : > { %v6587_v11 = vpop.eup %6586  ;;  %5575 = vmatpush3.msra.mxu1 %v7934_v37 }
 0x44b   : > { %v1526_v17 = vadd.f32 %v7956_v41, %v1525_v34  ;;  %5576 = vmatprep.subr.mxu1 %v6587_v11  ;;  %v10149_v34 = vld [vmem:[#allocation59_spill] sm:$0xff] }
 0x44c   : > { %5577 = vmatpush3.msra.mxu1 %v7927_v12  ;;  %v10122_v12 = vld [vmem:[#allocation13_spill] sm:$0xff] }
 0x44d   : > { %v1527_v21 = vadd.f32 %v6561_v46, %v1526_v17  ;;  %5578 = vmatprep.subr.mxu1 %v6585_v25  ;;  %v425_v61 = vadd.f32 %v10123_v1, %v10122_v12  ;;  %v10152_v17 = vld [vmem:[#allocation63_spill] sm:$0xff] }
 0x44e   : > { %5579 = vmatpush3.msra.mxu1 %v7920_v40 }
 0x44f   : > { %v1528_v39 = vadd.f32 %v6565_v58, %v1527_v21  ;;  %5580 = vmatprep.subr.mxu1 %v6581_v26  ;;  %v10155_v21 = vld [vmem:[#allocation66_spill] sm:$0xff] }
 0x450   : > { %5581 = vmatpush3.msra.mxu1 %v7913_v20 }
 0x451   : > { %v1529_v43 = vadd.f32 %v6569_v42, %v1528_v39  ;;  %5582 = vmatprep.subr.mxu1 %v6577_v35 }
 0x452   : > { %5583 = vmatpush3.msra.mxu1 %v7906_v5  ;;  %v1629_v5 = vmul.f32 0.35355338, %v425_v61 }
 0x453   : > { %v1530_v44 = vadd.f32 %v6573_v29, %v1529_v43  ;;  %5584 = vmatprep.subr.mxu1 %v6573_v29 }
 0x454   : > { %5585 = vmatpush3.msra.mxu1 %v7901_v59 }
 0x455   : > { %v1531_v56 = vadd.f32 %v6577_v35, %v1530_v44  ;;  %5586 = vmatprep.subr.mxu1 %v6569_v42  ;;  %v4969_v42 = vld [vmem:[%s9931_s4 + $0x18] sm:$0xff] }
 0x456   : > { %5587 = vmatpush3.msra.mxu1 %v7896_v54  ;;  %v10124_v54 = vld [vmem:[#allocation14_spill] sm:$0xff] }
 0x457   : > { %v1532_v47 = vadd.f32 %v6581_v26, %v1531_v56  ;;  %5588 = vmatprep.subr.mxu1 %v6565_v58  ;;  %v10154_v58 = vld [vmem:[#allocation65_spill] sm:$0xff] }
 0x458   : > { %5589 = vmatpush3.msra.mxu1 %v7891_v50  ;;  %v10126_v50 = vld [vmem:[#allocation16_spill] sm:$0xff] }
 0x459   : > { %v1533_v62 = vadd.f32 %v6585_v25, %v1532_v47  ;;  %5590 = vmatprep.subr.mxu1 %v6561_v46  ;;  %v10151_v46 = vld [vmem:[#allocation62_spill] sm:$0xff] }
 0x45a   : > { %5591 = vmatpush3.msra.mxu1 %v7882_v16  ;;  %v10127_v16 = vld [vmem:[#allocation17_spill] sm:$0xff] }
 0x45b   : > { %v1534_v38 = vadd.f32 %v6587_v11, %v1533_v62  ;;  %5592 = vmatprep.subr.mxu1 %v7956_v41  ;;  %v10148_v41 = vld [vmem:[#allocation57_spill] sm:$0xff] }
 0x45c   : > { %5593 = vmatpush3.msra.mxu1 %v7878_v6  ;;  %v10129_v6 = vld [vmem:[#allocation19_spill] sm:$0xff] }
 0x45d   : > { %v1535_v52 = vadd.f32 %v6583_v19, %v1534_v38  ;;  %1613 = vmatmul.mubr.f32.vlgmr.msra.gmra.mxu1 %v7215_v33  ;;  %6105 = vmatprep.subr.mxu1 %v1629_v5  ;;  %v10130_v33 = vld [vmem:[#allocation20_spill] sm:$0xff] }
 0x45e   : > { %6106 = vmatpush3.msra.mxu1 %v1629_v5  ;;  %6107 = vmatprep.mubr.msk.f32.mxu1 %vm583_vm1, %v10124_v54 }
 0x45f   : > { %v1536_v14 = vadd.f32 %v6579_v30, %v1535_v52 }
 0x461   : > { %v1537_v22 = vadd.f32 %v6575_v9, %v1536_v14  ;;  %6108 = vmatmul.mubr.msk.f32.vlgmr.msra.gmra.mxu1 %vm583_vm1, %v10125_v48 }
 0x462   : > { %6110 = vmatprep.mubr.msk.f32.mxu1 %vm583_vm1, %v10126_v50 }
 0x463   : > { %v1538_v37 = vadd.f32 %v6571_v45, %v1537_v22 }
 0x465   : > { %v1539_v40 = vadd.f32 %v6567_v53, %v1538_v37  ;;  %6111 = vmatmul.mubr.msk.f32.gmra.mxu1 %vm583_vm1, %v10127_v16  ;;  %v4968_v53 = vld [vmem:[%s9931_s4 + $0x10] sm:$0xff] }
 0x466   : > { %6113 = vmatprep.mubr.msk.f32.mxu1 %vm583_vm1, %v10128_v32  ;;  %4982 = vperm.xlu1 %6457, %v4968_v53  }
 0x467   : > { %v1540_v20 = vadd.f32 %v6563_v15, %v1539_v40  ;;  %v10153_v15 = vld [vmem:[#allocation64_spill] sm:$0xff] }
 0x469   : > { %v1541_v59 = vadd.f32 %v7958_v8, %v1540_v20  ;;  %6114 = vmatmul.mubr.msk.f32.gmra.mxu1 %vm583_vm1, %v10129_v6  ;;  %v10150_v8 = vld [vmem:[#allocation61_spill] sm:$0xff] }
 0x46a   : > { %6116 = vmatprep.mubr.msk.f32.mxu1 %vm583_vm1, %v10130_v33  ;;  %4987 = vperm.xlu1 %6457, %v4969_v42  }
 0x46b   : > { %v1542_v39 = vrot.slane %v1541_v59, 4 }
 0x46d   : > { %6117 = vmatmul.mubr.msk.f32.gmra.mxu1 %vm583_vm1, %v10131_v18  ;;  %v1543_v45 = vadd.f32 %v1542_v39, %v1541_v59 }
 0x46e   : > { %6119 = vmatprep.mubr.msk.f32.mxu1 %vm583_vm1, %v10132_v3 }
 0x46f   : > { %v1544_v29 = vrot.slane %v1543_v45, 2 }
 0x471   : > { %6120 = vmatmul.mubr.msk.f32.gmra.mxu1 %vm583_vm1, %v10133_v27  ;;  %v1545_v43 = vadd.f32 %v1544_v29, %v1543_v45 }
 0x472   : > { %6122 = vmatprep.mubr.msk.f32.mxu1 %vm583_vm1, %v10134_v10 }
 0x473   : > { %v1546_v9 = vrot.slane %v1545_v43, 1 }
 0x475   : > { %6123 = vmatmul.mubr.msk.f32.gmra.mxu1 %vm583_vm1, %v10135_v7  ;;  %v1547_v35 = vadd.f32 %v1546_v9, %v1545_v43 }
 0x476   : > { %6125 = vmatprep.mubr.msk.f32.mxu1 %vm583_vm1, %v10136_v28 }
 0x477   : > { %6588 = vrcp.f32 %v1547_v35 }
 0x479   : > { %6126 = vmatmul.mubr.msk.f32.gmra.mxu1 %vm583_vm1, %v10137_v4 }
 0x47a   : > { %6128 = vmatprep.mubr.msk.f32.mxu1 %vm583_vm1, %v10138_v31 }
 0x47d   : > { %6129 = vmatmul.mubr.msk.f32.gmra.mxu1 %vm583_vm1, %v10139_v55 }
 0x47e   : > { %6131 = vmatprep.mubr.msk.f32.mxu1 %vm583_vm1, %v10140_v57 }
 0x481   : > { %6132 = vmatmul.mubr.msk.f32.gmra.mxu1 %vm583_vm1, %v10141_v63 }
 0x482   : > { %6134 = vmatprep.mubr.msk.f32.mxu1 %vm583_vm1, %v10142_v24 }
 0x484   : > { %v6589_v44 = vpop.eup %6588 }
 0x485   : > { %6135 = vmatmul.mubr.msk.f32.gmra.mxu1 %vm583_vm1, %v10143_v0  ;;  %v1619_v30 = vmul.f32 %v6589_v44, %v1547_v35 }
 0x486   : > { %6137 = vmatprep.mubr.msk.f32.mxu1 %vm583_vm1, %v10144_v2 }
 0x489   : > { %6138 = vmatmul.mubr.msk.f32.gmra.mxu1 %vm583_vm1, %v10145_v13 }
 0x48a   : > { %6140 = vmatprep.mubr.msk.f32.mxu1 %vm583_vm1, %v10146_v23 }
 0x48d   : > { %6141 = vmatmul.mubr.msk.f32.gmra.mxu1 %vm583_vm1, %v10147_v36 }
 0x48e   : > { %6143 = vmatprep.mubr.msk.f32.mxu1 %vm583_vm1, %v10148_v41 }
 0x491   : > { %6144 = vmatmul.mubr.msk.f32.gmra.mxu1 %vm583_vm1, %v10149_v34 }
 0x492   : > { %6146 = vmatprep.mubr.msk.f32.mxu1 %vm583_vm1, %v10150_v8 }
 0x495   : > { %6147 = vmatmul.mubr.msk.f32.gmra.mxu1 %vm583_vm1, %v10151_v46 }
 0x496   : > { %6149 = vmatprep.mubr.msk.f32.mxu1 %vm583_vm1, %v10152_v17 }
 0x499   : > { %6150 = vmatmul.mubr.msk.f32.gmra.mxu1 %vm583_vm1, %v10153_v15 }
 0x49a   : > { %6152 = vmatprep.mubr.msk.f32.mxu1 %vm583_vm1, %v10154_v58 }
 0x49d   : > { %6153 = vmatmul.mubr.msk.f32.gmra.mxu1 %vm583_vm1, %v10155_v21 }
 0x49e   : > { %2722 = vmatprep.mubr.f32.mxu1 %v7751_v60  ;;  %v1620_v60 = vsub.f32 2.0, %v1619_v30 }
 0x4a0   : > { %v1621_v25 = vmul.f32 %v6589_v44, %v1620_v60 }
 0x51d   : > { %v5594_v26 = vpop.f32.mrf.mxu1 }
 0x51f   : > { %v5595_v56 = vpop.f32.mrf.mxu1 }
 0x520   : > { %v5596_v19 = vadd.f32 %v5595_v56, %v5594_v26 }
 0x521   : > { %v8049_v47 = vpop.f32.mrf.mxu1 }
 0x522   : > { %v8051_v11 = vmul.f32 %v5596_v19, %v1621_v25 }
 0x523   : > { %v8053_v62 = vpop.f32.mrf.mxu1 }
 0x524   : > { %10156 = vst [vmem:[#allocation26_spill] sm:$0xff] %v8051_v11 }
 0x525   : > { %v8055_v38 = vpop.f32.mrf.mxu1 }
 0x527   : > { %v8057_v52 = vpop.f32.mrf.mxu1 }
 0x529   : > { %v8059_v14 = vpop.f32.mrf.mxu1 }
 0x52a   : > { %v2016_v25 = vmax.f32 %v8049_v47, %v8059_v14 }
 0x52b   : > { %v8061_v22 = vpop.f32.mrf.mxu1 }
 0x52c   : > { %v2015_v56 = vmax.f32 %v8053_v62, %v8061_v22 }
 0x52d   : > { %v8063_v37 = vpop.f32.mrf.mxu1 }
 0x52e   : > { %v2018_v49 = vmax.f32 %v8055_v38, %v8063_v37 }
 0x52f   : > { %v8065_v1 = vpop.f32.mrf.mxu1 }
 0x530   : > { %v2017_v11 = vmax.f32 %v8057_v52, %v8065_v1 }
 0x531   : > { %v8067_v61 = vpop.f32.mrf.mxu1 }
 0x532   : > { %v2020_v15 = vmax.f32 %v2016_v25, %v8067_v61 }
 0x533   : > { %v8069_v40 = vpop.f32.mrf.mxu1 }
 0x534   : > { %v2019_v21 = vmax.f32 %v2015_v56, %v8069_v40 }
 0x535   : > { %v8071_v20 = vpop.f32.mrf.mxu1 }
 0x536   : > { %v2022_v17 = vmax.f32 %v2018_v49, %v8071_v20 }
 0x537   : > { %v8073_v5 = vpop.f32.mrf.mxu1 }
 0x538   : > { %v2021_v46 = vmax.f32 %v2017_v11, %v8073_v5 }
 0x539   : > { %v8075_v59 = vpop.f32.mrf.mxu1 }
 0x53a   : > { %v2024_v41 = vmax.f32 %v2020_v15, %v8075_v59 }
 0x53b   : > { %v8077_v53 = vpop.f32.mrf.mxu1 }
 0x53c   : > { %v2023_v8 = vmax.f32 %v2019_v21, %v8077_v53 }
 0x53d   : > { %v8079_v42 = vpop.f32.mrf.mxu1 }
 0x53e   : > { %v2026_v36 = vmax.f32 %v2022_v17, %v8079_v42 }
 0x53f   : > { %v8081_v39 = vpop.f32.mrf.mxu1 }
 0x540   : > { %v2025_v23 = vmax.f32 %v2021_v46, %v8081_v39 }
 0x541   : > { %v8083_v45 = vpop.f32.mrf.mxu1 }
 0x542   : > { %v2028_v25 = vmax.f32 %v2024_v41, %v8083_v45 }
 0x543   : > { %v8085_v29 = vpop.f32.mrf.mxu1 }
 0x544   : > { %v2027_v56 = vmax.f32 %v2023_v8, %v8085_v29 }
 0x545   : > { %v8087_v43 = vpop.f32.mrf.mxu1 }
 0x546   : > { %v2030_v49 = vmax.f32 %v2026_v36, %v8087_v43 }
 0x547   : > { %v8089_v9 = vpop.f32.mrf.mxu1 }
 0x548   : > { %v2029_v11 = vmax.f32 %v2025_v23, %v8089_v9 }
 0x549   : > { %v8091_v35 = vpop.f32.mrf.mxu1 }
 0x54a   : > { %v2032_v15 = vmax.f32 %v2028_v25, %v8091_v35 }
 0x54b   : > { %v8093_v44 = vpop.f32.mrf.mxu1 }
 0x54c   : > { %v2031_v21 = vmax.f32 %v2027_v56, %v8093_v44 }
 0x54d   : > { %v8095_v30 = vpop.f32.mrf.mxu1 }
 0x54e   : > { %v2034_v17 = vmax.f32 %v2030_v49, %v8095_v30 }
 0x54f   : > { %v8097_v60 = vpop.f32.mrf.mxu1 }
 0x550   : > { %v2033_v46 = vmax.f32 %v2029_v11, %v8097_v60 }
 0x551   : > { %v8099_v26 = vpop.f32.mrf.mxu1 }
 0x552   : > { %v2036_v41 = vmax.f32 %v2032_v15, %v8099_v26 }
 0x553   : > { %v8103_v19 = vpop.f32.mrf.mxu1 }
 0x554   : > { %v2035_v8 = vmax.f32 %v2031_v21, %v8103_v19 }
 0x555   : > { %v8112_v58 = vpop.f32.mrf.mxu1 }
 0x556   : > { %v2038_v36 = vmax.f32 %v2034_v17, %v8112_v58 }
 0x557   : > { %v8118_v34 = vpop.f32.mrf.mxu1 }
 0x558   : > { %v2037_v23 = vmax.f32 %v2033_v46, %v8118_v34 }
 0x559   : > { %v8124_v13 = vpop.f32.mrf.mxu1 }
 0x55a   : > { %v2040_v25 = vmax.f32 %v2036_v41, %v8124_v13 }
 0x55b   : > { %v8130_v2 = vpop.f32.mrf.mxu1 }
 0x55c   : > { %v2039_v56 = vmax.f32 %v2035_v8, %v8130_v2 }
 0x55d   : > { %v8136_v0 = vpop.f32.mrf.mxu1 }
 0x55e   : > { %v2042_v49 = vmax.f32 %v2038_v36, %v8136_v0  ;;  %v2043_v63 = vmax.f32 %v2039_v56, %v2040_v25 }
 0x55f   : > { %v8142_v24 = vpop.f32.mrf.mxu1 }
 0x560   : > { %v2041_v11 = vmax.f32 %v2037_v23, %v8142_v24 }
 0x562   : > { %v2044_v21 = vmax.f32 %v2041_v11, %v2042_v49 }
 0x564   : > { %v2045_v57 = vmax.f32 %v2043_v63, %v2044_v21 }
 0x566   : > { %v2046_v55 = vrot.slane %v2045_v57, 4 }
 0x568   : > { %v2047_v31 = vmax.f32 %v2045_v57, %v2046_v55 }
 0x56a   : > { %v2048_v15 = vrot.slane %v2047_v31, 2 }
 0x56c   : > { %v2049_v4 = vmax.f32 %v2047_v31, %v2048_v15 }
 0x56e   : > { %v2050_v17 = vrot.slane %v2049_v4, 1 }
 0x570   : > { %v8147_v28 = vmax.f32 %v2049_v4, %v2050_v17 }
 0x572   : > { %v2052_v46 = vsub.f32 %v8053_v62, %v8147_v28  ;;  %v2053_v8 = vsub.f32 %v8049_v47, %v8147_v28  ;;  %v2054_v41 = vsub.f32 %v8057_v52, %v8147_v28  ;;  %v2055_v36 = vsub.f32 %v8055_v38, %v8147_v28 }
 0x573   : > { %v2056_v55 = vsub.f32 %v8061_v22, %v8147_v28  ;;  %v2057_v4 = vsub.f32 %v8059_v14, %v8147_v28  ;;  %v2058_v47 = vsub.f32 %v8065_v1, %v8147_v28  ;;  %v2059_v38 = vsub.f32 %v8063_v37, %v8147_v28 }
 0x574   : > { %v2084_v63 = vmul.f32 1.442695, %v2052_v46  ;;  %v2086_v31 = vmul.f32 1.442695, %v2053_v8  ;;  %v2088_v57 = vmul.f32 1.442695, %v2054_v41  ;;  %v2060_v22 = vsub.f32 %v8069_v40, %v8147_v28 }
 0x575   : > { %v2090_v62 = vmul.f32 1.442695, %v2055_v36  ;;  %v2092_v52 = vmul.f32 1.442695, %v2056_v55  ;;  %v2094_v23 = vmul.f32 1.442695, %v2057_v4  ;;  %v2061_v14 = vsub.f32 %v8067_v61, %v8147_v28 }
 0x576   : > { %6590 = vpow2.f32 %v2084_v63  ;;  %v2096_v56 = vmul.f32 1.442695, %v2058_v47  ;;  %v2098_v25 = vmul.f32 1.442695, %v2059_v38  ;;  %v2062_v1 = vsub.f32 %v8073_v5, %v8147_v28 }
 0x577   : > { %6592 = vpow2.f32 %v2086_v31  ;;  %v2100_v49 = vmul.f32 1.442695, %v2060_v22  ;;  %v2063_v37 = vsub.f32 %v8071_v20, %v8147_v28  ;;  %v2102_v21 = vmul.f32 1.442695, %v2061_v14 }
 0x578   : > { %6594 = vpow2.f32 %v2088_v57  ;;  %v2064_v15 = vsub.f32 %v8077_v53, %v8147_v28  ;;  %v2104_v61 = vmul.f32 1.442695, %v2062_v1  ;;  %v2065_v46 = vsub.f32 %v8075_v59, %v8147_v28 }
 0x579   : > { %6596 = vpow2.f32 %v2090_v62  ;;  %v2106_v8 = vmul.f32 1.442695, %v2063_v37  ;;  %v2066_v36 = vsub.f32 %v8081_v39, %v8147_v28  ;;  %v2067_v31 = vsub.f32 %v8079_v42, %v8147_v28 }
 0x57a   : > { %6598 = vpow2.f32 %v2092_v52  ;;  %v2108_v53 = vmul.f32 1.442695, %v2064_v15  ;;  %v2110_v59 = vmul.f32 1.442695, %v2065_v46  ;;  %v2068_v62 = vsub.f32 %v8085_v29, %v8147_v28 }
 0x57b   : > { %6600 = vpow2.f32 %v2094_v23  ;;  %v2112_v39 = vmul.f32 1.442695, %v2066_v36  ;;  %v2083_v52 = vsub.f32 %v8136_v0, %v8147_v28  ;;  %v2069_v42 = vsub.f32 %v8083_v45, %v8147_v28 }
 0x57c   : > { %6602 = vpow2.f32 %v2096_v56  ;;  %v2082_v23 = vsub.f32 %v8142_v24, %v8147_v28  ;;  %v2114_v22 = vmul.f32 1.442695, %v2067_v31  ;;  %v2070_v14 = vsub.f32 %v8089_v9, %v8147_v28 }
 0x57d   : > { %6604 = vpow2.f32 %v2098_v25  ;;  %v2116_v25 = vmul.f32 1.442695, %v2068_v62  ;;  %v2081_v0 = vsub.f32 %v8124_v13, %v8147_v28  ;;  %v2146_v45 = vmul.f32 1.442695, %v2083_v52 }
 0x57e   : > { %6606 = vpow2.f32 %v2100_v49  ;;  %v2071_v24 = vsub.f32 %v8087_v43, %v8147_v28  ;;  %v2118_v37 = vmul.f32 1.442695, %v2069_v42  ;;  %v2144_v15 = vmul.f32 1.442695, %v2082_v23 }
 0x57f   : > { %6608 = vpow2.f32 %v2102_v21  ;;  %v2080_v21 = vsub.f32 %v8130_v2, %v8147_v28  ;;  %v2072_v13 = vsub.f32 %v8093_v44, %v8147_v28  ;;  %v2079_v46 = vsub.f32 %v8112_v58, %v8147_v28 }
 0x580   : > { %6610 = vpow2.f32 %v2104_v61  ;;  %v2073_v2 = vsub.f32 %v8091_v35, %v8147_v28  ;;  %v2122_v36 = vmul.f32 1.442695, %v2071_v24  ;;  %v2074_v58 = vsub.f32 %v8097_v60, %v8147_v28 }
 0x581   : > { %6612 = vpow2.f32 %v2106_v8  ;;  %v2142_v8 = vmul.f32 1.442695, %v2081_v0  ;;  %v2140_v44 = vmul.f32 1.442695, %v2080_v21  ;;  %v2138_v62 = vmul.f32 1.442695, %v2079_v46 }
 0x582   : > { %6614 = vpow2.f32 %v2108_v53  ;;  %v2078_v53 = vsub.f32 %v8118_v34, %v8147_v28  ;;  %v2075_v34 = vsub.f32 %v8095_v30, %v8147_v28  ;;  %v2076_v52 = vsub.f32 %v8103_v19, %v8147_v28 }
 0x583   : > { %v8171_v11 = vpop.eup %6590  ;;  %6616 = vpow2.f32 %v2110_v59  ;;  %v2124_v59 = vmul.f32 1.442695, %v2072_v13 }
 0x584   : > { %v8175_v40 = vpop.eup %6592  ;;  %6618 = vpow2.f32 %v2112_v39  ;;  %v2136_v42 = vmul.f32 1.442695, %v2078_v53  ;;  %v2132_v0 = vmul.f32 1.442695, %v2076_v52 }
 0x585   : > { %v2148_v17 = vadd.f32 %v8175_v40, %v8171_v11  ;;  %v8181_v5 = vpop.eup %6594  ;;  %6620 = vpow2.f32 %v2114_v22  ;;  %v2128_v22 = vmul.f32 1.442695, %v2074_v58 }
 0x586   : > { %v8186_v41 = vpop.eup %6596  ;;  %6622 = vpow2.f32 %v2116_v25  ;;  %v2130_v25 = vmul.f32 1.442695, %v2075_v34 }
 0x587   : > { %v2149_v20 = vadd.f32 %v8181_v5, %v2148_v17  ;;  %v8191_v55 = vpop.eup %6598  ;;  %v2120_v17 = vmul.f32 1.442695, %v2070_v14  ;;  %6624 = vpow2.f32 %v2146_v45 }
 0x588   : > { %v8196_v4 = vpop.eup %6600  ;;  %6626 = vpow2.f32 %v2118_v37 }
 0x589   : > { %v2150_v63 = vadd.f32 %v8186_v41, %v2149_v20  ;;  %v8203_v38 = vpop.eup %6602  ;;  %6628 = vpow2.f32 %v2144_v15 }
 0x58a   : > { %v8210_v29 = vpop.eup %6604  ;;  %6630 = vpow2.f32 %v2120_v17 }
 0x58b   : > { %v2151_v57 = vadd.f32 %v8191_v55, %v2150_v63  ;;  %v8217_v49 = vpop.eup %6606  ;;  %6632 = vpow2.f32 %v2142_v8 }
 0x58c   : > { %v8224_v61 = vpop.eup %6608  ;;  %6634 = vpow2.f32 %v2122_v36 }
 0x58d   : > { %v2152_v47 = vadd.f32 %v8196_v4, %v2151_v57  ;;  %v8231_v20 = vpop.eup %6610  ;;  %v2077_v57 = vsub.f32 %v8099_v26, %v8147_v28  ;;  %6636 = vpow2.f32 %v2140_v44 }
 0x58e   : > { %v6613_v31 = vpop.eup %6612  ;;  %6638 = vpow2.f32 %v2124_v59 }
 0x58f   : > { %v2153_v56 = vadd.f32 %v8203_v38, %v2152_v47  ;;  %v6615_v39 = vpop.eup %6614  ;;  %v2126_v47 = vmul.f32 1.442695, %v2073_v2  ;;  %6640 = vpow2.f32 %v2138_v62 }
 0x590   : > { %v6617_v23 = vpop.eup %6616 }
 0x591   : > { %v2154_v1 = vadd.f32 %v8210_v29, %v2153_v56  ;;  %v2134_v56 = vmul.f32 1.442695, %v2077_v57  ;;  %v6619_v14 = vpop.eup %6618  ;;  %6642 = vpow2.f32 %v2126_v47 }
 0x592   : > { %6644 = vpow2.f32 %v2136_v42 }
 0x593   : > { %v2155_v9 = vadd.f32 %v8217_v49, %v2154_v1  ;;  %v6621_v1 = vpop.eup %6620  ;;  %6646 = vpow2.f32 %v2128_v22  ;;  %v10177_v22 = vld [vmem:[#allocation65_spill] sm:$0xff] }
 0x594   : > { %v8246_v45 = vpop.eup %6622  ;;  %6648 = vpow2.f32 %v2134_v56  ;;  %v10178_v56 = vld [vmem:[#allocation67_spill] sm:$0xff] }
 0x595   : > { %v2156_v43 = vadd.f32 %v8224_v61, %v2155_v9  ;;  %v8248_v19 = vpop.eup %6624  ;;  %6650 = vpow2.f32 %v2130_v25  ;;  %v10180_v25 = vld [vmem:[#allocation66_spill] sm:$0xff] }
 0x596   : > { %v6627_v24 = vpop.eup %6626  ;;  %6652 = vpow2.f32 %v2132_v0  ;;  %5630 = vmatprep.subr.mxu0 %v8248_v19 }
 0x597   : > { %v2157_v63 = vadd.f32 %v8231_v20, %v2156_v43  ;;  %v6629_v21 = vpop.eup %6628  ;;  %5631 = vmatpush3.msra.mxu0 %v6621_v1 }
 0x598   : > { %v6631_v15 = vpop.eup %6630  ;;  %5632 = vmatprep.subr.mxu0 %v6629_v21 }
 0x599   : > { %v2158_v35 = vadd.f32 %v6613_v31, %v2157_v63  ;;  %v6633_v13 = vpop.eup %6632  ;;  %5633 = vmatpush3.msra.mxu0 %v6619_v14 }
 0x59a   : > { %v6635_v17 = vpop.eup %6634  ;;  %5634 = vmatprep.subr.mxu0 %v6633_v13 }
 0x59b   : > { %v2159_v60 = vadd.f32 %v6615_v39, %v2158_v35  ;;  %v6637_v8 = vpop.eup %6636  ;;  %5635 = vmatpush3.msra.mxu0 %v6617_v23 }
 0x59c   : > { %v6639_v43 = vpop.eup %6638  ;;  %5636 = vmatprep.subr.mxu0 %v6637_v8 }
 0x59d   : > { %v2160_v26 = vadd.f32 %v6617_v23, %v2159_v60  ;;  %v6641_v36 = vpop.eup %6640  ;;  %5637 = vmatpush3.msra.mxu0 %v6615_v39  ;;  %v10158_v60 = vld [vmem:[#allocation68_spill] sm:$0xff] }
 0x59e   : > { %v6643_v53 = vpop.eup %6642  ;;  %5638 = vmatprep.subr.mxu0 %v6641_v36  ;;  %v8266_v23 = vadd.f32 %v10158_v60, %v7747_v51  ;;  %v10159_v51 = vld [vmem:[#allocation29_spill] sm:$0xff] }
 0x59f   : > { %v2161_v30 = vadd.f32 %v6619_v14, %v2160_v26  ;;  %v6645_v63 = vpop.eup %6644  ;;  %5639 = vmatpush3.msra.mxu0 %v6613_v31  ;;  %v10179_v26 = vld [vmem:[#allocation71_spill] sm:$0xff] }
 0x5a0   : > { %v6647_v58 = vpop.eup %6646  ;;  %5640 = vmatprep.subr.mxu0 %v6645_v63  ;;  %v8336_v14 = vadd.f32 %v10179_v26, %v10178_v56 }
 0x5a1   : > { %v2162_v28 = vadd.f32 %v6621_v1, %v2161_v30  ;;  %v6649_v57 = vpop.eup %6648  ;;  %5641 = vmatpush3.msra.mxu0 %v8231_v20 }
 0x5a2   : > { %v6651_v62 = vpop.eup %6650  ;;  %5642 = vmatprep.subr.mxu0 %v6649_v57 }
 0x5a3   : > { %v2163_v37 = vadd.f32 %v8246_v45, %v2162_v28  ;;  %v6653_v34 = vpop.eup %6652  ;;  %5643 = vmatpush3.msra.mxu0 %v8224_v61 }
 0x5a4   : > { %5644 = vmatprep.subr.mxu0 %v6653_v34 }
 0x5a5   : > { %v2164_v9 = vadd.f32 %v6627_v24, %v2163_v37  ;;  %5645 = vmatpush3.msra.mxu0 %v8217_v49  ;;  %v10157_v49 = vld [vmem:[#allocation8_spill] sm:$0xff] }
 0x5a6   : > { %5646 = vmatprep.subr.mxu0 %v6651_v62  ;;  %v427_v42 = vadd.f32 %v10157_v49, %v10122_v12  ;;  %v10160_v12 = vld [vmem:[#allocation31_spill] sm:$0xff] }
 0x5a7   : > { %v2165_v46 = vadd.f32 %v6631_v15, %v2164_v9  ;;  %5647 = vmatpush3.msra.mxu0 %v8210_v29 }
 0x5a8   : > { %5648 = vmatprep.subr.mxu0 %v6647_v58 }
 0x5a9   : > { %v2166_v2 = vadd.f32 %v6635_v17, %v2165_v46  ;;  %5649 = vmatpush3.msra.mxu0 %v8203_v38 }
 0x5aa   : > { %5650 = vmatprep.subr.mxu0 %v6643_v53 }
 0x5ab   : > { %v2167_v44 = vadd.f32 %v6639_v43, %v2166_v2  ;;  %5651 = vmatpush3.msra.mxu0 %v8196_v4  ;;  %v2262_v4 = vmul.f32 0.35355338, %v427_v42  ;;  %v8383_v42 = vpop.permute.xlu1 %267 }
 0x5ac   : > { %5652 = vmatprep.subr.mxu0 %v6639_v43 }
 0x5ad   : > { %v2168_v59 = vadd.f32 %v6643_v53, %v2167_v44  ;;  %5653 = vmatpush3.msra.mxu0 %v8191_v55  ;;  %v10176_v55 = vld [vmem:[#allocation64_spill] sm:$0xff] }
 0x5ae   : > { %5654 = vmatprep.subr.mxu0 %v6635_v17 }
 0x5af   : > { %v2169_v35 = vadd.f32 %v6647_v58, %v2168_v59  ;;  %5655 = vmatpush3.msra.mxu0 %v8186_v41 }
 0x5b0   : > { %5656 = vmatprep.subr.mxu0 %v6631_v15 }
 0x5b1   : > { %v2170_v47 = vadd.f32 %v6651_v62, %v2169_v35  ;;  %5657 = vmatpush3.msra.mxu0 %v8181_v5  ;;  %v10175_v5 = vld [vmem:[#allocation63_spill] sm:$0xff] }
 0x5b2   : > { %5658 = vmatprep.subr.mxu0 %v6627_v24 }
 0x5b3   : > { %v2171_v39 = vadd.f32 %v6653_v34, %v2170_v47  ;;  %5659 = vmatpush3.msra.mxu0 %v8175_v40  ;;  %v10174_v40 = vld [vmem:[#allocation62_spill] sm:$0xff] }
 0x5b4   : > { %5660 = vmatprep.subr.mxu0 %v8246_v45 }
 0x5b5   : > { %v2172_v31 = vadd.f32 %v6649_v57, %v2171_v39  ;;  %5661 = vmatpush3.msra.mxu0 %v8171_v11  ;;  %v10173_v11 = vld [vmem:[#allocation61_spill] sm:$0xff] }
 0x5b6   : > { %2250 = vmatmul.mubr.f32.vlgmr.msra.gmra.mxu0 %v8266_v23  ;;  %6155 = vmatprep.subr.mxu0 %v2262_v4 }
 0x5b7   : > { %v2173_v52 = vadd.f32 %v6645_v63, %v2172_v31  ;;  %6156 = vmatpush3.msra.mxu0 %v2262_v4  ;;  %6157 = vmatprep.mubr.msk.f32.mxu0 %vm583_vm1, %v10124_v54  ;;  %v10161_v54 = vld [vmem:[#allocation33_spill] sm:$0xff]  ;;  %v8389_v4 = vpop.trf.xlu1 }
 0x5b9   : > { %v2174_v20 = vadd.f32 %v6641_v36, %v2173_v52 }
 0x5ba   : > { %6158 = vmatmul.mubr.msk.f32.vlgmr.msra.gmra.mxu0 %vm583_vm1, %v10125_v48  ;;  %v10162_v48 = vld [vmem:[#allocation35_spill] sm:$0xff] }
 0x5bb   : > { %v2175_v61 = vadd.f32 %v6637_v8, %v2174_v20  ;;  %6160 = vmatprep.mubr.msk.f32.mxu0 %vm583_vm1, %v10126_v50  ;;  %v10163_v50 = vld [vmem:[#allocation37_spill] sm:$0xff] }
 0x5bd   : > { %v2176_v29 = vadd.f32 %v6633_v13, %v2175_v61 }
 0x5be   : > { %6161 = vmatmul.mubr.msk.f32.gmra.mxu0 %vm583_vm1, %v10127_v16  ;;  %v10164_v16 = vld [vmem:[#allocation39_spill] sm:$0xff] }
 0x5bf   : > { %v2177_v38 = vadd.f32 %v6629_v21, %v2176_v29  ;;  %6163 = vmatprep.mubr.msk.f32.mxu0 %vm583_vm1, %v10128_v32  ;;  %v10165_v32 = vld [vmem:[#allocation42_spill] sm:$0xff] }
 0x5c1   : > { %v2178_v41 = vadd.f32 %v8248_v19, %v2177_v38 }
 0x5c2   : > { %6164 = vmatmul.mubr.msk.f32.gmra.mxu0 %vm583_vm1, %v10129_v6  ;;  %v10166_v6 = vld [vmem:[#allocation44_spill] sm:$0xff] }
 0x5c3   : > { %6166 = vmatprep.mubr.msk.f32.mxu0 %vm583_vm1, %v10130_v33  ;;  %v10167_v33 = vld [vmem:[#allocation47_spill] sm:$0xff]  ;;  %v2179_v0 = vrot.slane %v2178_v41, 4 }
 0x5c5   : > { %v2180_v30 = vadd.f32 %v2179_v0, %v2178_v41 }
 0x5c6   : > { %6167 = vmatmul.mubr.msk.f32.gmra.mxu0 %vm583_vm1, %v10131_v18  ;;  %v10168_v18 = vld [vmem:[#allocation49_spill] sm:$0xff] }
 0x5c7   : > { %6169 = vmatprep.mubr.msk.f32.mxu0 %vm583_vm1, %v10132_v3  ;;  %v10169_v3 = vld [vmem:[#allocation52_spill] sm:$0xff]  ;;  %v2181_v1 = vrot.slane %v2180_v30, 2 }
 0x5c9   : > { %v2182_v45 = vadd.f32 %v2181_v1, %v2180_v30 }
 0x5ca   : > { %6170 = vmatmul.mubr.msk.f32.gmra.mxu0 %vm583_vm1, %v10133_v27  ;;  %v10170_v27 = vld [vmem:[#allocation54_spill] sm:$0xff] }
 0x5cb   : > { %6172 = vmatprep.mubr.msk.f32.mxu0 %vm583_vm1, %v10134_v10  ;;  %v10171_v10 = vld [vmem:[#allocation57_spill] sm:$0xff]  ;;  %v2183_v28 = vrot.slane %v2182_v45, 1 }
 0x5cd   : > { %v2184_v19 = vadd.f32 %v2183_v28, %v2182_v45 }
 0x5ce   : > { %6173 = vmatmul.mubr.msk.f32.gmra.mxu0 %vm583_vm1, %v10135_v7  ;;  %v10172_v7 = vld [vmem:[#allocation59_spill] sm:$0xff] }
 0x5cf   : > { %6175 = vmatprep.mubr.msk.f32.mxu0 %vm583_vm1, %v10159_v51  ;;  %6654 = vrcp.f32 %v2184_v19 }
 0x5d2   : > { %6176 = vmatmul.mubr.msk.f32.gmra.mxu0 %vm583_vm1, %v10160_v12 }
 0x5d3   : > { %6178 = vmatprep.mubr.msk.f32.mxu0 %vm583_vm1, %v10161_v54  ;;  %v8399_v54 = vpop.trf.xlu1 }
 0x5d6   : > { %6179 = vmatmul.mubr.msk.f32.gmra.mxu0 %vm583_vm1, %v10162_v48 }
 0x5d7   : > { %6181 = vmatprep.mubr.msk.f32.mxu0 %vm583_vm1, %v10163_v50 }
 0x5da   : > { %6182 = vmatmul.mubr.msk.f32.gmra.mxu0 %vm583_vm1, %v10164_v16 }
 0x5db   : > { %6184 = vmatprep.mubr.msk.f32.mxu0 %vm583_vm1, %v10165_v32 }
 0x5dc   : > { %v6655_v24 = vpop.eup %6654 }
 0x5dd   : > { %v2256_v37 = vmul.f32 %v6655_v24, %v2184_v19 }
 0x5de   : > { %6185 = vmatmul.mubr.msk.f32.gmra.mxu0 %vm583_vm1, %v10166_v6 }
 0x5df   : > { %6187 = vmatprep.mubr.msk.f32.mxu0 %vm583_vm1, %v10167_v33  ;;  %v2257_v21 = vsub.f32 2.0, %v2256_v37 }
 0x5e1   : > { %v2258_v17 = vmul.f32 %v6655_v24, %v2257_v21 }
 0x5e2   : > { %6188 = vmatmul.mubr.msk.f32.gmra.mxu0 %vm583_vm1, %v10168_v18 }
 0x5e3   : > { %6190 = vmatprep.mubr.msk.f32.mxu0 %vm583_vm1, %v10169_v3 }
 0x5e6   : > { %6191 = vmatmul.mubr.msk.f32.gmra.mxu0 %vm583_vm1, %v10170_v27 }
 0x5e7   : > { %6193 = vmatprep.mubr.msk.f32.mxu0 %vm583_vm1, %v10171_v10 }
 0x5ea   : > { %6194 = vmatmul.mubr.msk.f32.gmra.mxu0 %vm583_vm1, %v10172_v7 }
 0x5eb   : > { %6196 = vmatprep.mubr.msk.f32.mxu0 %vm583_vm1, %v10173_v11 }
 0x5ee   : > { %6197 = vmatmul.mubr.msk.f32.gmra.mxu0 %vm583_vm1, %v10174_v40 }
 0x5ef   : > { %6199 = vmatprep.mubr.msk.f32.mxu0 %vm583_vm1, %v10175_v5 }
 0x5f2   : > { %6200 = vmatmul.mubr.msk.f32.gmra.mxu0 %vm583_vm1, %v10176_v55 }
 0x5f3   : > { %6202 = vmatprep.mubr.msk.f32.mxu0 %vm583_vm1, %v10177_v22  ;;  %v8422_v22 = vpop.trf.xlu1 }
 0x5f6   : > { %6203 = vmatmul.mubr.msk.f32.gmra.mxu0 %vm583_vm1, %v10180_v25 }
 0x5f7   : > { %3359 = vmatprep.mubr.f32.mxu0 %v8336_v14 }
 0x676   : > { %v5662_v15 = vpop.f32.mrf.mxu0 }
 0x678   : > { %v5663_v9 = vpop.f32.mrf.mxu0 }
 0x679   : > { %v5664_v13 = vadd.f32 %v5663_v9, %v5662_v15 }
 0x67a   : > { %v8341_v46 = vpop.f32.mrf.mxu0 }
 0x67b   : > { %v8343_v8 = vmul.f32 %v5664_v13, %v2258_v17 }
 0x67c   : > { %v8345_v43 = vpop.f32.mrf.mxu0 }
 0x67d   : > { %10181 = vst [vmem:[#allocation28_spill] sm:$0xff] %v8343_v8 }
 0x67e   : > { %v8347_v2 = vpop.f32.mrf.mxu0 }
 0x680   : > { %v8349_v36 = vpop.f32.mrf.mxu0 }
 0x682   : > { %v8351_v53 = vpop.f32.mrf.mxu0 }
 0x683   : > { %v2489_v50 = vmax.f32 %v8341_v46, %v8351_v53 }
 0x684   : > { %v8353_v44 = vpop.f32.mrf.mxu0 }
 0x685   : > { %v2488_v12 = vmax.f32 %v8345_v43, %v8353_v44 }
 0x686   : > { %v8355_v63 = vpop.f32.mrf.mxu0 }
 0x687   : > { %v2491_v16 = vmax.f32 %v8347_v2, %v8355_v63 }
 0x688   : > { %v8357_v58 = vpop.f32.mrf.mxu0 }
 0x689   : > { %v2490_v32 = vmax.f32 %v8349_v36, %v8357_v58 }
 0x68a   : > { %v8359_v59 = vpop.f32.mrf.mxu0 }
 0x68b   : > { %v2493_v18 = vmax.f32 %v2489_v50, %v8359_v59 }
 0x68c   : > { %v8361_v57 = vpop.f32.mrf.mxu0 }
 0x68d   : > { %v2492_v6 = vmax.f32 %v2488_v12, %v8361_v57  ;;  %v8442_v12 = vpop.trf.xlu1 }
 0x68e   : > { %v8363_v62 = vpop.f32.mrf.mxu0 }
 0x68f   : > { %v2495_v3 = vmax.f32 %v2491_v16, %v8363_v62 }
 0x690   : > { %v8365_v35 = vpop.f32.mrf.mxu0 }
 0x691   : > { %v2494_v27 = vmax.f32 %v2490_v32, %v8365_v35 }
 0x692   : > { %v8367_v34 = vpop.f32.mrf.mxu0 }
 0x693   : > { %v2497_v11 = vmax.f32 %v2493_v18, %v8367_v34 }
 0x694   : > { %v8369_v47 = vpop.f32.mrf.mxu0 }
 0x695   : > { %v2496_v10 = vmax.f32 %v2492_v6, %v8369_v47 }
 0x696   : > { %v8371_v39 = vpop.f32.mrf.mxu0 }
 0x697   : > { %v2499_v40 = vmax.f32 %v2495_v3, %v8371_v39 }
 0x698   : > { %v8373_v31 = vpop.f32.mrf.mxu0 }
 0x699   : > { %v2498_v5 = vmax.f32 %v2494_v27, %v8373_v31 }
 0x69a   : > { %v8375_v52 = vpop.f32.mrf.mxu0 }
 0x69b   : > { %v2501_v25 = vmax.f32 %v2497_v11, %v8375_v52 }
 0x69c   : > { %v8377_v20 = vpop.f32.mrf.mxu0 }
 0x69d   : > { %v2500_v55 = vmax.f32 %v2496_v10, %v8377_v20  ;;  %v8449_v10 = vpop.trf.xlu1 }
 0x69e   : > { %v8379_v61 = vpop.f32.mrf.mxu0 }
 0x69f   : > { %v2503_v0 = vmax.f32 %v2499_v40, %v8379_v61 }
 0x6a0   : > { %v8381_v49 = vpop.f32.mrf.mxu0 }
 0x6a1   : > { %v2502_v30 = vmax.f32 %v2498_v5, %v8381_v49 }
 0x6a2   : > { %v8385_v29 = vpop.f32.mrf.mxu0 }
 0x6a3   : > { %v2505_v28 = vmax.f32 %v2501_v25, %v8385_v29 }
 0x6a4   : > { %v8387_v38 = vpop.f32.mrf.mxu0 }
 0x6a5   : > { %v2504_v1 = vmax.f32 %v2500_v55, %v8387_v38  ;;  %v8451_v55 = vpop.trf.xlu1 }
 0x6a6   : > { %v8391_v60 = vpop.f32.mrf.mxu0 }
 0x6a7   : > { %v2507_v19 = vmax.f32 %v2503_v0, %v8391_v60 }
 0x6a8   : > { %v8393_v41 = vpop.f32.mrf.mxu0 }
 0x6a9   : > { %v2506_v24 = vmax.f32 %v2502_v30, %v8393_v41  ;;  %v8453_v30 = vpop.trf.xlu1 }
 0x6aa   : > { %v8395_v51 = vpop.f32.mrf.mxu0 }
 0x6ab   : > { %v2509_v15 = vmax.f32 %v2505_v28, %v8395_v51 }
 0x6ac   : > { %v8401_v48 = vpop.f32.mrf.mxu0 }
 0x6ad   : > { %v2508_v37 = vmax.f32 %v2504_v1, %v8401_v48 }
 0x6ae   : > { %v8410_v33 = vpop.f32.mrf.mxu0 }
 0x6af   : > { %v2511_v9 = vmax.f32 %v2507_v19, %v8410_v33 }
 0x6b0   : > { %v8416_v7 = vpop.f32.mrf.mxu0 }
 0x6b1   : > { %v2510_v13 = vmax.f32 %v2506_v24, %v8416_v7 }
 0x6b2   : > { %v8424_v26 = vpop.f32.mrf.mxu0 }
 0x6b3   : > { %v2513_v16 = vmax.f32 %v2509_v15, %v8424_v26 }
 0x6b4   : > { %v8430_v45 = vpop.f32.mrf.mxu0 }
 0x6b5   : > { %v2512_v17 = vmax.f32 %v2508_v37, %v8430_v45  ;;  %v8463_v37 = vpop.trf.xlu1 }
 0x6b6   : > { %v8436_v21 = vpop.f32.mrf.mxu0 }
 0x6b7   : > { %v2515_v32 = vmax.f32 %v2511_v9, %v8436_v21  ;;  %v2516_v18 = vmax.f32 %v2512_v17, %v2513_v16 }
 0x6b8   : > { %v8444_v50 = vpop.f32.mrf.mxu0 }
 0x6b9   : > { %v2514_v6 = vmax.f32 %v2510_v13, %v8444_v50 }
 0x6bb   : > { %v2517_v3 = vmax.f32 %v2514_v6, %v2515_v32  ;;  %v8471_v32 = vpop.trf.xlu1 }
 0x6bd   : > { %v2518_v27 = vmax.f32 %v2516_v18, %v2517_v3 }
 0x6bf   : > { %v2519_v11 = vrot.slane %v2518_v27, 4 }
 0x6c1   : > { %v2520_v40 = vmax.f32 %v2518_v27, %v2519_v11 }
 0x6c3   : > { %v2521_v5 = vrot.slane %v2520_v40, 2 }
 0x6c5   : > { %v2522_v25 = vmax.f32 %v2520_v40, %v2521_v5 }
 0x6c7   : > { %v2523_v0 = vrot.slane %v2522_v25, 1 }
 0x6c9   : > { %v8455_v1 = vmax.f32 %v2522_v25, %v2523_v0 }
 0x6cb   : > { %v2525_v28 = vsub.f32 %v8345_v43, %v8455_v1  ;;  %v2526_v19 = vsub.f32 %v8341_v46, %v8455_v1  ;;  %v2527_v24 = vsub.f32 %v8349_v36, %v8455_v1  ;;  %v2528_v15 = vsub.f32 %v8347_v2, %v8455_v1 }
 0x6cc   : > { %v2529_v13 = vsub.f32 %v8353_v44, %v8455_v1  ;;  %v2530_v43 = vsub.f32 %v8351_v53, %v8455_v1  ;;  %v2531_v36 = vsub.f32 %v8357_v58, %v8455_v1  ;;  %v2532_v2 = vsub.f32 %v8355_v63, %v8455_v1  ;;  %v8479_v53 = vpop.trf.xlu1 }
 0x6cd   : > { %v2557_v9 = vmul.f32 1.442695, %v2525_v28  ;;  %v2559_v17 = vmul.f32 1.442695, %v2526_v19  ;;  %v2561_v16 = vmul.f32 1.442695, %v2527_v24  ;;  %v2533_v18 = vsub.f32 %v8361_v57, %v8455_v1 }
 0x6ce   : > { %v2563_v46 = vmul.f32 1.442695, %v2528_v15  ;;  %v2565_v6 = vmul.f32 1.442695, %v2529_v13  ;;  %v2567_v44 = vmul.f32 1.442695, %v2530_v43  ;;  %v2534_v27 = vsub.f32 %v8359_v59, %v8455_v1 }
 0x6cf   : > { %6656 = vpow2.f32 %v2557_v9  ;;  %v2569_v3 = vmul.f32 1.442695, %v2531_v36  ;;  %v2571_v11 = vmul.f32 1.442695, %v2532_v2  ;;  %v2535_v58 = vsub.f32 %v8365_v35, %v8455_v1 }
 0x6d0   : > { %6658 = vpow2.f32 %v2559_v17  ;;  %v2573_v40 = vmul.f32 1.442695, %v2533_v18  ;;  %v2536_v5 = vsub.f32 %v8363_v62, %v8455_v1  ;;  %v2575_v57 = vmul.f32 1.442695, %v2534_v27  ;;  %v8491_v0 = vpop.trf.xlu1 }
 0x6d1   : > { %6660 = vpow2.f32 %v2561_v16  ;;  %v2537_v59 = vsub.f32 %v8369_v47, %v8455_v1  ;;  %v2577_v28 = vmul.f32 1.442695, %v2535_v58  ;;  %v2538_v24 = vsub.f32 %v8367_v34, %v8455_v1 }
 0x6d2   : > { %6662 = vpow2.f32 %v2563_v46  ;;  %v2579_v62 = vmul.f32 1.442695, %v2536_v5  ;;  %v2539_v13 = vsub.f32 %v8373_v31, %v8455_v1  ;;  %v2540_v34 = vsub.f32 %v8371_v39, %v8455_v1 }
 0x6d3   : > { %6664 = vpow2.f32 %v2565_v6  ;;  %v2581_v47 = vmul.f32 1.442695, %v2537_v59  ;;  %v2583_v46 = vmul.f32 1.442695, %v2538_v24  ;;  %v2541_v31 = vsub.f32 %v8377_v20, %v8455_v1 }
 0x6d4   : > { %6666 = vpow2.f32 %v2567_v44  ;;  %v8509_v43 = vpop.trf.xlu1  ;;  %v2585_v2 = vmul.f32 1.442695, %v2539_v13  ;;  %v2556_v18 = vsub.f32 %v8436_v21, %v8455_v1  ;;  %v2542_v39 = vsub.f32 %v8375_v52, %v8455_v1 }
 0x6d5   : > { %6668 = vpow2.f32 %v2569_v3  ;;  %v2555_v27 = vsub.f32 %v8444_v50, %v8455_v1  ;;  %v2543_v5 = vsub.f32 %v8381_v49, %v8455_v1  ;;  %v2589_v21 = vmul.f32 1.442695, %v2541_v31 }
 0x6d6   : > { %6670 = vpow2.f32 %v2571_v11  ;;  %v2587_v11 = vmul.f32 1.442695, %v2540_v34  ;;  %v2619_v59 = vmul.f32 1.442695, %v2556_v18  ;;  %v2553_v24 = vsub.f32 %v8430_v45, %v8455_v1 }
 0x6d7   : > { %6672 = vpow2.f32 %v2573_v40  ;;  %v2593_v13 = vmul.f32 1.442695, %v2543_v5  ;;  %v2549_v5 = vsub.f32 %v8401_v48, %v8455_v1 }
 0x6d8   : > { %6674 = vpow2.f32 %v2575_v57  ;;  %v8530_v40 = vpop.trf.xlu1  ;;  %v2554_v57 = vsub.f32 %v8424_v26, %v8455_v1  ;;  %v2545_v26 = vsub.f32 %v8387_v38, %v8455_v1  ;;  %v2551_v38 = vsub.f32 %v8416_v7, %v8455_v1 }
 0x6d9   : > { %6676 = vpow2.f32 %v2577_v28  ;;  %10182 = vst [vmem:[#allocation30_spill] sm:$0xff] %v8530_v40  ;;  %v2544_v28 = vsub.f32 %v8379_v61, %v8455_v1  ;;  %v2613_v31 = vmul.f32 1.442695, %v2553_v24  ;;  %v2548_v7 = vsub.f32 %v8391_v60, %v8455_v1 }
 0x6da   : > { %6678 = vpow2.f32 %v2579_v62  ;;  %v2617_v62 = vmul.f32 1.442695, %v2555_v27  ;;  %v2597_v18 = vmul.f32 1.442695, %v2545_v26  ;;  %v2605_v60 = vmul.f32 1.442695, %v2549_v5 }
 0x6db   : > { %6680 = vpow2.f32 %v2581_v47  ;;  %v2552_v47 = vsub.f32 %v8410_v33, %v8455_v1  ;;  %v2603_v24 = vmul.f32 1.442695, %v2548_v7 }
 0x6dc   : > { %v8485_v63 = vpop.eup %6656  ;;  %6682 = vpow2.f32 %v2583_v46  ;;  %v8553_v45 = vpop.trf.xlu1  ;;  %v2546_v46 = vsub.f32 %v8385_v29, %v8455_v1 }
 0x6dd   : > { %v8489_v25 = vpop.eup %6658  ;;  %6684 = vpow2.f32 %v2585_v2  ;;  %10183 = vst [vmem:[#allocation32_spill] sm:$0xff] %v8553_v45  ;;  %v2611_v27 = vmul.f32 1.442695, %v2552_v47 }
 0x6de   : > { %v2621_v35 = vadd.f32 %v8489_v25, %v8485_v63  ;;  %v8497_v19 = vpop.eup %6660  ;;  %6686 = vpow2.f32 %v2587_v11 }
 0x6df   : > { %v8502_v9 = vpop.eup %6662  ;;  %6688 = vpow2.f32 %v2589_v21  ;;  %v2609_v21 = vmul.f32 1.442695, %v2551_v38 }
 0x6e0   : > { %v2622_v15 = vadd.f32 %v8497_v19, %v2621_v35  ;;  %v8507_v16 = vpop.eup %6664  ;;  %v2591_v35 = vmul.f32 1.442695, %v2542_v39  ;;  %6690 = vpow2.f32 %v2619_v59  ;;  %v2550_v39 = vsub.f32 %v8395_v51, %v8455_v1 }
 0x6e1   : > { %v8514_v6 = vpop.eup %6666 }
 0x6e2   : > { %v2623_v17 = vadd.f32 %v8502_v9, %v2622_v15  ;;  %v8521_v3 = vpop.eup %6668  ;;  %6692 = vpow2.f32 %v2591_v35  ;;  %v2607_v59 = vmul.f32 1.442695, %v2550_v39 }
 0x6e3   : > { %v8528_v20 = vpop.eup %6670  ;;  %6694 = vpow2.f32 %v2617_v62 }
 0x6e4   : > { %v2624_v36 = vadd.f32 %v8507_v16, %v2623_v17  ;;  %v8537_v50 = vpop.eup %6672  ;;  %v2615_v17 = vmul.f32 1.442695, %v2554_v57  ;;  %6696 = vpow2.f32 %v2593_v13 }
 0x6e5   : > { %v8544_v15 = vpop.eup %6674 }
 0x6e6   : > { %v2625_v44 = vadd.f32 %v8514_v6, %v2624_v36  ;;  %v8551_v34 = vpop.eup %6676  ;;  %v2595_v36 = vmul.f32 1.442695, %v2544_v28  ;;  %6698 = vpow2.f32 %v2615_v17 }
 0x6e7   : > { %v6679_v2 = vpop.eup %6678 }
 0x6e8   : > { %v2626_v58 = vadd.f32 %v8521_v3, %v2625_v44  ;;  %v2547_v44 = vsub.f32 %v8393_v41, %v8455_v1  ;;  %v6681_v11 = vpop.eup %6680  ;;  %6700 = vpow2.f32 %v2595_v36 }
 0x6e9   : > { %6702 = vpow2.f32 %v2613_v31  ;;  %v6683_v57 = vpop.eup %6682 }
 0x6ea   : > { %v2627_v52 = vadd.f32 %v8528_v20, %v2626_v58  ;;  %v2599_v58 = vmul.f32 1.442695, %v2546_v46  ;;  %6704 = vpow2.f32 %v2597_v18  ;;  %v2601_v51 = vmul.f32 1.442695, %v2547_v44  ;;  %v6685_v35 = vpop.eup %6684 }
 0x6eb   : > { %6706 = vpow2.f32 %v2611_v27 }
 0x6ec   : > { %v2628_v49 = vadd.f32 %v8537_v50, %v2627_v52  ;;  %v8568_v52 = vpop.trf.xlu1  ;;  %6708 = vpow2.f32 %v2599_v58 }
 0x6ed   : > { %10184 = vst [vmem:[#allocation34_spill] sm:$0xff] %v8568_v52  ;;  %6710 = vpow2.f32 %v2609_v21 }
 0x6ee   : > { %v2629_v61 = vadd.f32 %v8544_v15, %v2628_v49  ;;  %v6687_v49 = vpop.eup %6686  ;;  %6712 = vpow2.f32 %v2601_v51 }
 0x6ef   : > { %v8570_v48 = vpop.eup %6688  ;;  %6714 = vpow2.f32 %v2607_v59 }
 0x6f0   : > { %v2630_v33 = vadd.f32 %v8551_v34, %v2629_v61  ;;  %v8572_v26 = vpop.eup %6690  ;;  %v8574_v13 = vpop.trf.xlu1  ;;  %6716 = vpow2.f32 %v2603_v24 }
 0x6f1   : > { %10185 = vst [vmem:[#allocation36_spill] sm:$0xff] %v8574_v13  ;;  %v8576_v47 = vpop.eup %6692  ;;  %6718 = vpow2.f32 %v2605_v60  ;;  %5698 = vmatprep.subr.mxu1 %v8572_v26 }
 0x6f2   : > { %v2631_v29 = vadd.f32 %v6679_v2, %v2630_v33  ;;  %v6695_v61 = vpop.eup %6694  ;;  %5699 = vmatpush3.msra.mxu1 %v6687_v49 }
 0x6f3   : > { %v6697_v46 = vpop.eup %6696  ;;  %5700 = vmatprep.subr.mxu1 %v6695_v61 }
 0x6f4   : > { %v2632_v41 = vadd.f32 %v6681_v11, %v2631_v29  ;;  %v6699_v38 = vpop.eup %6698  ;;  %5701 = vmatpush3.msra.mxu1 %v6685_v35  ;;  %v8581_v18 = vpop.trf.xlu1 }
 0x6f5   : > { %v6701_v31 = vpop.eup %6700  ;;  %5702 = vmatprep.subr.mxu1 %v6699_v38  ;;  %10186 = vst [vmem:[#allocation38_spill] sm:$0xff] %v8581_v18 }
 0x6f6   : > { %v2633_v28 = vadd.f32 %v6683_v57, %v2632_v41  ;;  %v6703_v44 = vpop.eup %6702  ;;  %5703 = vmatpush3.msra.mxu1 %v6683_v57 }
 0x6f7   : > { %v6705_v39 = vpop.eup %6704  ;;  %5704 = vmatprep.subr.mxu1 %v6703_v44 }
 0x6f8   : > { %v2634_v62 = vadd.f32 %v6685_v35, %v2633_v28  ;;  %v6707_v29 = vpop.eup %6706  ;;  %5705 = vmatpush3.msra.mxu1 %v6681_v11  ;;  %v8583_v59 = vpop.trf.xlu1 }
 0x6f9   : > { %v6709_v7 = vpop.eup %6708  ;;  %5706 = vmatprep.subr.mxu1 %v6707_v29  ;;  %10187 = vst [vmem:[#allocation40_spill] sm:$0xff] %v8583_v59 }
 0x6fa   : > { %v2635_v1 = vadd.f32 %v6687_v49, %v2634_v62  ;;  %v6711_v5 = vpop.eup %6710  ;;  %5707 = vmatpush3.msra.mxu1 %v6679_v2 }
 0x6fb   : > { %v6713_v21 = vpop.eup %6712  ;;  %5708 = vmatprep.subr.mxu1 %v6711_v5 }
 0x6fc   : > { %v2636_v17 = vadd.f32 %v8570_v48, %v2635_v1  ;;  %v6715_v51 = vpop.eup %6714  ;;  %5709 = vmatpush3.msra.mxu1 %v8551_v34  ;;  %v8588_v2 = vpop.trf.xlu1 }
 0x6fd   : > { %v6717_v28 = vpop.eup %6716  ;;  %5710 = vmatprep.subr.mxu1 %v6715_v51  ;;  %10188 = vst [vmem:[#allocation41_spill] sm:$0xff] %v8588_v2 }
 0x6fe   : > { %v2637_v36 = vadd.f32 %v8576_v47, %v2636_v17  ;;  %v6719_v35 = vpop.eup %6718  ;;  %5711 = vmatpush3.msra.mxu1 %v8544_v15 }
 0x6ff   : > { %5712 = vmatprep.subr.mxu1 %v6719_v35 }
 0x700   : > { %v2638_v33 = vadd.f32 %v6697_v46, %v2637_v36  ;;  %5713 = vmatpush3.msra.mxu1 %v8537_v50  ;;  %v8593_v15 = vpop.trf.xlu1 }
 0x701   : > { %5714 = vmatprep.subr.mxu1 %v6717_v28  ;;  %10189 = vst [vmem:[#allocation43_spill] sm:$0xff] %v8593_v15 }
 0x702   : > { %v2639_v27 = vadd.f32 %v6701_v31, %v2638_v33  ;;  %5715 = vmatpush3.msra.mxu1 %v8528_v20  ;;  %v10190_v20 = vld [vmem:[#allocation9_spill] sm:$0xff] }
 0x703   : > { %5716 = vmatprep.subr.mxu1 %v6713_v21  ;;  %v431_v49 = vadd.f32 %v10190_v20, %v8383_v42 }
 0x704   : > { %v2640_v58 = vadd.f32 %v6705_v39, %v2639_v27  ;;  %5717 = vmatpush3.msra.mxu1 %v8521_v3 }
 0x705   : > { %5718 = vmatprep.subr.mxu1 %v6709_v7  ;;  %v2739_v17 = vmul.f32 0.35355338, %v431_v49 }
 0x706   : > { %v2641_v41 = vadd.f32 %v6709_v7, %v2640_v58  ;;  %5719 = vmatpush3.msra.mxu1 %v8514_v6  ;;  %v8601_v6 = vpop.trf.xlu1 }
 0x707   : > { %5720 = vmatprep.subr.mxu1 %v6705_v39  ;;  %10191 = vst [vmem:[#allocation45_spill] sm:$0xff] %v8601_v6 }
 0x708   : > { %v2642_v57 = vadd.f32 %v6713_v21, %v2641_v41  ;;  %5721 = vmatpush3.msra.mxu1 %v8507_v16 }
 0x709   : > { %5722 = vmatprep.subr.mxu1 %v6701_v31 }
 0x70a   : > { %v2643_v11 = vadd.f32 %v6717_v28, %v2642_v57  ;;  %5723 = vmatpush3.msra.mxu1 %v8502_v9 }
 0x70b   : > { %5724 = vmatprep.subr.mxu1 %v6697_v46 }
 0x70c   : > { %v2644_v24 = vadd.f32 %v6719_v35, %v2643_v11  ;;  %5725 = vmatpush3.msra.mxu1 %v8497_v19  ;;  %v8610_v19 = vpop.trf.xlu1 }
 0x70d   : > { %5726 = vmatprep.subr.mxu1 %v8576_v47  ;;  %10192 = vst [vmem:[#allocation46_spill] sm:$0xff] %v8610_v19 }
 0x70e   : > { %v2645_v60 = vadd.f32 %v6715_v51, %v2644_v24  ;;  %5727 = vmatpush3.msra.mxu1 %v8489_v25 }
 0x70f   : > { %5728 = vmatprep.subr.mxu1 %v8570_v48 }
 0x710   : > { %v2646_v34 = vadd.f32 %v6711_v5, %v2645_v60  ;;  %5729 = vmatpush3.msra.mxu1 %v8485_v63  ;;  %v8618_v25 = vpop.trf.xlu1 }
 0x711   : > { %2723 = vmatmul.mubr.f32.vlgmr.msra.gmra.mxu1 %v8266_v23  ;;  %6205 = vmatprep.subr.mxu1 %v2739_v17  ;;  %10193 = vst [vmem:[#allocation48_spill] sm:$0xff] %v8618_v25 }
 0x712   : > { %v2647_v62 = vadd.f32 %v6707_v29, %v2646_v34  ;;  %6206 = vmatpush3.msra.mxu1 %v2739_v17  ;;  %6207 = vmatprep.mubr.msk.f32.mxu1 %vm583_vm1, %v8389_v4 }
 0x714   : > { %v2648_v50 = vadd.f32 %v6703_v44, %v2647_v62  ;;  %v8626_v23 = vpop.trf.xlu1 }
 0x715   : > { %6208 = vmatmul.mubr.msk.f32.vlgmr.msra.gmra.mxu1 %vm583_vm1, %v8399_v54  ;;  %10194 = vst [vmem:[#allocation50_spill] sm:$0xff] %v8626_v23 }
 0x716   : > { %v2649_v1 = vadd.f32 %v6699_v38, %v2648_v50  ;;  %6210 = vmatprep.mubr.msk.f32.mxu1 %vm583_vm1, %v8422_v22 }
 0x718   : > { %v2650_v3 = vadd.f32 %v6695_v61, %v2649_v1  ;;  %v8634_v63 = vpop.trf.xlu1 }
 0x719   : > { %6211 = vmatmul.mubr.msk.f32.gmra.mxu1 %vm583_vm1, %v8442_v12  ;;  %10195 = vst [vmem:[#allocation51_spill] sm:$0xff] %v8634_v63 }
 0x71a   : > { %v2651_v16 = vadd.f32 %v8572_v26, %v2650_v3  ;;  %6213 = vmatprep.mubr.msk.f32.mxu1 %vm583_vm1, %v8449_v10 }
 0x71c   : > { %v8642_v9 = vpop.trf.xlu1  ;;  %v2652_v38 = vrot.slane %v2651_v16, 4 }
 0x71d   : > { %6214 = vmatmul.mubr.msk.f32.gmra.mxu1 %vm583_vm1, %v8451_v55  ;;  %10196 = vst [vmem:[#allocation53_spill] sm:$0xff] %v8642_v9 }
 0x71e   : > { %6216 = vmatprep.mubr.msk.f32.mxu1 %vm583_vm1, %v8453_v30  ;;  %v2653_v31 = vadd.f32 %v2652_v38, %v2651_v16 }
 0x720   : > { %v8650_v48 = vpop.trf.xlu1  ;;  %v2654_v33 = vrot.slane %v2653_v31, 2 }
 0x721   : > { %6217 = vmatmul.mubr.msk.f32.gmra.mxu1 %vm583_vm1, %v8463_v37  ;;  %10197 = vst [vmem:[#allocation55_spill] sm:$0xff] %v8650_v48 }
 0x722   : > { %6219 = vmatprep.mubr.msk.f32.mxu1 %vm583_vm1, %v8471_v32  ;;  %v2655_v44 = vadd.f32 %v2654_v33, %v2653_v31 }
 0x724   : > { %v8658_v26 = vpop.trf.xlu1  ;;  %v2656_v39 = vrot.slane %v2655_v44, 1 }
 0x725   : > { %6220 = vmatmul.mubr.msk.f32.gmra.mxu1 %vm583_vm1, %v8479_v53  ;;  %10198 = vst [vmem:[#allocation56_spill] sm:$0xff] %v8658_v26 }
 0x726   : > { %6222 = vmatprep.mubr.msk.f32.mxu1 %vm583_vm1, %v8491_v0  ;;  %v2657_v27 = vadd.f32 %v2656_v39, %v2655_v44 }
 0x728   : > { %v8666_v47 = vpop.trf.xlu1  ;;  %6720 = vrcp.f32 %v2657_v27 }
 0x729   : > { %6223 = vmatmul.mubr.msk.f32.gmra.mxu1 %vm583_vm1, %v8509_v43  ;;  %10199 = vst [vmem:[#allocation58_spill] sm:$0xff] %v8666_v47 }
 0x72a   : > { %6225 = vmatprep.mubr.msk.f32.mxu1 %vm583_vm1, %v8530_v40 }
 0x72c   : > { %v8674_v61 = vpop.trf.xlu1 }
 0x72d   : > { %6226 = vmatmul.mubr.msk.f32.gmra.mxu1 %vm583_vm1, %v8553_v45  ;;  %10200 = vst [vmem:[#allocation69_spill] sm:$0xff] %v8674_v61 }
 0x72e   : > { %6228 = vmatprep.mubr.msk.f32.mxu1 %vm583_vm1, %v8568_v52 }
 0x730   : > { %v8682_v46 = vpop.trf.xlu1 }
 0x731   : > { %6229 = vmatmul.mubr.msk.f32.gmra.mxu1 %vm583_vm1, %v8574_v13  ;;  %10201 = vst [vmem:[#allocation60_spill] sm:$0xff] %v8682_v46 }
 0x732   : > { %6231 = vmatprep.mubr.msk.f32.mxu1 %vm583_vm1, %v8581_v18 }
 0x734   : > { %v8690_v36 = vpop.trf.xlu1 }
 0x735   : > { %6232 = vmatmul.mubr.msk.f32.gmra.mxu1 %vm583_vm1, %v8583_v59  ;;  %10202 = vst [vmem:[#allocation13_spill] sm:$0xff] %v8690_v36  ;;  %v6721_v29 = vpop.eup %6720 }
 0x736   : > { %6234 = vmatprep.mubr.msk.f32.mxu1 %vm583_vm1, %v8588_v2  ;;  %v2729_v7 = vmul.f32 %v6721_v29, %v2657_v27 }
 0x738   : > { %v2730_v58 = vsub.f32 2.0, %v2729_v7 }
 0x739   : > { %6235 = vmatmul.mubr.msk.f32.gmra.mxu1 %vm583_vm1, %v8593_v15 }
 0x73a   : > { %6237 = vmatprep.mubr.msk.f32.mxu1 %vm583_vm1, %v8601_v6  ;;  %v2731_v51 = vmul.f32 %v6721_v29, %v2730_v58 }
 0x73d   : > { %6238 = vmatmul.mubr.msk.f32.gmra.mxu1 %vm583_vm1, %v8610_v19 }
 0x73e   : > { %6240 = vmatprep.mubr.msk.f32.mxu1 %vm583_vm1, %v8618_v25 }
 0x741   : > { %6241 = vmatmul.mubr.msk.f32.gmra.mxu1 %vm583_vm1, %v8626_v23 }
 0x742   : > { %6243 = vmatprep.mubr.msk.f32.mxu1 %vm583_vm1, %v8634_v63 }
 0x745   : > { %6244 = vmatmul.mubr.msk.f32.gmra.mxu1 %vm583_vm1, %v8642_v9 }
 0x746   : > { %6246 = vmatprep.mubr.msk.f32.mxu1 %vm583_vm1, %v8650_v48 }
 0x749   : > { %6247 = vmatmul.mubr.msk.f32.gmra.mxu1 %vm583_vm1, %v8658_v26 }
 0x74a   : > { %6249 = vmatprep.mubr.msk.f32.mxu1 %vm583_vm1, %v8666_v47 }
 0x74d   : > { %6250 = vmatmul.mubr.msk.f32.gmra.mxu1 %vm583_vm1, %v8674_v61 }
 0x74e   : > { %6252 = vmatprep.mubr.msk.f32.mxu1 %vm583_vm1, %v8682_v46 }
 0x751   : > { %6253 = vmatmul.mubr.msk.f32.gmra.mxu1 %vm583_vm1, %v8690_v36 }
 0x752   : > { %3832 = vmatprep.mubr.f32.mxu1 %v8336_v14 }
 0x7d1   : > { %v5730_v5 = vpop.f32.mrf.mxu1 }
 0x7d3   : > { %v5731_v21 = vpop.f32.mrf.mxu1 }
 0x7d4   : > { %v5732_v41 = vadd.f32 %v5731_v21, %v5730_v5 }
 0x7d5   : > { %v8695_v28 = vpop.f32.mrf.mxu1 }
 0x7d6   : > { %v8697_v57 = vmul.f32 %v5732_v41, %v2731_v51 }
 0x7d7   : > { %v8699_v35 = vpop.f32.mrf.mxu1 }
 0x7d8   : > { %10203 = vst [vmem:[#allocation7_spill] sm:$0xff] %v8697_v57 }
 0x7d9   : > { %v8701_v14 = vpop.f32.mrf.mxu1 }
 0x7db   : > { %v8703_v11 = vpop.f32.mrf.mxu1 }
 0x7dd   : > { %v8705_v24 = vpop.f32.mrf.mxu1 }
 0x7de   : > { %v3126_v51 = vmax.f32 %v8695_v28, %v8705_v24 }
 0x7df   : > { %v8707_v60 = vpop.f32.mrf.mxu1 }
 0x7e0   : > { %v3125_v21 = vmax.f32 %v8699_v35, %v8707_v60 }
 0x7e1   : > { %v8709_v34 = vpop.f32.mrf.mxu1 }
 0x7e2   : > { %v3128_v8 = vmax.f32 %v8701_v14, %v8709_v34 }
 0x7e3   : > { %v8711_v62 = vpop.f32.mrf.mxu1 }
 0x7e4   : > { %v3127_v57 = vmax.f32 %v8703_v11, %v8711_v62 }
 0x7e5   : > { %v8713_v50 = vpop.f32.mrf.mxu1 }
 0x7e6   : > { %v3130_v61 = vmax.f32 %v3126_v51, %v8713_v50 }
 0x7e7   : > { %v8715_v20 = vpop.f32.mrf.mxu1 }
 0x7e8   : > { %v3129_v36 = vmax.f32 %v3125_v21, %v8715_v20 }
 0x7e9   : > { %v8717_v49 = vpop.f32.mrf.mxu1 }
 0x7ea   : > { %v3132_v47 = vmax.f32 %v3128_v8, %v8717_v49 }
 0x7eb   : > { %v8719_v1 = vpop.f32.mrf.mxu1 }
 0x7ec   : > { %v3131_v26 = vmax.f32 %v3127_v57, %v8719_v1 }
 0x7ed   : > { %v8721_v3 = vpop.f32.mrf.mxu1 }
 0x7ee   : > { %v3134_v63 = vmax.f32 %v3130_v61, %v8721_v3 }
 0x7ef   : > { %v8723_v17 = vpop.f32.mrf.mxu1 }
 0x7f0   : > { %v3133_v48 = vmax.f32 %v3129_v36, %v8723_v17 }
 0x7f1   : > { %v8725_v16 = vpop.f32.mrf.mxu1 }
 0x7f2   : > { %v3136_v23 = vmax.f32 %v3132_v47, %v8725_v16 }
 0x7f3   : > { %v8727_v38 = vpop.f32.mrf.mxu1 }
 0x7f4   : > { %v3135_v25 = vmax.f32 %v3131_v26, %v8727_v38 }
 0x7f5   : > { %v8729_v31 = vpop.f32.mrf.mxu1 }
 0x7f6   : > { %v3138_v51 = vmax.f32 %v3134_v63, %v8729_v31 }
 0x7f7   : > { %v8731_v33 = vpop.f32.mrf.mxu1 }
 0x7f8   : > { %v3137_v21 = vmax.f32 %v3133_v48, %v8731_v33 }
 0x7f9   : > { %v8733_v44 = vpop.f32.mrf.mxu1 }
 0x7fa   : > { %v3140_v8 = vmax.f32 %v3136_v23, %v8733_v44 }
 0x7fb   : > { %v8735_v39 = vpop.f32.mrf.mxu1 }
 0x7fc   : > { %v3139_v57 = vmax.f32 %v3135_v25, %v8735_v39 }
 0x7fd   : > { %v8737_v27 = vpop.f32.mrf.mxu1 }
 0x7fe   : > { %v3142_v61 = vmax.f32 %v3138_v51, %v8737_v27 }
 0x7ff   : > { %v8739_v29 = vpop.f32.mrf.mxu1 }
 0x800   : > { %v3141_v36 = vmax.f32 %v3137_v21, %v8739_v29 }
 0x801   : > { %v8741_v7 = vpop.f32.mrf.mxu1 }
 0x802   : > { %v3144_v47 = vmax.f32 %v3140_v8, %v8741_v7 }
 0x803   : > { %v8743_v58 = vpop.f32.mrf.mxu1 }
 0x804   : > { %v3143_v26 = vmax.f32 %v3139_v57, %v8743_v58 }
 0x805   : > { %v8745_v5 = vpop.f32.mrf.mxu1 }
 0x806   : > { %v3146_v63 = vmax.f32 %v3142_v61, %v8745_v5 }
 0x807   : > { %v8749_v41 = vpop.f32.mrf.mxu1 }
 0x808   : > { %v3145_v48 = vmax.f32 %v3141_v36, %v8749_v41 }
 0x809   : > { %v8758_v46 = vpop.f32.mrf.mxu1 }
 0x80a   : > { %v3148_v23 = vmax.f32 %v3144_v47, %v8758_v46 }
 0x80b   : > { %v8764_v9 = vpop.f32.mrf.mxu1 }
 0x80c   : > { %v3147_v25 = vmax.f32 %v3143_v26, %v8764_v9 }
 0x80d   : > { %v8770_v19 = vpop.f32.mrf.mxu1 }
 0x80e   : > { %v3150_v51 = vmax.f32 %v3146_v63, %v8770_v19 }
 0x80f   : > { %v8776_v6 = vpop.f32.mrf.mxu1 }
 0x810   : > { %v3149_v21 = vmax.f32 %v3145_v48, %v8776_v6 }
 0x811   : > { %v8782_v15 = vpop.f32.mrf.mxu1 }
 0x812   : > { %v3152_v8 = vmax.f32 %v3148_v23, %v8782_v15  ;;  %v3153_v59 = vmax.f32 %v3149_v21, %v3150_v51 }
 0x813   : > { %v8788_v2 = vpop.f32.mrf.mxu1 }
 0x814   : > { %v3151_v57 = vmax.f32 %v3147_v25, %v8788_v2 }
 0x816   : > { %v3154_v36 = vmax.f32 %v3151_v57, %v3152_v8 }
 0x818   : > { %v3155_v18 = vmax.f32 %v3153_v59, %v3154_v36 }
 0x81a   : > { %v3156_v13 = vrot.slane %v3155_v18, 4 }
 0x81c   : > { %v3157_v52 = vmax.f32 %v3155_v18, %v3156_v13 }
 0x81e   : > { %v3158_v61 = vrot.slane %v3157_v52, 2 }
 0x820   : > { %v3159_v45 = vmax.f32 %v3157_v52, %v3158_v61 }
 0x822   : > { %v3160_v47 = vrot.slane %v3159_v45, 1 }
 0x824   : > { %v8793_v40 = vmax.f32 %v3159_v45, %v3160_v47 }
 0x826   : > { %v3162_v26 = vsub.f32 %v8699_v35, %v8793_v40  ;;  %v3163_v48 = vsub.f32 %v8695_v28, %v8793_v40  ;;  %v3164_v63 = vsub.f32 %v8703_v11, %v8793_v40  ;;  %v3165_v23 = vsub.f32 %v8701_v14, %v8793_v40 }
 0x827   : > { %v3166_v13 = vsub.f32 %v8707_v60, %v8793_v40  ;;  %v3167_v45 = vsub.f32 %v8705_v24, %v8793_v40  ;;  %v3168_v28 = vsub.f32 %v8711_v62, %v8793_v40  ;;  %v3169_v14 = vsub.f32 %v8709_v34, %v8793_v40 }
 0x828   : > { %v3194_v59 = vmul.f32 1.442695, %v3162_v26  ;;  %v3196_v52 = vmul.f32 1.442695, %v3163_v48  ;;  %v3198_v18 = vmul.f32 1.442695, %v3164_v63  ;;  %v3170_v60 = vsub.f32 %v8715_v20, %v8793_v40 }
 0x829   : > { %v3200_v35 = vmul.f32 1.442695, %v3165_v23  ;;  %v3202_v11 = vmul.f32 1.442695, %v3166_v13  ;;  %v3204_v25 = vmul.f32 1.442695, %v3167_v45  ;;  %v3171_v24 = vsub.f32 %v8713_v50, %v8793_v40 }
 0x82a   : > { %6722 = vpow2.f32 %v3194_v59  ;;  %v3206_v21 = vmul.f32 1.442695, %v3168_v28  ;;  %v3208_v51 = vmul.f32 1.442695, %v3169_v14  ;;  %v3172_v62 = vsub.f32 %v8719_v1, %v8793_v40 }
 0x82b   : > { %6724 = vpow2.f32 %v3196_v52  ;;  %v3210_v8 = vmul.f32 1.442695, %v3170_v60  ;;  %v3173_v34 = vsub.f32 %v8717_v49, %v8793_v40  ;;  %v3212_v36 = vmul.f32 1.442695, %v3171_v24 }
 0x82c   : > { %6726 = vpow2.f32 %v3198_v18  ;;  %v3174_v61 = vsub.f32 %v8723_v17, %v8793_v40  ;;  %v3214_v50 = vmul.f32 1.442695, %v3172_v62  ;;  %v3175_v26 = vsub.f32 %v8721_v3, %v8793_v40 }
 0x82d   : > { %6728 = vpow2.f32 %v3200_v35  ;;  %v3216_v48 = vmul.f32 1.442695, %v3173_v34  ;;  %v3176_v23 = vsub.f32 %v8727_v38, %v8793_v40  ;;  %v3177_v52 = vsub.f32 %v8725_v16, %v8793_v40 }
 0x82e   : > { %6730 = vpow2.f32 %v3202_v11  ;;  %v3218_v17 = vmul.f32 1.442695, %v3174_v61  ;;  %v3220_v3 = vmul.f32 1.442695, %v3175_v26  ;;  %v3178_v35 = vsub.f32 %v8731_v33, %v8793_v40 }
 0x82f   : > { %6732 = vpow2.f32 %v3204_v25  ;;  %v3222_v38 = vmul.f32 1.442695, %v3176_v23  ;;  %v3193_v11 = vsub.f32 %v8782_v15, %v8793_v40  ;;  %v3179_v16 = vsub.f32 %v8729_v31, %v8793_v40 }
 0x830   : > { %6734 = vpow2.f32 %v3206_v21  ;;  %v3192_v25 = vsub.f32 %v8788_v2, %v8793_v40  ;;  %v3224_v60 = vmul.f32 1.442695, %v3177_v52  ;;  %v3180_v24 = vsub.f32 %v8735_v39, %v8793_v40 }
 0x831   : > { %6736 = vpow2.f32 %v3208_v51  ;;  %v3226_v51 = vmul.f32 1.442695, %v3178_v35  ;;  %v3191_v15 = vsub.f32 %v8770_v19, %v8793_v40  ;;  %v3256_v31 = vmul.f32 1.442695, %v3193_v11 }
 0x832   : > { %6738 = vpow2.f32 %v3210_v8  ;;  %v3181_v2 = vsub.f32 %v8733_v44, %v8793_v40  ;;  %v3228_v34 = vmul.f32 1.442695, %v3179_v16  ;;  %v3254_v61 = vmul.f32 1.442695, %v3192_v25 }
 0x833   : > { %6740 = vpow2.f32 %v3212_v36  ;;  %v3190_v36 = vsub.f32 %v8776_v6, %v8793_v40  ;;  %v3182_v19 = vsub.f32 %v8739_v29, %v8793_v40  ;;  %v3189_v26 = vsub.f32 %v8758_v46, %v8793_v40 }
 0x834   : > { %6742 = vpow2.f32 %v3214_v50  ;;  %v3183_v6 = vsub.f32 %v8737_v27, %v8793_v40  ;;  %v3232_v23 = vmul.f32 1.442695, %v3181_v2  ;;  %v3184_v46 = vsub.f32 %v8743_v58, %v8793_v40 }
 0x835   : > { %6744 = vpow2.f32 %v3216_v48  ;;  %v3252_v48 = vmul.f32 1.442695, %v3191_v15  ;;  %v3250_v29 = vmul.f32 1.442695, %v3190_v36  ;;  %v3248_v35 = vmul.f32 1.442695, %v3189_v26 }
 0x836   : > { %6746 = vpow2.f32 %v3218_v17  ;;  %v3188_v17 = vsub.f32 %v8764_v9, %v8793_v40  ;;  %v3185_v9 = vsub.f32 %v8741_v7, %v8793_v40  ;;  %v3186_v11 = vsub.f32 %v8749_v41, %v8793_v40 }
 0x837   : > { %v8817_v57 = vpop.eup %6722  ;;  %6748 = vpow2.f32 %v3220_v3  ;;  %v3234_v3 = vmul.f32 1.442695, %v3182_v19 }
 0x838   : > { %v8821_v20 = vpop.eup %6724  ;;  %6750 = vpow2.f32 %v3222_v38  ;;  %v3246_v16 = vmul.f32 1.442695, %v3188_v17  ;;  %v3242_v15 = vmul.f32 1.442695, %v3186_v11 }
 0x839   : > { %v3258_v47 = vadd.f32 %v8821_v20, %v8817_v57  ;;  %v8827_v1 = vpop.eup %6726  ;;  %6752 = vpow2.f32 %v3224_v60  ;;  %v3238_v60 = vmul.f32 1.442695, %v3184_v46 }
 0x83a   : > { %v8832_v63 = vpop.eup %6728  ;;  %6754 = vpow2.f32 %v3226_v51  ;;  %v3240_v51 = vmul.f32 1.442695, %v3185_v9 }
 0x83b   : > { %v3259_v49 = vadd.f32 %v8827_v1, %v3258_v47  ;;  %v8837_v13 = vpop.eup %6730  ;;  %v3230_v47 = vmul.f32 1.442695, %v3180_v24  ;;  %6756 = vpow2.f32 %v3256_v31 }
 0x83c   : > { %v8842_v45 = vpop.eup %6732  ;;  %6758 = vpow2.f32 %v3228_v34 }
 0x83d   : > { %v3260_v59 = vadd.f32 %v8832_v63, %v3259_v49  ;;  %v8849_v14 = vpop.eup %6734  ;;  %6760 = vpow2.f32 %v3254_v61 }
 0x83e   : > { %v8856_v33 = vpop.eup %6736  ;;  %6762 = vpow2.f32 %v3230_v47 }
 0x83f   : > { %v3261_v18 = vadd.f32 %v8837_v13, %v3260_v59  ;;  %v8863_v8 = vpop.eup %6738  ;;  %6764 = vpow2.f32 %v3252_v48 }
 0x840   : > { %v8870_v50 = vpop.eup %6740  ;;  %6766 = vpow2.f32 %v3232_v23 }
 0x841   : > { %v3262_v28 = vadd.f32 %v8842_v45, %v3261_v18  ;;  %v8877_v49 = vpop.eup %6742  ;;  %v3187_v18 = vsub.f32 %v8745_v5, %v8793_v40  ;;  %6768 = vpow2.f32 %v3250_v29 }
 0x842   : > { %v6745_v52 = vpop.eup %6744  ;;  %6770 = vpow2.f32 %v3234_v3 }
 0x843   : > { %v3263_v21 = vadd.f32 %v8849_v14, %v3262_v28  ;;  %v6747_v38 = vpop.eup %6746  ;;  %v3236_v28 = vmul.f32 1.442695, %v3183_v6  ;;  %6772 = vpow2.f32 %v3248_v35 }
 0x844   : > { %v6749_v25 = vpop.eup %6748 }
 0x845   : > { %v3264_v62 = vadd.f32 %v8856_v33, %v3263_v21  ;;  %v3244_v21 = vmul.f32 1.442695, %v3187_v18  ;;  %v6751_v24 = vpop.eup %6750  ;;  %6774 = vpow2.f32 %v3236_v28 }
 0x846   : > { %6776 = vpow2.f32 %v3246_v16 }
 0x847   : > { %v3265_v39 = vadd.f32 %v8863_v8, %v3264_v62  ;;  %v6753_v62 = vpop.eup %6752  ;;  %6778 = vpow2.f32 %v3238_v60  ;;  %v10223_v60 = vld [vmem:[#allocation69_spill] sm:$0xff] }
 0x848   : > { %v8892_v31 = vpop.eup %6754  ;;  %6780 = vpow2.f32 %v3244_v21  ;;  %v10224_v21 = vld [vmem:[#allocation60_spill] sm:$0xff] }
 0x849   : > { %v3266_v44 = vadd.f32 %v8870_v50, %v3265_v39  ;;  %v8894_v41 = vpop.eup %6756  ;;  %6782 = vpow2.f32 %v3240_v51  ;;  %v10226_v51 = vld [vmem:[#allocation13_spill] sm:$0xff] }
 0x84a   : > { %v6759_v2 = vpop.eup %6758  ;;  %6784 = vpow2.f32 %v3242_v15  ;;  %5766 = vmatprep.subr.mxu0 %v8894_v41 }
 0x84b   : > { %v3267_v59 = vadd.f32 %v8877_v49, %v3266_v44  ;;  %v6761_v36 = vpop.eup %6760  ;;  %5767 = vmatpush3.msra.mxu0 %v6753_v62 }
 0x84c   : > { %v6763_v61 = vpop.eup %6762  ;;  %5768 = vmatprep.subr.mxu0 %v6761_v36 }
 0x84d   : > { %v3268_v27 = vadd.f32 %v6745_v52, %v3267_v59  ;;  %v6765_v19 = vpop.eup %6764  ;;  %5769 = vmatpush3.msra.mxu0 %v6751_v24 }
 0x84e   : > { %v6767_v47 = vpop.eup %6766  ;;  %5770 = vmatprep.subr.mxu0 %v6765_v19 }
 0x84f   : > { %v3269_v58 = vadd.f32 %v6747_v38, %v3268_v27  ;;  %v6769_v48 = vpop.eup %6768  ;;  %5771 = vmatpush3.msra.mxu0 %v6749_v25 }
 0x850   : > { %v6771_v44 = vpop.eup %6770  ;;  %5772 = vmatprep.subr.mxu0 %v6769_v48 }
 0x851   : > { %v3270_v5 = vadd.f32 %v6749_v25, %v3269_v58  ;;  %v6773_v23 = vpop.eup %6772  ;;  %5773 = vmatpush3.msra.mxu0 %v6747_v38  ;;  %v10205_v58 = vld [vmem:[#allocation70_spill] sm:$0xff] }
 0x852   : > { %v6775_v17 = vpop.eup %6774  ;;  %5774 = vmatprep.subr.mxu0 %v6773_v23  ;;  %v8912_v25 = vadd.f32 %v10205_v58, %v10178_v56  ;;  %v10206_v56 = vld [vmem:[#allocation30_spill] sm:$0xff] }
 0x853   : > { %v3271_v7 = vadd.f32 %v6751_v24, %v3270_v5  ;;  %v6777_v59 = vpop.eup %6776  ;;  %5775 = vmatpush3.msra.mxu0 %v6745_v52  ;;  %v10225_v5 = vld [vmem:[#allocation73_spill] sm:$0xff] }
 0x854   : > { %v6779_v46 = vpop.eup %6778  ;;  %5776 = vmatprep.subr.mxu0 %v6777_v59 }
 0x855   : > { %v3272_v40 = vadd.f32 %v6753_v62, %v3271_v7  ;;  %v6781_v18 = vpop.eup %6780  ;;  %5777 = vmatpush3.msra.mxu0 %v8877_v49 }
 0x856   : > { %v6783_v35 = vpop.eup %6782  ;;  %5778 = vmatprep.subr.mxu0 %v6781_v18 }
 0x857   : > { %v3273_v34 = vadd.f32 %v8892_v31, %v3272_v40  ;;  %v6785_v9 = vpop.eup %6784  ;;  %5779 = vmatpush3.msra.mxu0 %v8870_v50 }
 0x858   : > { %5780 = vmatprep.subr.mxu0 %v6785_v9 }
 0x859   : > { %v3274_v39 = vadd.f32 %v6759_v2, %v3273_v34  ;;  %5781 = vmatpush3.msra.mxu0 %v8863_v8  ;;  %v10204_v8 = vld [vmem:[#allocation10_spill] sm:$0xff] }
 0x85a   : > { %5782 = vmatprep.subr.mxu0 %v6783_v35  ;;  %v433_v16 = vadd.f32 %v10204_v8, %v8383_v42  ;;  %v10207_v42 = vld [vmem:[#allocation32_spill] sm:$0xff] }
 0x85b   : > { %v3275_v26 = vadd.f32 %v6763_v61, %v3274_v39  ;;  %5783 = vmatpush3.msra.mxu0 %v8856_v33 }
 0x85c   : > { %5784 = vmatprep.subr.mxu0 %v6779_v46 }
 0x85d   : > { %v3276_v6 = vadd.f32 %v6767_v47, %v3275_v26  ;;  %5785 = vmatpush3.msra.mxu0 %v8849_v14 }
 0x85e   : > { %5786 = vmatprep.subr.mxu0 %v6775_v17 }
 0x85f   : > { %v3277_v29 = vadd.f32 %v6771_v44, %v3276_v6  ;;  %5787 = vmatpush3.msra.mxu0 %v8842_v45  ;;  %v3372_v45 = vmul.f32 0.35355338, %v433_v16  ;;  %v9031_v16 = vpop.permute.xlu0 %272 }
 0x860   : > { %5788 = vmatprep.subr.mxu0 %v6771_v44 }
 0x861   : > { %v3278_v3 = vadd.f32 %v6775_v17, %v3277_v29  ;;  %5789 = vmatpush3.msra.mxu0 %v8837_v13  ;;  %v8976_v13 = vpop.permute.xlu1 %312 }
 0x862   : > { %5790 = vmatprep.subr.mxu0 %v6767_v47  ;;  %v8984_v24 = vadd.f32 %v10225_v5, %v8976_v13 }
 0x863   : > { %v3279_v27 = vadd.f32 %v6779_v46, %v3278_v3  ;;  %5791 = vmatpush3.msra.mxu0 %v8832_v63 }
 0x864   : > { %5792 = vmatprep.subr.mxu0 %v6763_v61 }
 0x865   : > { %v3280_v28 = vadd.f32 %v6783_v35, %v3279_v27  ;;  %5793 = vmatpush3.msra.mxu0 %v8827_v1  ;;  %v10222_v1 = vld [vmem:[#allocation58_spill] sm:$0xff] }
 0x866   : > { %5794 = vmatprep.subr.mxu0 %v6759_v2 }
 0x867   : > { %v3281_v38 = vadd.f32 %v6785_v9, %v3280_v28  ;;  %5795 = vmatpush3.msra.mxu0 %v8821_v20  ;;  %v10221_v20 = vld [vmem:[#allocation56_spill] sm:$0xff] }
 0x868   : > { %5796 = vmatprep.subr.mxu0 %v8892_v31 }
 0x869   : > { %v3282_v52 = vadd.f32 %v6781_v18, %v3281_v38  ;;  %5797 = vmatpush3.msra.mxu0 %v8817_v57  ;;  %v10220_v57 = vld [vmem:[#allocation55_spill] sm:$0xff] }
 0x86a   : > { %3360 = vmatmul.mubr.f32.vlgmr.msra.gmra.mxu0 %v8912_v25  ;;  %6255 = vmatprep.subr.mxu0 %v3372_v45 }
 0x86b   : > { %v3283_v11 = vadd.f32 %v6777_v59, %v3282_v52  ;;  %6256 = vmatpush3.msra.mxu0 %v3372_v45  ;;  %6257 = vmatprep.mubr.msk.f32.mxu0 %vm583_vm1, %v8389_v4  ;;  %v10208_v4 = vld [vmem:[#allocation34_spill] sm:$0xff]  ;;  %v9037_v45 = vpop.trf.xlu0 }
 0x86d   : > { %v3284_v49 = vadd.f32 %v6773_v23, %v3283_v11 }
 0x86e   : > { %6258 = vmatmul.mubr.msk.f32.vlgmr.msra.gmra.mxu0 %vm583_vm1, %v8399_v54  ;;  %v10209_v54 = vld [vmem:[#allocation36_spill] sm:$0xff] }
 0x86f   : > { %v3285_v50 = vadd.f32 %v6769_v48, %v3284_v49  ;;  %6260 = vmatprep.mubr.msk.f32.mxu0 %vm583_vm1, %v8422_v22  ;;  %v10210_v22 = vld [vmem:[#allocation38_spill] sm:$0xff] }
 0x871   : > { %v3286_v33 = vadd.f32 %v6765_v19, %v3285_v50 }
 0x872   : > { %6261 = vmatmul.mubr.msk.f32.gmra.mxu0 %vm583_vm1, %v8442_v12  ;;  %v10211_v12 = vld [vmem:[#allocation40_spill] sm:$0xff] }
 0x873   : > { %v3287_v14 = vadd.f32 %v6761_v36, %v3286_v33  ;;  %6263 = vmatprep.mubr.msk.f32.mxu0 %vm583_vm1, %v8449_v10  ;;  %v10212_v10 = vld [vmem:[#allocation41_spill] sm:$0xff] }
 0x875   : > { %v3288_v63 = vadd.f32 %v8894_v41, %v3287_v14 }
 0x876   : > { %6264 = vmatmul.mubr.msk.f32.gmra.mxu0 %vm583_vm1, %v8451_v55  ;;  %v10213_v55 = vld [vmem:[#allocation43_spill] sm:$0xff] }
 0x877   : > { %6266 = vmatprep.mubr.msk.f32.mxu0 %vm583_vm1, %v8453_v30  ;;  %v10214_v30 = vld [vmem:[#allocation45_spill] sm:$0xff]  ;;  %v3289_v15 = vrot.slane %v3288_v63, 4 }
 0x879   : > { %v3290_v7 = vadd.f32 %v3289_v15, %v3288_v63 }
 0x87a   : > { %6267 = vmatmul.mubr.msk.f32.gmra.mxu0 %vm583_vm1, %v8463_v37  ;;  %v10215_v37 = vld [vmem:[#allocation46_spill] sm:$0xff] }
 0x87b   : > { %6269 = vmatprep.mubr.msk.f32.mxu0 %vm583_vm1, %v8471_v32  ;;  %v10216_v32 = vld [vmem:[#allocation48_spill] sm:$0xff]  ;;  %v3291_v62 = vrot.slane %v3290_v7, 2 }
 0x87d   : > { %v3292_v31 = vadd.f32 %v3291_v62, %v3290_v7 }
 0x87e   : > { %6270 = vmatmul.mubr.msk.f32.gmra.mxu0 %vm583_vm1, %v8479_v53  ;;  %v10217_v53 = vld [vmem:[#allocation50_spill] sm:$0xff] }
 0x87f   : > { %6272 = vmatprep.mubr.msk.f32.mxu0 %vm583_vm1, %v8491_v0  ;;  %v10218_v0 = vld [vmem:[#allocation51_spill] sm:$0xff]  ;;  %v3293_v40 = vrot.slane %v3292_v31, 1 }
 0x881   : > { %v3294_v41 = vadd.f32 %v3293_v40, %v3292_v31 }
 0x882   : > { %6273 = vmatmul.mubr.msk.f32.gmra.mxu0 %vm583_vm1, %v8509_v43  ;;  %v10219_v43 = vld [vmem:[#allocation53_spill] sm:$0xff] }
 0x883   : > { %6275 = vmatprep.mubr.msk.f32.mxu0 %vm583_vm1, %v10206_v56  ;;  %6786 = vrcp.f32 %v3294_v41 }
 0x886   : > { %6276 = vmatmul.mubr.msk.f32.gmra.mxu0 %vm583_vm1, %v10207_v42 }
 0x887   : > { %6278 = vmatprep.mubr.msk.f32.mxu0 %vm583_vm1, %v10208_v4  ;;  %v9047_v4 = vpop.trf.xlu0 }
 0x88a   : > { %6279 = vmatmul.mubr.msk.f32.gmra.mxu0 %vm583_vm1, %v10209_v54 }
 0x88b   : > { %6281 = vmatprep.mubr.msk.f32.mxu0 %vm583_vm1, %v10210_v22 }
 0x88e   : > { %6282 = vmatmul.mubr.msk.f32.gmra.mxu0 %vm583_vm1, %v10211_v12 }
 0x88f   : > { %6284 = vmatprep.mubr.msk.f32.mxu0 %vm583_vm1, %v10212_v10 }
 0x890   : > { %v6787_v2 = vpop.eup %6786 }
 0x891   : > { %v3366_v34 = vmul.f32 %v6787_v2, %v3294_v41 }
 0x892   : > { %6285 = vmatmul.mubr.msk.f32.gmra.mxu0 %vm583_vm1, %v10213_v55 }
 0x893   : > { %6287 = vmatprep.mubr.msk.f32.mxu0 %vm583_vm1, %v10214_v30  ;;  %v3367_v36 = vsub.f32 2.0, %v3366_v34 }
 0x895   : > { %v3368_v47 = vmul.f32 %v6787_v2, %v3367_v36 }
 0x896   : > { %6288 = vmatmul.mubr.msk.f32.gmra.mxu0 %vm583_vm1, %v10215_v37 }
 0x897   : > { %6290 = vmatprep.mubr.msk.f32.mxu0 %vm583_vm1, %v10216_v32 }
 0x89a   : > { %6291 = vmatmul.mubr.msk.f32.gmra.mxu0 %vm583_vm1, %v10217_v53 }
 0x89b   : > { %6293 = vmatprep.mubr.msk.f32.mxu0 %vm583_vm1, %v10218_v0 }
 0x89e   : > { %6294 = vmatmul.mubr.msk.f32.gmra.mxu0 %vm583_vm1, %v10219_v43 }
 0x89f   : > { %6296 = vmatprep.mubr.msk.f32.mxu0 %vm583_vm1, %v10220_v57 }
 0x8a2   : > { %6297 = vmatmul.mubr.msk.f32.gmra.mxu0 %vm583_vm1, %v10221_v20 }
 0x8a3   : > { %6299 = vmatprep.mubr.msk.f32.mxu0 %vm583_vm1, %v10222_v1 }
 0x8a6   : > { %6300 = vmatmul.mubr.msk.f32.gmra.mxu0 %vm583_vm1, %v10223_v60 }
 0x8a7   : > { %6302 = vmatprep.mubr.msk.f32.mxu0 %vm583_vm1, %v10224_v21  ;;  %v9070_v21 = vpop.trf.xlu0 }
 0x8aa   : > { %6303 = vmatmul.mubr.msk.f32.gmra.mxu0 %vm583_vm1, %v10226_v51 }
 0x8ab   : > { %4469 = vmatprep.mubr.f32.mxu0 %v8984_v24 }
 0x92a   : > { %v5798_v61 = vpop.f32.mrf.mxu0 }
 0x92c   : > { %v5799_v39 = vpop.f32.mrf.mxu0 }
 0x92d   : > { %v5800_v19 = vadd.f32 %v5799_v39, %v5798_v61 }
 0x92e   : > { %v8989_v26 = vpop.f32.mrf.mxu0 }
 0x92f   : > { %v8991_v48 = vmul.f32 %v5800_v19, %v3368_v47 }
 0x930   : > { %v8993_v44 = vpop.f32.mrf.mxu0 }
 0x931   : > { %10227 = vst [vmem:[#allocation14_spill] sm:$0xff] %v8991_v48 }
 0x932   : > { %v8995_v6 = vpop.f32.mrf.mxu0 }
 0x934   : > { %v8997_v23 = vpop.f32.mrf.mxu0 }
 0x936   : > { %v8999_v17 = vpop.f32.mrf.mxu0 }
 0x937   : > { %v3599_v22 = vmax.f32 %v8989_v26, %v8999_v17 }
 0x938   : > { %v9001_v29 = vpop.f32.mrf.mxu0 }
 0x939   : > { %v3598_v42 = vmax.f32 %v8993_v44, %v9001_v29 }
 0x93a   : > { %v9003_v59 = vpop.f32.mrf.mxu0 }
 0x93b   : > { %v3601_v12 = vmax.f32 %v8995_v6, %v9003_v59 }
 0x93c   : > { %v9005_v46 = vpop.f32.mrf.mxu0 }
 0x93d   : > { %v3600_v10 = vmax.f32 %v8997_v23, %v9005_v46 }
 0x93e   : > { %v9007_v3 = vpop.f32.mrf.mxu0 }
 0x93f   : > { %v3603_v37 = vmax.f32 %v3599_v22, %v9007_v3 }
 0x940   : > { %v9009_v18 = vpop.f32.mrf.mxu0 }
 0x941   : > { %v3602_v55 = vmax.f32 %v3598_v42, %v9009_v18  ;;  %v9090_v42 = vpop.trf.xlu0 }
 0x942   : > { %v9011_v35 = vpop.f32.mrf.mxu0 }
 0x943   : > { %v3605_v32 = vmax.f32 %v3601_v12, %v9011_v35 }
 0x944   : > { %v9013_v27 = vpop.f32.mrf.mxu0 }
 0x945   : > { %v3604_v53 = vmax.f32 %v3600_v10, %v9013_v27 }
 0x946   : > { %v9015_v9 = vpop.f32.mrf.mxu0 }
 0x947   : > { %v3607_v57 = vmax.f32 %v3603_v37, %v9015_v9 }
 0x948   : > { %v9017_v28 = vpop.f32.mrf.mxu0 }
 0x949   : > { %v3606_v0 = vmax.f32 %v3602_v55, %v9017_v28 }
 0x94a   : > { %v9019_v38 = vpop.f32.mrf.mxu0 }
 0x94b   : > { %v3609_v20 = vmax.f32 %v3605_v32, %v9019_v38 }
 0x94c   : > { %v9021_v52 = vpop.f32.mrf.mxu0 }
 0x94d   : > { %v3608_v1 = vmax.f32 %v3604_v53, %v9021_v52 }
 0x94e   : > { %v9023_v11 = vpop.f32.mrf.mxu0 }
 0x94f   : > { %v3611_v51 = vmax.f32 %v3607_v57, %v9023_v11 }
 0x950   : > { %v9025_v49 = vpop.f32.mrf.mxu0 }
 0x951   : > { %v3610_v60 = vmax.f32 %v3606_v0, %v9025_v49  ;;  %v9097_v0 = vpop.trf.xlu0 }
 0x952   : > { %v9027_v50 = vpop.f32.mrf.mxu0 }
 0x953   : > { %v3613_v15 = vmax.f32 %v3609_v20, %v9027_v50 }
 0x954   : > { %v9029_v8 = vpop.f32.mrf.mxu0 }
 0x955   : > { %v3612_v7 = vmax.f32 %v3608_v1, %v9029_v8 }
 0x956   : > { %v9033_v33 = vpop.f32.mrf.mxu0 }
 0x957   : > { %v3615_v40 = vmax.f32 %v3611_v51, %v9033_v33 }
 0x958   : > { %v9035_v14 = vpop.f32.mrf.mxu0 }
 0x959   : > { %v3614_v62 = vmax.f32 %v3610_v60, %v9035_v14  ;;  %v9099_v60 = vpop.trf.xlu0 }
 0x95a   : > { %v9039_v58 = vpop.f32.mrf.mxu0 }
 0x95b   : > { %v3617_v41 = vmax.f32 %v3613_v15, %v9039_v58 }
 0x95c   : > { %v9041_v63 = vpop.f32.mrf.mxu0 }
 0x95d   : > { %v3616_v2 = vmax.f32 %v3612_v7, %v9041_v63  ;;  %v9101_v7 = vpop.trf.xlu0 }
 0x95e   : > { %v9043_v56 = vpop.f32.mrf.mxu0 }
 0x95f   : > { %v3619_v61 = vmax.f32 %v3615_v40, %v9043_v56 }
 0x960   : > { %v9049_v54 = vpop.f32.mrf.mxu0 }
 0x961   : > { %v3618_v34 = vmax.f32 %v3614_v62, %v9049_v54 }
 0x962   : > { %v9058_v30 = vpop.f32.mrf.mxu0 }
 0x963   : > { %v3621_v39 = vmax.f32 %v3617_v41, %v9058_v30 }
 0x964   : > { %v9064_v43 = vpop.f32.mrf.mxu0 }
 0x965   : > { %v3620_v19 = vmax.f32 %v3616_v2, %v9064_v43 }
 0x966   : > { %v9072_v5 = vpop.f32.mrf.mxu0 }
 0x967   : > { %v3623_v12 = vmax.f32 %v3619_v61, %v9072_v5 }
 0x968   : > { %v9078_v31 = vpop.f32.mrf.mxu0 }
 0x969   : > { %v3622_v47 = vmax.f32 %v3618_v34, %v9078_v31  ;;  %v9111_v34 = vpop.trf.xlu0 }
 0x96a   : > { %v9084_v36 = vpop.f32.mrf.mxu0 }
 0x96b   : > { %v3625_v10 = vmax.f32 %v3621_v39, %v9084_v36  ;;  %v3626_v37 = vmax.f32 %v3622_v47, %v3623_v12 }
 0x96c   : > { %v9092_v22 = vpop.f32.mrf.mxu0 }
 0x96d   : > { %v3624_v55 = vmax.f32 %v3620_v19, %v9092_v22 }
 0x96f   : > { %v3627_v32 = vmax.f32 %v3624_v55, %v3625_v10  ;;  %v9119_v10 = vpop.trf.xlu0 }
 0x971   : > { %v3628_v53 = vmax.f32 %v3626_v37, %v3627_v32 }
 0x973   : > { %v3629_v57 = vrot.slane %v3628_v53, 4 }
 0x975   : > { %v3630_v20 = vmax.f32 %v3628_v53, %v3629_v57 }
 0x977   : > { %v3631_v1 = vrot.slane %v3630_v20, 2 }
 0x979   : > { %v3632_v51 = vmax.f32 %v3630_v20, %v3631_v1 }
 0x97b   : > { %v3633_v15 = vrot.slane %v3632_v51, 1 }
 0x97d   : > { %v9103_v62 = vmax.f32 %v3632_v51, %v3633_v15 }
 0x97f   : > { %v3635_v40 = vsub.f32 %v8993_v44, %v9103_v62  ;;  %v3636_v41 = vsub.f32 %v8989_v26, %v9103_v62  ;;  %v3637_v2 = vsub.f32 %v8997_v23, %v9103_v62  ;;  %v3638_v61 = vsub.f32 %v8995_v6, %v9103_v62 }
 0x980   : > { %v3639_v19 = vsub.f32 %v9001_v29, %v9103_v62  ;;  %v3640_v44 = vsub.f32 %v8999_v17, %v9103_v62  ;;  %v3641_v23 = vsub.f32 %v9005_v46, %v9103_v62  ;;  %v3642_v6 = vsub.f32 %v9003_v59, %v9103_v62  ;;  %v9127_v17 = vpop.trf.xlu0 }
 0x981   : > { %v3667_v39 = vmul.f32 1.442695, %v3635_v40  ;;  %v3669_v47 = vmul.f32 1.442695, %v3636_v41  ;;  %v3671_v12 = vmul.f32 1.442695, %v3637_v2  ;;  %v3643_v37 = vsub.f32 %v9009_v18, %v9103_v62 }
 0x982   : > { %v3673_v26 = vmul.f32 1.442695, %v3638_v61  ;;  %v3675_v55 = vmul.f32 1.442695, %v3639_v19  ;;  %v3677_v29 = vmul.f32 1.442695, %v3640_v44  ;;  %v3644_v53 = vsub.f32 %v9007_v3, %v9103_v62 }
 0x983   : > { %6788 = vpow2.f32 %v3667_v39  ;;  %v3679_v32 = vmul.f32 1.442695, %v3641_v23  ;;  %v3681_v57 = vmul.f32 1.442695, %v3642_v6  ;;  %v3645_v46 = vsub.f32 %v9013_v27, %v9103_v62 }
 0x984   : > { %6790 = vpow2.f32 %v3669_v47  ;;  %v3683_v20 = vmul.f32 1.442695, %v3643_v37  ;;  %v3646_v1 = vsub.f32 %v9011_v35, %v9103_v62  ;;  %v3685_v18 = vmul.f32 1.442695, %v3644_v53  ;;  %v9139_v15 = vpop.trf.xlu0 }
 0x985   : > { %6792 = vpow2.f32 %v3671_v12  ;;  %v3647_v3 = vsub.f32 %v9017_v28, %v9103_v62  ;;  %v3687_v40 = vmul.f32 1.442695, %v3645_v46  ;;  %v3648_v2 = vsub.f32 %v9015_v9, %v9103_v62 }
 0x986   : > { %6794 = vpow2.f32 %v3673_v26  ;;  %v3689_v35 = vmul.f32 1.442695, %v3646_v1  ;;  %v3649_v19 = vsub.f32 %v9021_v52, %v9103_v62  ;;  %v3650_v9 = vsub.f32 %v9019_v38, %v9103_v62 }
 0x987   : > { %6796 = vpow2.f32 %v3675_v55  ;;  %v3691_v28 = vmul.f32 1.442695, %v3647_v3  ;;  %v3693_v26 = vmul.f32 1.442695, %v3648_v2  ;;  %v3651_v52 = vsub.f32 %v9025_v49, %v9103_v62 }
 0x988   : > { %6798 = vpow2.f32 %v3677_v29  ;;  %v9157_v44 = vpop.trf.xlu0  ;;  %v3695_v6 = vmul.f32 1.442695, %v3649_v19  ;;  %v3666_v37 = vsub.f32 %v9084_v36, %v9103_v62  ;;  %v3652_v38 = vsub.f32 %v9023_v11, %v9103_v62 }
 0x989   : > { %6800 = vpow2.f32 %v3679_v32  ;;  %v3665_v53 = vsub.f32 %v9092_v22, %v9103_v62  ;;  %v3653_v1 = vsub.f32 %v9029_v8, %v9103_v62  ;;  %v3699_v36 = vmul.f32 1.442695, %v3651_v52 }
 0x98a   : > { %6802 = vpow2.f32 %v3681_v57  ;;  %v3697_v57 = vmul.f32 1.442695, %v3650_v9  ;;  %v3729_v3 = vmul.f32 1.442695, %v3666_v37  ;;  %v3663_v2 = vsub.f32 %v9078_v31, %v9103_v62 }
 0x98b   : > { %6804 = vpow2.f32 %v3683_v20  ;;  %v3703_v19 = vmul.f32 1.442695, %v3653_v1  ;;  %v3659_v1 = vsub.f32 %v9049_v54, %v9103_v62 }
 0x98c   : > { %6806 = vpow2.f32 %v3685_v18  ;;  %v9178_v20 = vpop.trf.xlu0  ;;  %v3664_v18 = vsub.f32 %v9072_v5, %v9103_v62  ;;  %v3655_v5 = vsub.f32 %v9035_v14, %v9103_v62  ;;  %v3661_v14 = vsub.f32 %v9064_v43, %v9103_v62 }
 0x98d   : > { %6808 = vpow2.f32 %v3687_v40  ;;  %10228 = vst [vmem:[#allocation15_spill] sm:$0xff] %v9178_v20  ;;  %v3654_v40 = vsub.f32 %v9027_v50, %v9103_v62  ;;  %v3723_v52 = vmul.f32 1.442695, %v3663_v2  ;;  %v3658_v43 = vsub.f32 %v9039_v58, %v9103_v62 }
 0x98e   : > { %6810 = vpow2.f32 %v3689_v35  ;;  %v3727_v35 = vmul.f32 1.442695, %v3665_v53  ;;  %v3707_v37 = vmul.f32 1.442695, %v3655_v5  ;;  %v3715_v58 = vmul.f32 1.442695, %v3659_v1 }
 0x98f   : > { %6812 = vpow2.f32 %v3691_v28  ;;  %v3662_v28 = vsub.f32 %v9058_v30, %v9103_v62  ;;  %v3713_v2 = vmul.f32 1.442695, %v3658_v43 }
 0x990   : > { %v9133_v59 = vpop.eup %6788  ;;  %6814 = vpow2.f32 %v3693_v26  ;;  %v9201_v31 = vpop.trf.xlu0  ;;  %v3656_v26 = vsub.f32 %v9033_v33, %v9103_v62 }
 0x991   : > { %v9137_v51 = vpop.eup %6790  ;;  %6816 = vpow2.f32 %v3695_v6  ;;  %10229 = vst [vmem:[#allocation16_spill] sm:$0xff] %v9201_v31  ;;  %v3721_v53 = vmul.f32 1.442695, %v3662_v28 }
 0x992   : > { %v3731_v27 = vadd.f32 %v9137_v51, %v9133_v59  ;;  %v9145_v41 = vpop.eup %6792  ;;  %6818 = vpow2.f32 %v3697_v57 }
 0x993   : > { %v9150_v39 = vpop.eup %6794  ;;  %6820 = vpow2.f32 %v3699_v36  ;;  %v3719_v36 = vmul.f32 1.442695, %v3661_v14 }
 0x994   : > { %v3732_v61 = vadd.f32 %v9145_v41, %v3731_v27  ;;  %v9155_v12 = vpop.eup %6796  ;;  %v3701_v27 = vmul.f32 1.442695, %v3652_v38  ;;  %6822 = vpow2.f32 %v3729_v3  ;;  %v3660_v38 = vsub.f32 %v9043_v56, %v9103_v62 }
 0x995   : > { %v9162_v55 = vpop.eup %6798 }
 0x996   : > { %v3733_v47 = vadd.f32 %v9150_v39, %v3732_v61  ;;  %v9169_v32 = vpop.eup %6800  ;;  %6824 = vpow2.f32 %v3701_v27  ;;  %v3717_v3 = vmul.f32 1.442695, %v3660_v38 }
 0x997   : > { %v9176_v49 = vpop.eup %6802  ;;  %6826 = vpow2.f32 %v3727_v35 }
 0x998   : > { %v3734_v23 = vadd.f32 %v9155_v12, %v3733_v47  ;;  %v9185_v22 = vpop.eup %6804  ;;  %v3725_v47 = vmul.f32 1.442695, %v3664_v18  ;;  %6828 = vpow2.f32 %v3703_v19 }
 0x999   : > { %v9192_v61 = vpop.eup %6806 }
 0x99a   : > { %v3735_v29 = vadd.f32 %v9162_v55, %v3734_v23  ;;  %v9199_v9 = vpop.eup %6808  ;;  %v3705_v23 = vmul.f32 1.442695, %v3654_v40  ;;  %6830 = vpow2.f32 %v3725_v47 }
 0x99b   : > { %v6811_v6 = vpop.eup %6810 }
 0x99c   : > { %v3736_v46 = vadd.f32 %v9169_v32, %v3735_v29  ;;  %v3657_v29 = vsub.f32 %v9041_v63, %v9103_v62  ;;  %v6813_v57 = vpop.eup %6812  ;;  %6832 = vpow2.f32 %v3705_v23 }
 0x99d   : > { %6834 = vpow2.f32 %v3723_v52  ;;  %v6815_v18 = vpop.eup %6814 }
 0x99e   : > { %v3737_v11 = vadd.f32 %v9176_v49, %v3736_v46  ;;  %v3709_v46 = vmul.f32 1.442695, %v3656_v26  ;;  %6836 = vpow2.f32 %v3707_v37  ;;  %v3711_v56 = vmul.f32 1.442695, %v3657_v29  ;;  %v6817_v27 = vpop.eup %6816 }
 0x99f   : > { %6838 = vpow2.f32 %v3721_v53 }
 0x9a0   : > { %v3738_v8 = vadd.f32 %v9185_v22, %v3737_v11  ;;  %v9216_v11 = vpop.trf.xlu0  ;;  %6840 = vpow2.f32 %v3709_v46 }
 0x9a1   : > { %10230 = vst [vmem:[#allocation17_spill] sm:$0xff] %v9216_v11  ;;  %6842 = vpow2.f32 %v3719_v36 }
 0x9a2   : > { %v3739_v50 = vadd.f32 %v9192_v61, %v3738_v8  ;;  %v6819_v8 = vpop.eup %6818  ;;  %6844 = vpow2.f32 %v3711_v56 }
 0x9a3   : > { %v9218_v54 = vpop.eup %6820  ;;  %6846 = vpow2.f32 %v3717_v3 }
 0x9a4   : > { %v3740_v30 = vadd.f32 %v9199_v9, %v3739_v50  ;;  %v9220_v5 = vpop.eup %6822  ;;  %v9222_v19 = vpop.trf.xlu0  ;;  %6848 = vpow2.f32 %v3713_v2 }
 0x9a5   : > { %10231 = vst [vmem:[#allocation18_spill] sm:$0xff] %v9222_v19  ;;  %v9224_v28 = vpop.eup %6824  ;;  %6850 = vpow2.f32 %v3715_v58  ;;  %5834 = vmatprep.subr.mxu1 %v9220_v5 }
 0x9a6   : > { %v3741_v33 = vadd.f32 %v6811_v6, %v3740_v30  ;;  %v6827_v50 = vpop.eup %6826  ;;  %5835 = vmatpush3.msra.mxu1 %v6819_v8 }
 0x9a7   : > { %v6829_v26 = vpop.eup %6828  ;;  %5836 = vmatprep.subr.mxu1 %v6827_v50 }
 0x9a8   : > { %v3742_v63 = vadd.f32 %v6813_v57, %v3741_v33  ;;  %v6831_v14 = vpop.eup %6830  ;;  %5837 = vmatpush3.msra.mxu1 %v6817_v27  ;;  %v9229_v37 = vpop.trf.xlu0 }
 0x9a9   : > { %v6833_v52 = vpop.eup %6832  ;;  %5838 = vmatprep.subr.mxu1 %v6831_v14  ;;  %10232 = vst [vmem:[#allocation19_spill] sm:$0xff] %v9229_v37 }
 0x9aa   : > { %v3743_v40 = vadd.f32 %v6815_v18, %v3742_v63  ;;  %v6835_v29 = vpop.eup %6834  ;;  %5839 = vmatpush3.msra.mxu1 %v6815_v18 }
 0x9ab   : > { %v6837_v38 = vpop.eup %6836  ;;  %5840 = vmatprep.subr.mxu1 %v6835_v29 }
 0x9ac   : > { %v3744_v35 = vadd.f32 %v6817_v27, %v3743_v40  ;;  %v6839_v33 = vpop.eup %6838  ;;  %5841 = vmatpush3.msra.mxu1 %v6813_v57  ;;  %v9231_v3 = vpop.trf.xlu0 }
 0x9ad   : > { %v6841_v43 = vpop.eup %6840  ;;  %5842 = vmatprep.subr.mxu1 %v6839_v33  ;;  %10233 = vst [vmem:[#allocation20_spill] sm:$0xff] %v9231_v3 }
 0x9ae   : > { %v3745_v62 = vadd.f32 %v6819_v8, %v3744_v35  ;;  %v6843_v1 = vpop.eup %6842  ;;  %5843 = vmatpush3.msra.mxu1 %v6811_v6 }
 0x9af   : > { %v6845_v36 = vpop.eup %6844  ;;  %5844 = vmatprep.subr.mxu1 %v6843_v1 }
 0x9b0   : > { %v3746_v47 = vadd.f32 %v9218_v54, %v3745_v62  ;;  %v6847_v56 = vpop.eup %6846  ;;  %5845 = vmatpush3.msra.mxu1 %v9199_v9  ;;  %v9236_v6 = vpop.trf.xlu0 }
 0x9b1   : > { %v6849_v40 = vpop.eup %6848  ;;  %5846 = vmatprep.subr.mxu1 %v6847_v56  ;;  %10234 = vst [vmem:[#allocation21_spill] sm:$0xff] %v9236_v6 }
 0x9b2   : > { %v3747_v23 = vadd.f32 %v9224_v28, %v3746_v47  ;;  %v6851_v27 = vpop.eup %6850  ;;  %5847 = vmatpush3.msra.mxu1 %v9192_v61 }
 0x9b3   : > { %5848 = vmatprep.subr.mxu1 %v6851_v27 }
 0x9b4   : > { %v3748_v30 = vadd.f32 %v6829_v26, %v3747_v23  ;;  %5849 = vmatpush3.msra.mxu1 %v9185_v22  ;;  %v9241_v61 = vpop.trf.xlu0 }
 0x9b5   : > { %5850 = vmatprep.subr.mxu1 %v6849_v40  ;;  %10235 = vst [vmem:[#allocation22_spill] sm:$0xff] %v9241_v61 }
 0x9b6   : > { %v3749_v53 = vadd.f32 %v6833_v52, %v3748_v30  ;;  %5851 = vmatpush3.msra.mxu1 %v9176_v49  ;;  %v10236_v49 = vld [vmem:[#allocation11_spill] sm:$0xff] }
 0x9b7   : > { %5852 = vmatprep.subr.mxu1 %v6845_v36  ;;  %v437_v8 = vadd.f32 %v10236_v49, %v9031_v16 }
 0x9b8   : > { %v3750_v46 = vadd.f32 %v6837_v38, %v3749_v53  ;;  %5853 = vmatpush3.msra.mxu1 %v9169_v32 }
 0x9b9   : > { %5854 = vmatprep.subr.mxu1 %v6841_v43  ;;  %v3849_v47 = vmul.f32 0.35355338, %v437_v8 }
 0x9ba   : > { %v3751_v63 = vadd.f32 %v6841_v43, %v3750_v46  ;;  %5855 = vmatpush3.msra.mxu1 %v9162_v55  ;;  %v9249_v55 = vpop.trf.xlu0 }
 0x9bb   : > { %5856 = vmatprep.subr.mxu1 %v6837_v38  ;;  %10237 = vst [vmem:[#allocation23_spill] sm:$0xff] %v9249_v55 }
 0x9bc   : > { %v3752_v18 = vadd.f32 %v6845_v36, %v3751_v63  ;;  %5857 = vmatpush3.msra.mxu1 %v9155_v12 }
 0x9bd   : > { %5858 = vmatprep.subr.mxu1 %v6833_v52 }
 0x9be   : > { %v3753_v57 = vadd.f32 %v6849_v40, %v3752_v18  ;;  %5859 = vmatpush3.msra.mxu1 %v9150_v39 }
 0x9bf   : > { %5860 = vmatprep.subr.mxu1 %v6829_v26 }
 0x9c0   : > { %v3754_v2 = vadd.f32 %v6851_v27, %v3753_v57  ;;  %5861 = vmatpush3.msra.mxu1 %v9145_v41  ;;  %v9258_v41 = vpop.trf.xlu0 }
 0x9c1   : > { %5862 = vmatprep.subr.mxu1 %v9224_v28  ;;  %10238 = vst [vmem:[#allocation25_spill] sm:$0xff] %v9258_v41 }
 0x9c2   : > { %v3755_v58 = vadd.f32 %v6847_v56, %v3754_v2  ;;  %5863 = vmatpush3.msra.mxu1 %v9137_v51 }
 0x9c3   : > { %5864 = vmatprep.subr.mxu1 %v9218_v54 }
 0x9c4   : > { %v3756_v9 = vadd.f32 %v6843_v1, %v3755_v58  ;;  %5865 = vmatpush3.msra.mxu1 %v9133_v59  ;;  %v9266_v51 = vpop.trf.xlu0 }
 0x9c5   : > { %3833 = vmatmul.mubr.f32.vlgmr.msra.gmra.mxu1 %v8912_v25  ;;  %6305 = vmatprep.subr.mxu1 %v3849_v47  ;;  %10239 = vst [vmem:[#allocation27_spill] sm:$0xff] %v9266_v51 }
 0x9c6   : > { %v3757_v35 = vadd.f32 %v6839_v33, %v3756_v9  ;;  %6306 = vmatpush3.msra.mxu1 %v3849_v47  ;;  %6307 = vmatprep.mubr.msk.f32.mxu1 %vm583_vm1, %v9037_v45 }
 0x9c8   : > { %v3758_v22 = vadd.f32 %v6835_v29, %v3757_v35  ;;  %v9274_v25 = vpop.trf.xlu0 }
 0x9c9   : > { %6308 = vmatmul.mubr.msk.f32.vlgmr.msra.gmra.mxu1 %vm583_vm1, %v9047_v4  ;;  %10240 = vst [vmem:[#allocation8_spill] sm:$0xff] %v9274_v25 }
 0x9ca   : > { %v3759_v62 = vadd.f32 %v6831_v14, %v3758_v22  ;;  %6310 = vmatprep.mubr.msk.f32.mxu1 %vm583_vm1, %v9070_v21 }
 0x9cc   : > { %v3760_v32 = vadd.f32 %v6827_v50, %v3759_v62  ;;  %v9282_v59 = vpop.trf.xlu0 }
 0x9cd   : > { %6311 = vmatmul.mubr.msk.f32.gmra.mxu1 %vm583_vm1, %v9090_v42  ;;  %10241 = vst [vmem:[#allocation68_spill] sm:$0xff] %v9282_v59 }
 0x9ce   : > { %v3761_v12 = vadd.f32 %v9220_v5, %v3760_v32  ;;  %6313 = vmatprep.mubr.msk.f32.mxu1 %vm583_vm1, %v9097_v0 }
 0x9d0   : > { %v9290_v39 = vpop.trf.xlu0  ;;  %v3762_v14 = vrot.slane %v3761_v12, 4 }
 0x9d1   : > { %6314 = vmatmul.mubr.msk.f32.gmra.mxu1 %vm583_vm1, %v9099_v60  ;;  %10242 = vst [vmem:[#allocation29_spill] sm:$0xff] %v9290_v39 }
 0x9d2   : > { %6316 = vmatprep.mubr.msk.f32.mxu1 %vm583_vm1, %v9101_v7  ;;  %v3763_v52 = vadd.f32 %v3762_v14, %v3761_v12 }
 0x9d4   : > { %v9298_v54 = vpop.trf.xlu0  ;;  %v3764_v30 = vrot.slane %v3763_v52, 2 }
 0x9d5   : > { %6317 = vmatmul.mubr.msk.f32.gmra.mxu1 %vm583_vm1, %v9111_v34  ;;  %10243 = vst [vmem:[#allocation31_spill] sm:$0xff] %v9298_v54 }
 0x9d6   : > { %6319 = vmatprep.mubr.msk.f32.mxu1 %vm583_vm1, %v9119_v10  ;;  %v3765_v29 = vadd.f32 %v3764_v30, %v3763_v52 }
 0x9d8   : > { %v9306_v5 = vpop.trf.xlu0  ;;  %v3766_v38 = vrot.slane %v3765_v29, 1 }
 0x9d9   : > { %6320 = vmatmul.mubr.msk.f32.gmra.mxu1 %vm583_vm1, %v9127_v17  ;;  %10244 = vst [vmem:[#allocation33_spill] sm:$0xff] %v9306_v5 }
 0x9da   : > { %6322 = vmatprep.mubr.msk.f32.mxu1 %vm583_vm1, %v9139_v15  ;;  %v3767_v53 = vadd.f32 %v3766_v38, %v3765_v29 }
 0x9dc   : > { %v9314_v28 = vpop.trf.xlu0  ;;  %6852 = vrcp.f32 %v3767_v53 }
 0x9dd   : > { %6323 = vmatmul.mubr.msk.f32.gmra.mxu1 %vm583_vm1, %v9157_v44  ;;  %10245 = vst [vmem:[#allocation35_spill] sm:$0xff] %v9314_v28 }
 0x9de   : > { %6325 = vmatprep.mubr.msk.f32.mxu1 %vm583_vm1, %v9178_v20 }
 0x9e0   : > { %v9322_v50 = vpop.trf.xlu0 }
 0x9e1   : > { %6326 = vmatmul.mubr.msk.f32.gmra.mxu1 %vm583_vm1, %v9201_v31  ;;  %10246 = vst [vmem:[#allocation37_spill] sm:$0xff] %v9322_v50 }
 0x9e2   : > { %6328 = vmatprep.mubr.msk.f32.mxu1 %vm583_vm1, %v9216_v11 }
 0x9e4   : > { %v9330_v26 = vpop.trf.xlu0 }
 0x9e5   : > { %6329 = vmatmul.mubr.msk.f32.gmra.mxu1 %vm583_vm1, %v9222_v19  ;;  %10247 = vst [vmem:[#allocation39_spill] sm:$0xff] %v9330_v26 }
 0x9e6   : > { %6331 = vmatprep.mubr.msk.f32.mxu1 %vm583_vm1, %v9229_v37 }
 0x9e8   : > { %v9338_v23 = vpop.trf.xlu0 }
 0x9e9   : > { %6332 = vmatmul.mubr.msk.f32.gmra.mxu1 %vm583_vm1, %v9231_v3  ;;  %10248 = vst [vmem:[#allocation42_spill] sm:$0xff] %v9338_v23  ;;  %v6853_v33 = vpop.eup %6852 }
 0x9ea   : > { %6334 = vmatprep.mubr.msk.f32.mxu1 %vm583_vm1, %v9236_v6  ;;  %v3839_v43 = vmul.f32 %v6853_v33, %v3767_v53 }
 0x9ec   : > { %v3840_v46 = vsub.f32 2.0, %v3839_v43 }
 0x9ed   : > { %6335 = vmatmul.mubr.msk.f32.gmra.mxu1 %vm583_vm1, %v9241_v61 }
 0x9ee   : > { %6337 = vmatprep.mubr.msk.f32.mxu1 %vm583_vm1, %v9249_v55  ;;  %v3841_v56 = vmul.f32 %v6853_v33, %v3840_v46 }
 0x9f1   : > { %6338 = vmatmul.mubr.msk.f32.gmra.mxu1 %vm583_vm1, %v9258_v41 }
 0x9f2   : > { %6340 = vmatprep.mubr.msk.f32.mxu1 %vm583_vm1, %v9266_v51 }
 0x9f5   : > { %6341 = vmatmul.mubr.msk.f32.gmra.mxu1 %vm583_vm1, %v9274_v25 }
 0x9f6   : > { %6343 = vmatprep.mubr.msk.f32.mxu1 %vm583_vm1, %v9282_v59 }
 0x9f9   : > { %6344 = vmatmul.mubr.msk.f32.gmra.mxu1 %vm583_vm1, %v9290_v39 }
 0x9fa   : > { %6346 = vmatprep.mubr.msk.f32.mxu1 %vm583_vm1, %v9298_v54 }
 0x9fd   : > { %6347 = vmatmul.mubr.msk.f32.gmra.mxu1 %vm583_vm1, %v9306_v5 }
 0x9fe   : > { %6349 = vmatprep.mubr.msk.f32.mxu1 %vm583_vm1, %v9314_v28 }
 0xa01   : > { %6350 = vmatmul.mubr.msk.f32.gmra.mxu1 %vm583_vm1, %v9322_v50 }
 0xa02   : > { %6352 = vmatprep.mubr.msk.f32.mxu1 %vm583_vm1, %v9330_v26 }
 0xa05   : > { %6353 = vmatmul.mubr.msk.f32.gmra.mxu1 %vm583_vm1, %v9338_v23 }
 0xa06   : > { %4942 = vmatprep.mubr.f32.mxu1 %v8984_v24 }
 0xa85   : > { %v5866_v1 = vpop.f32.mrf.mxu1 }
 0xa87   : > { %v5867_v36 = vpop.f32.mrf.mxu1 }
 0xa88   : > { %v5868_v63 = vadd.f32 %v5867_v36, %v5866_v1 }
 0xa89   : > { %v9343_v40 = vpop.f32.mrf.mxu1 }
 0xa8a   : > { %v9345_v18 = vmul.f32 %v5868_v63, %v3841_v56 }
 0xa8b   : > { %v9347_v27 = vpop.f32.mrf.mxu1 }
 0xa8c   : > { %10249 = vst [vmem:[#allocation44_spill] sm:$0xff] %v9345_v18 }
 0xa8d   : > { %v9349_v24 = vpop.f32.mrf.mxu1 }
 0xa8f   : > { %v9351_v57 = vpop.f32.mrf.mxu1 }
 0xa91   : > { %v9353_v2 = vpop.f32.mrf.mxu1 }
 0xa92   : > { %v4236_v56 = vmax.f32 %v9343_v40, %v9353_v2 }
 0xa93   : > { %v9355_v58 = vpop.f32.mrf.mxu1 }
 0xa94   : > { %v4235_v36 = vmax.f32 %v9347_v27, %v9355_v58 }
 0xa95   : > { %v9357_v9 = vpop.f32.mrf.mxu1 }
 0xa96   : > { %v4238_v48 = vmax.f32 %v9349_v24, %v9357_v9 }
 0xa97   : > { %v9359_v35 = vpop.f32.mrf.mxu1 }
 0xa98   : > { %v4237_v18 = vmax.f32 %v9351_v57, %v9359_v35 }
 0xa99   : > { %v9361_v22 = vpop.f32.mrf.mxu1 }
 0xa9a   : > { %v4240_v50 = vmax.f32 %v4236_v56, %v9361_v22 }
 0xa9b   : > { %v9363_v49 = vpop.f32.mrf.mxu1 }
 0xa9c   : > { %v4239_v23 = vmax.f32 %v4235_v36, %v9363_v49 }
 0xa9d   : > { %v9365_v8 = vpop.f32.mrf.mxu1 }
 0xa9e   : > { %v4242_v28 = vmax.f32 %v4238_v48, %v9365_v8 }
 0xa9f   : > { %v9367_v62 = vpop.f32.mrf.mxu1 }
 0xaa0   : > { %v4241_v5 = vmax.f32 %v4237_v18, %v9367_v62 }
 0xaa1   : > { %v9369_v32 = vpop.f32.mrf.mxu1 }
 0xaa2   : > { %v4244_v59 = vmax.f32 %v4240_v50, %v9369_v32 }
 0xaa3   : > { %v9371_v47 = vpop.f32.mrf.mxu1 }
 0xaa4   : > { %v4243_v54 = vmax.f32 %v4239_v23, %v9371_v47 }
 0xaa5   : > { %v9373_v12 = vpop.f32.mrf.mxu1 }
 0xaa6   : > { %v4246_v25 = vmax.f32 %v4242_v28, %v9373_v12 }
 0xaa7   : > { %v9375_v14 = vpop.f32.mrf.mxu1 }
 0xaa8   : > { %v4245_v51 = vmax.f32 %v4241_v5, %v9375_v14 }
 0xaa9   : > { %v9377_v52 = vpop.f32.mrf.mxu1 }
 0xaaa   : > { %v4248_v56 = vmax.f32 %v4244_v59, %v9377_v52 }
 0xaab   : > { %v9379_v30 = vpop.f32.mrf.mxu1 }
 0xaac   : > { %v4247_v36 = vmax.f32 %v4243_v54, %v9379_v30 }
 0xaad   : > { %v9381_v29 = vpop.f32.mrf.mxu1 }
 0xaae   : > { %v4250_v48 = vmax.f32 %v4246_v25, %v9381_v29 }
 0xaaf   : > { %v9383_v38 = vpop.f32.mrf.mxu1 }
 0xab0   : > { %v4249_v18 = vmax.f32 %v4245_v51, %v9383_v38 }
 0xab1   : > { %v9385_v53 = vpop.f32.mrf.mxu1 }
 0xab2   : > { %v4252_v50 = vmax.f32 %v4248_v56, %v9385_v53 }
 0xab3   : > { %v9387_v33 = vpop.f32.mrf.mxu1 }
 0xab4   : > { %v4251_v23 = vmax.f32 %v4247_v36, %v9387_v33 }
 0xab5   : > { %v9389_v43 = vpop.f32.mrf.mxu1 }
 0xab6   : > { %v4254_v28 = vmax.f32 %v4250_v48, %v9389_v43 }
 0xab7   : > { %v9391_v46 = vpop.f32.mrf.mxu1 }
 0xab8   : > { %v4253_v5 = vmax.f32 %v4249_v18, %v9391_v46 }
 0xab9   : > { %v9393_v1 = vpop.f32.mrf.mxu1 }
 0xaba   : > { %v4256_v59 = vmax.f32 %v4252_v50, %v9393_v1 }
 0xabb   : > { %v9397_v63 = vpop.f32.mrf.mxu1 }
 0xabc   : > { %v4255_v54 = vmax.f32 %v4251_v23, %v9397_v63 }
 0xabd   : > { %v9406_v26 = vpop.f32.mrf.mxu1 }
 0xabe   : > { %v4258_v25 = vmax.f32 %v4254_v28, %v9406_v26 }
 0xabf   : > { %v9412_v39 = vpop.f32.mrf.mxu1 }
 0xac0   : > { %v4257_v51 = vmax.f32 %v4253_v5, %v9412_v39 }
 0xac1   : > { %v9418_v41 = vpop.f32.mrf.mxu1 }
 0xac2   : > { %v4260_v56 = vmax.f32 %v4256_v59, %v9418_v41 }
 0xac3   : > { %v9424_v55 = vpop.f32.mrf.mxu1 }
 0xac4   : > { %v4259_v36 = vmax.f32 %v4255_v54, %v9424_v55 }
 0xac5   : > { %v9430_v61 = vpop.f32.mrf.mxu1 }
 0xac6   : > { %v4262_v48 = vmax.f32 %v4258_v25, %v9430_v61  ;;  %v4263_v3 = vmax.f32 %v4259_v36, %v4260_v56 }
 0xac7   : > { %v9436_v6 = vpop.f32.mrf.mxu1 }
 0xac8   : > { %v4261_v18 = vmax.f32 %v4257_v51, %v9436_v6 }
 0xaca   : > { %v4264_v23 = vmax.f32 %v4261_v18, %v4262_v48 }
 0xacc   : > { %v4265_v37 = vmax.f32 %v4263_v3, %v4264_v23 }
 0xace   : > { %v4266_v19 = vrot.slane %v4265_v37, 4 }
 0xad0   : > { %v4267_v11 = vmax.f32 %v4265_v37, %v4266_v19 }
 0xad2   : > { %v4268_v50 = vrot.slane %v4267_v11, 2 }
 0xad4   : > { %v4269_v31 = vmax.f32 %v4267_v11, %v4268_v50 }
 0xad6   : > { %v4270_v28 = vrot.slane %v4269_v31, 1 }
 0xad8   : > { %v9441_v20 = vmax.f32 %v4269_v31, %v4270_v28 }
 0xada   : > { %v4272_v5 = vsub.f32 %v9347_v27, %v9441_v20  ;;  %v4273_v54 = vsub.f32 %v9343_v40, %v9441_v20  ;;  %v4274_v59 = vsub.f32 %v9351_v57, %v9441_v20  ;;  %v4275_v25 = vsub.f32 %v9349_v24, %v9441_v20 }
 0xadb   : > { %v4276_v19 = vsub.f32 %v9355_v58, %v9441_v20  ;;  %v4277_v31 = vsub.f32 %v9353_v2, %v9441_v20  ;;  %v4278_v40 = vsub.f32 %v9359_v35, %v9441_v20  ;;  %v4279_v24 = vsub.f32 %v9357_v9, %v9441_v20 }
 0xadc   : > { %v4304_v3 = vmul.f32 1.442695, %v4272_v5  ;;  %v4306_v11 = vmul.f32 1.442695, %v4273_v54  ;;  %v4308_v37 = vmul.f32 1.442695, %v4274_v59  ;;  %v4280_v58 = vsub.f32 %v9363_v49, %v9441_v20 }
 0xadd   : > { %v4310_v27 = vmul.f32 1.442695, %v4275_v25  ;;  %v4312_v57 = vmul.f32 1.442695, %v4276_v19  ;;  %v4314_v51 = vmul.f32 1.442695, %v4277_v31  ;;  %v4281_v2 = vsub.f32 %v9361_v22, %v9441_v20 }
 0xade   : > { %6854 = vpow2.f32 %v4304_v3  ;;  %v4316_v36 = vmul.f32 1.442695, %v4278_v40  ;;  %v4318_v56 = vmul.f32 1.442695, %v4279_v24  ;;  %v4282_v35 = vsub.f32 %v9367_v62, %v9441_v20 }
 0xadf   : > { %6856 = vpow2.f32 %v4306_v11  ;;  %v4320_v48 = vmul.f32 1.442695, %v4280_v58  ;;  %v4283_v9 = vsub.f32 %v9365_v8, %v9441_v20  ;;  %v4322_v23 = vmul.f32 1.442695, %v4281_v2 }
 0xae0   : > { %6858 = vpow2.f32 %v4308_v37  ;;  %v4284_v50 = vsub.f32 %v9371_v47, %v9441_v20  ;;  %v4324_v22 = vmul.f32 1.442695, %v4282_v35  ;;  %v4285_v5 = vsub.f32 %v9369_v32, %v9441_v20 }
 0xae1   : > { %6860 = vpow2.f32 %v4310_v27  ;;  %v4326_v54 = vmul.f32 1.442695, %v4283_v9  ;;  %v4286_v25 = vsub.f32 %v9375_v14, %v9441_v20  ;;  %v4287_v11 = vsub.f32 %v9373_v12, %v9441_v20 }
 0xae2   : > { %6862 = vpow2.f32 %v4312_v57  ;;  %v4328_v47 = vmul.f32 1.442695, %v4284_v50  ;;  %v4330_v32 = vmul.f32 1.442695, %v4285_v5  ;;  %v4288_v27 = vsub.f32 %v9379_v30, %v9441_v20 }
 0xae3   : > { %6864 = vpow2.f32 %v4314_v51  ;;  %v4332_v14 = vmul.f32 1.442695, %v4286_v25  ;;  %v4303_v57 = vsub.f32 %v9430_v61, %v9441_v20  ;;  %v4289_v12 = vsub.f32 %v9377_v52, %v9441_v20 }
 0xae4   : > { %6866 = vpow2.f32 %v4316_v36  ;;  %v4302_v51 = vsub.f32 %v9436_v6, %v9441_v20  ;;  %v4334_v58 = vmul.f32 1.442695, %v4287_v11  ;;  %v4290_v2 = vsub.f32 %v9383_v38, %v9441_v20 }
 0xae5   : > { %6868 = vpow2.f32 %v4318_v56  ;;  %v4336_v56 = vmul.f32 1.442695, %v4288_v27  ;;  %v4301_v61 = vsub.f32 %v9418_v41, %v9441_v20  ;;  %v4366_v52 = vmul.f32 1.442695, %v4303_v57 }
 0xae6   : > { %6870 = vpow2.f32 %v4320_v48  ;;  %v4291_v6 = vsub.f32 %v9381_v29, %v9441_v20  ;;  %v4338_v9 = vmul.f32 1.442695, %v4289_v12  ;;  %v4364_v50 = vmul.f32 1.442695, %v4302_v51 }
 0xae7   : > { %6872 = vpow2.f32 %v4322_v23  ;;  %v4300_v23 = vsub.f32 %v9424_v55, %v9441_v20  ;;  %v4292_v41 = vsub.f32 %v9387_v33, %v9441_v20  ;;  %v4299_v5 = vsub.f32 %v9406_v26, %v9441_v20 }
 0xae8   : > { %6874 = vpow2.f32 %v4324_v22  ;;  %v4293_v55 = vsub.f32 %v9385_v53, %v9441_v20  ;;  %v4342_v25 = vmul.f32 1.442695, %v4291_v6  ;;  %v4294_v26 = vsub.f32 %v9391_v46, %v9441_v20 }
 0xae9   : > { %6876 = vpow2.f32 %v4326_v54  ;;  %v4362_v54 = vmul.f32 1.442695, %v4301_v61  ;;  %v4360_v33 = vmul.f32 1.442695, %v4300_v23  ;;  %v4358_v27 = vmul.f32 1.442695, %v4299_v5 }
 0xaea   : > { %6878 = vpow2.f32 %v4328_v47  ;;  %v4298_v47 = vsub.f32 %v9412_v39, %v9441_v20  ;;  %v4295_v39 = vsub.f32 %v9389_v43, %v9441_v20  ;;  %v4296_v57 = vsub.f32 %v9397_v63, %v9441_v20 }
 0xaeb   : > { %v9465_v18 = vpop.eup %6854  ;;  %6880 = vpow2.f32 %v4330_v32  ;;  %v4344_v32 = vmul.f32 1.442695, %v4292_v41 }
 0xaec   : > { %v9469_v49 = vpop.eup %6856  ;;  %6882 = vpow2.f32 %v4332_v14  ;;  %v4356_v12 = vmul.f32 1.442695, %v4298_v47  ;;  %v4352_v61 = vmul.f32 1.442695, %v4296_v57 }
 0xaed   : > { %v4368_v28 = vadd.f32 %v9469_v49, %v9465_v18  ;;  %v9475_v62 = vpop.eup %6858  ;;  %6884 = vpow2.f32 %v4334_v58  ;;  %v4348_v58 = vmul.f32 1.442695, %v4294_v26 }
 0xaee   : > { %v9480_v59 = vpop.eup %6860  ;;  %6886 = vpow2.f32 %v4336_v56  ;;  %v4350_v56 = vmul.f32 1.442695, %v4295_v39 }
 0xaef   : > { %v4369_v8 = vadd.f32 %v9475_v62, %v4368_v28  ;;  %v9485_v19 = vpop.eup %6862  ;;  %v4340_v28 = vmul.f32 1.442695, %v4290_v2  ;;  %6888 = vpow2.f32 %v4366_v52 }
 0xaf0   : > { %v9490_v31 = vpop.eup %6864  ;;  %6890 = vpow2.f32 %v4338_v9 }
 0xaf1   : > { %v4370_v3 = vadd.f32 %v9480_v59, %v4369_v8  ;;  %v9497_v24 = vpop.eup %6866  ;;  %6892 = vpow2.f32 %v4364_v50 }
 0xaf2   : > { %v9504_v30 = vpop.eup %6868  ;;  %6894 = vpow2.f32 %v4340_v28 }
 0xaf3   : > { %v4371_v37 = vadd.f32 %v9485_v19, %v4370_v3  ;;  %v9511_v48 = vpop.eup %6870  ;;  %6896 = vpow2.f32 %v4362_v54 }
 0xaf4   : > { %v9518_v22 = vpop.eup %6872  ;;  %6898 = vpow2.f32 %v4342_v25 }
 0xaf5   : > { %v4372_v40 = vadd.f32 %v9490_v31, %v4371_v37  ;;  %v9525_v8 = vpop.eup %6874  ;;  %v4297_v37 = vsub.f32 %v9393_v1, %v9441_v20  ;;  %6900 = vpow2.f32 %v4360_v33 }
 0xaf6   : > { %v6877_v11 = vpop.eup %6876  ;;  %6902 = vpow2.f32 %v4344_v32 }
 0xaf7   : > { %v4373_v36 = vadd.f32 %v9497_v24, %v4372_v40  ;;  %v6879_v14 = vpop.eup %6878  ;;  %v4346_v40 = vmul.f32 1.442695, %v4293_v55  ;;  %6904 = vpow2.f32 %v4358_v27 }
 0xaf8   : > { %v6881_v51 = vpop.eup %6880 }
 0xaf9   : > { %v4374_v35 = vadd.f32 %v9504_v30, %v4373_v36  ;;  %v4354_v36 = vmul.f32 1.442695, %v4297_v37  ;;  %v6883_v2 = vpop.eup %6882  ;;  %6906 = vpow2.f32 %v4346_v40 }
 0xafa   : > { %6908 = vpow2.f32 %v4356_v12 }
 0xafb   : > { %v4375_v38 = vadd.f32 %v9511_v48, %v4374_v35  ;;  %v6885_v35 = vpop.eup %6884  ;;  %6910 = vpow2.f32 %v4348_v58  ;;  %v10270_v58 = vld [vmem:[#allocation39_spill] sm:$0xff] }
 0xafc   : > { %v9540_v52 = vpop.eup %6886  ;;  %6912 = vpow2.f32 %v4354_v36  ;;  %v10271_v36 = vld [vmem:[#allocation42_spill] sm:$0xff] }
 0xafd   : > { %v4376_v29 = vadd.f32 %v9518_v22, %v4375_v38  ;;  %v9542_v63 = vpop.eup %6888  ;;  %6914 = vpow2.f32 %v4350_v56 }
 0xafe   : > { %v6891_v6 = vpop.eup %6890  ;;  %6916 = vpow2.f32 %v4352_v61  ;;  %5902 = vmatprep.subr.mxu0 %v9542_v63 }
 0xaff   : > { %v4377_v3 = vadd.f32 %v9525_v8, %v4376_v29  ;;  %v6893_v23 = vpop.eup %6892  ;;  %5903 = vmatpush3.msra.mxu0 %v6885_v35 }
 0xb00   : > { %v6895_v50 = vpop.eup %6894  ;;  %5904 = vmatprep.subr.mxu0 %v6893_v23 }
 0xb01   : > { %v4378_v53 = vadd.f32 %v6877_v11, %v4377_v3  ;;  %v6897_v41 = vpop.eup %6896  ;;  %5905 = vmatpush3.msra.mxu0 %v6883_v2 }
 0xb02   : > { %v6899_v28 = vpop.eup %6898  ;;  %5906 = vmatprep.subr.mxu0 %v6897_v41 }
 0xb03   : > { %v4379_v46 = vadd.f32 %v6879_v14, %v4378_v53  ;;  %v6901_v54 = vpop.eup %6900  ;;  %5907 = vmatpush3.msra.mxu0 %v6881_v51 }
 0xb04   : > { %v6903_v29 = vpop.eup %6902  ;;  %5908 = vmatprep.subr.mxu0 %v6901_v54 }
 0xb05   : > { %v4380_v1 = vadd.f32 %v6881_v51, %v4379_v46  ;;  %v6905_v25 = vpop.eup %6904  ;;  %5909 = vmatpush3.msra.mxu0 %v6879_v14  ;;  %v10251_v46 = vld [vmem:[#allocation72_spill] sm:$0xff] }
 0xb06   : > { %v6907_v47 = vpop.eup %6906  ;;  %5910 = vmatprep.subr.mxu0 %v6905_v25  ;;  %v9560_v51 = vadd.f32 %v10251_v46, %v8976_v13  ;;  %v10252_v13 = vld [vmem:[#allocation15_spill] sm:$0xff] }
 0xb07   : > { %v4381_v43 = vadd.f32 %v6883_v2, %v4380_v1  ;;  %v6909_v3 = vpop.eup %6908  ;;  %5911 = vmatpush3.msra.mxu0 %v6877_v11 }
 0xb08   : > { %v6911_v26 = vpop.eup %6910  ;;  %5912 = vmatprep.subr.mxu0 %v6909_v3 }
 0xb09   : > { %v4382_v20 = vadd.f32 %v6885_v35, %v4381_v43  ;;  %v6913_v37 = vpop.eup %6912  ;;  %5913 = vmatpush3.msra.mxu0 %v9525_v8 }
 0xb0a   : > { %v6915_v27 = vpop.eup %6914  ;;  %5914 = vmatprep.subr.mxu0 %v6913_v37 }
 0xb0b   : > { %v4383_v9 = vadd.f32 %v9540_v52, %v4382_v20  ;;  %v6917_v39 = vpop.eup %6916  ;;  %5915 = vmatpush3.msra.mxu0 %v9518_v22 }
 0xb0c   : > { %5916 = vmatprep.subr.mxu0 %v6917_v39 }
 0xb0d   : > { %v4384_v38 = vadd.f32 %v6891_v6, %v4383_v9  ;;  %5917 = vmatpush3.msra.mxu0 %v9511_v48  ;;  %v10250_v48 = vld [vmem:[#allocation12_spill] sm:$0xff] }
 0xb0e   : > { %5918 = vmatprep.subr.mxu0 %v6915_v27  ;;  %v439_v12 = vadd.f32 %v10250_v48, %v9031_v16  ;;  %v10253_v16 = vld [vmem:[#allocation16_spill] sm:$0xff] }
 0xb0f   : > { %v4385_v5 = vadd.f32 %v6895_v50, %v4384_v38  ;;  %5919 = vmatpush3.msra.mxu0 %v9504_v30 }
 0xb10   : > { %5920 = vmatprep.subr.mxu0 %v6911_v26 }
 0xb11   : > { %v4386_v55 = vadd.f32 %v6899_v28, %v4385_v5  ;;  %5921 = vmatpush3.msra.mxu0 %v9497_v24 }
 0xb12   : > { %5922 = vmatprep.subr.mxu0 %v6907_v47 }
 0xb13   : > { %v4387_v33 = vadd.f32 %v6903_v29, %v4386_v55  ;;  %5923 = vmatpush3.msra.mxu0 %v9490_v31  ;;  %v4482_v31 = vmul.f32 0.35355338, %v439_v12 }
 0xb14   : > { %5924 = vmatprep.subr.mxu0 %v6903_v29 }
 0xb15   : > { %v4388_v32 = vadd.f32 %v6907_v47, %v4387_v33  ;;  %5925 = vmatpush3.msra.mxu0 %v9485_v19  ;;  %v10269_v19 = vld [vmem:[#allocation37_spill] sm:$0xff] }
 0xb16   : > { %5926 = vmatprep.subr.mxu0 %v6899_v28 }
 0xb17   : > { %v4389_v53 = vadd.f32 %v6911_v26, %v4388_v32  ;;  %5927 = vmatpush3.msra.mxu0 %v9480_v59 }
 0xb18   : > { %5928 = vmatprep.subr.mxu0 %v6895_v50 }
 0xb19   : > { %v4390_v40 = vadd.f32 %v6915_v27, %v4389_v53  ;;  %5929 = vmatpush3.msra.mxu0 %v9475_v62  ;;  %v10268_v62 = vld [vmem:[#allocation35_spill] sm:$0xff] }
 0xb1a   : > { %5930 = vmatprep.subr.mxu0 %v6891_v6 }
 0xb1b   : > { %v4391_v14 = vadd.f32 %v6917_v39, %v4390_v40  ;;  %5931 = vmatpush3.msra.mxu0 %v9469_v49  ;;  %v10267_v49 = vld [vmem:[#allocation33_spill] sm:$0xff] }
 0xb1c   : > { %5932 = vmatprep.subr.mxu0 %v9540_v52 }
 0xb1d   : > { %v4392_v11 = vadd.f32 %v6913_v37, %v4391_v14  ;;  %5933 = vmatpush3.msra.mxu0 %v9465_v18  ;;  %v10266_v18 = vld [vmem:[#allocation31_spill] sm:$0xff] }
 0xb1e   : > { %4470 = vmatmul.mubr.f32.vlgmr.msra.gmra.mxu0 %v9560_v51  ;;  %6355 = vmatprep.subr.mxu0 %v4482_v31 }
 0xb1f   : > { %v4393_v57 = vadd.f32 %v6909_v3, %v4392_v11  ;;  %6356 = vmatpush3.msra.mxu0 %v4482_v31  ;;  %6357 = vmatprep.mubr.msk.f32.mxu0 %vm583_vm1, %v9037_v45  ;;  %v10254_v45 = vld [vmem:[#allocation17_spill] sm:$0xff] }
 0xb21   : > { %v4394_v8 = vadd.f32 %v6905_v25, %v4393_v57 }
 0xb22   : > { %6358 = vmatmul.mubr.msk.f32.vlgmr.msra.gmra.mxu0 %vm583_vm1, %v9047_v4  ;;  %v10255_v4 = vld [vmem:[#allocation18_spill] sm:$0xff] }
 0xb23   : > { %v4395_v22 = vadd.f32 %v6901_v54, %v4394_v8  ;;  %6360 = vmatprep.mubr.msk.f32.mxu0 %vm583_vm1, %v9070_v21  ;;  %v10256_v21 = vld [vmem:[#allocation19_spill] sm:$0xff] }
 0xb25   : > { %v4396_v30 = vadd.f32 %v6897_v41, %v4395_v22 }
 0xb26   : > { %6361 = vmatmul.mubr.msk.f32.gmra.mxu0 %vm583_vm1, %v9090_v42  ;;  %v10257_v42 = vld [vmem:[#allocation20_spill] sm:$0xff] }
 0xb27   : > { %v4397_v24 = vadd.f32 %v6893_v23, %v4396_v30  ;;  %6363 = vmatprep.mubr.msk.f32.mxu0 %vm583_vm1, %v9097_v0  ;;  %v10258_v0 = vld [vmem:[#allocation21_spill] sm:$0xff] }
 0xb29   : > { %v4398_v59 = vadd.f32 %v9542_v63, %v4397_v24 }
 0xb2a   : > { %6364 = vmatmul.mubr.msk.f32.gmra.mxu0 %vm583_vm1, %v9099_v60  ;;  %v10259_v60 = vld [vmem:[#allocation22_spill] sm:$0xff] }
 0xb2b   : > { %6366 = vmatprep.mubr.msk.f32.mxu0 %vm583_vm1, %v9101_v7  ;;  %v10260_v7 = vld [vmem:[#allocation23_spill] sm:$0xff]  ;;  %v4399_v1 = vrot.slane %v4398_v59, 4 }
 0xb2d   : > { %v4400_v2 = vadd.f32 %v4399_v1, %v4398_v59 }
 0xb2e   : > { %6367 = vmatmul.mubr.msk.f32.gmra.mxu0 %vm583_vm1, %v9111_v34  ;;  %v10261_v34 = vld [vmem:[#allocation25_spill] sm:$0xff] }
 0xb2f   : > { %6369 = vmatprep.mubr.msk.f32.mxu0 %vm583_vm1, %v9119_v10  ;;  %v10262_v10 = vld [vmem:[#allocation27_spill] sm:$0xff]  ;;  %v4401_v56 = vrot.slane %v4400_v2, 2 }
 0xb31   : > { %v4402_v61 = vadd.f32 %v4401_v56, %v4400_v2 }
 0xb32   : > { %6370 = vmatmul.mubr.msk.f32.gmra.mxu0 %vm583_vm1, %v9127_v17  ;;  %v10263_v17 = vld [vmem:[#allocation8_spill] sm:$0xff] }
 0xb33   : > { %6372 = vmatprep.mubr.msk.f32.mxu0 %vm583_vm1, %v9139_v15  ;;  %v10264_v15 = vld [vmem:[#allocation68_spill] sm:$0xff]  ;;  %v4403_v43 = vrot.slane %v4402_v61, 1 }
 0xb35   : > { %v4404_v35 = vadd.f32 %v4403_v43, %v4402_v61 }
 0xb36   : > { %6373 = vmatmul.mubr.msk.f32.gmra.mxu0 %vm583_vm1, %v9157_v44  ;;  %v10265_v44 = vld [vmem:[#allocation29_spill] sm:$0xff] }
 0xb37   : > { %6375 = vmatprep.mubr.msk.f32.mxu0 %vm583_vm1, %v10252_v13  ;;  %6918 = vrcp.f32 %v4404_v35 }
 0xb3a   : > { %6376 = vmatmul.mubr.msk.f32.gmra.mxu0 %vm583_vm1, %v10253_v16 }
 0xb3b   : > { %6378 = vmatprep.mubr.msk.f32.mxu0 %vm583_vm1, %v10254_v45 }
 0xb3e   : > { %6379 = vmatmul.mubr.msk.f32.gmra.mxu0 %vm583_vm1, %v10255_v4 }
 0xb3f   : > { %6381 = vmatprep.mubr.msk.f32.mxu0 %vm583_vm1, %v10256_v21 }
 0xb42   : > { %6382 = vmatmul.mubr.msk.f32.gmra.mxu0 %vm583_vm1, %v10257_v42 }
 0xb43   : > { %6384 = vmatprep.mubr.msk.f32.mxu0 %vm583_vm1, %v10258_v0 }
 0xb44   : > { %v6919_v52 = vpop.eup %6918 }
 0xb45   : > { %v4476_v20 = vmul.f32 %v6919_v52, %v4404_v35 }
 0xb46   : > { %6385 = vmatmul.mubr.msk.f32.gmra.mxu0 %vm583_vm1, %v10259_v60 }
 0xb47   : > { %6387 = vmatprep.mubr.msk.f32.mxu0 %vm583_vm1, %v10260_v7  ;;  %v4477_v63 = vsub.f32 2.0, %v4476_v20 }
 0xb49   : > { %v4478_v50 = vmul.f32 %v6919_v52, %v4477_v63 }
 0xb4a   : > { %6388 = vmatmul.mubr.msk.f32.gmra.mxu0 %vm583_vm1, %v10261_v34 }
 0xb4b   : > { %6390 = vmatprep.mubr.msk.f32.mxu0 %vm583_vm1, %v10262_v10 }
 0xb4e   : > { %6391 = vmatmul.mubr.msk.f32.gmra.mxu0 %vm583_vm1, %v10263_v17 }
 0xb4f   : > { %6393 = vmatprep.mubr.msk.f32.mxu0 %vm583_vm1, %v10264_v15 }
 0xb52   : > { %6394 = vmatmul.mubr.msk.f32.gmra.mxu0 %vm583_vm1, %v10265_v44 }
 0xb53   : > { %6396 = vmatprep.mubr.msk.f32.mxu0 %vm583_vm1, %v10266_v18 }
 0xb56   : > { %6397 = vmatmul.mubr.msk.f32.gmra.mxu0 %vm583_vm1, %v10267_v49 }
 0xb57   : > { %6399 = vmatprep.mubr.msk.f32.mxu0 %vm583_vm1, %v10268_v62 }
 0xb5a   : > { %6400 = vmatmul.mubr.msk.f32.gmra.mxu0 %vm583_vm1, %v10269_v19 }
 0xb5b   : > { %6402 = vmatprep.mubr.msk.f32.mxu0 %vm583_vm1, %v10270_v58 }
 0xb5e   : > { %6403 = vmatmul.mubr.msk.f32.gmra.mxu0 %vm583_vm1, %v10271_v36 }
 0xbde   : > { %v5934_v6 = vpop.f32.mrf.mxu0 }
 0xbe0   : > { %v5935_v9 = vpop.f32.mrf.mxu0 }
 0xbe1   : > { %v5936_v23 = vadd.f32 %v5935_v9, %v5934_v6 }
 0xbe2   : > { %v9630_v38 = vpop.f32.mrf.mxu0 }
 0xbe3   : > { %v9632_v41 = vmul.f32 %v5936_v23, %v4478_v50 }
 0xbe4   : > { %v9634_v28 = vpop.f32.mrf.mxu0 }
 0xbe6   : > { %v9636_v5 = vpop.f32.mrf.mxu0 }
 0xbe8   : > { %v9638_v54 = vpop.f32.mrf.mxu0 }
 0xbea   : > { %v9640_v29 = vpop.f32.mrf.mxu0 }
 0xbeb   : > { %v4709_v46 = vmax.f32 %v9630_v38, %v9640_v29 }
 0xbec   : > { %v9642_v55 = vpop.f32.mrf.mxu0 }
 0xbed   : > { %v4708_v24 = vmax.f32 %v9634_v28, %v9642_v55 }
 0xbee   : > { %v9644_v25 = vpop.f32.mrf.mxu0 }
 0xbef   : > { %v4711_v59 = vmax.f32 %v9636_v5, %v9644_v25 }
 0xbf0   : > { %v9646_v47 = vpop.f32.mrf.mxu0 }
 0xbf1   : > { %v4710_v13 = vmax.f32 %v9638_v54, %v9646_v47 }
 0xbf2   : > { %v9648_v33 = vpop.f32.mrf.mxu0 }
 0xbf3   : > { %v4713_v4 = vmax.f32 %v4709_v46, %v9648_v33 }
 0xbf4   : > { %v9650_v3 = vpop.f32.mrf.mxu0 }
 0xbf5   : > { %v4712_v16 = vmax.f32 %v4708_v24, %v9650_v3 }
 0xbf6   : > { %v9652_v26 = vpop.f32.mrf.mxu0 }
 0xbf7   : > { %v4715_v21 = vmax.f32 %v4711_v59, %v9652_v26 }
 0xbf8   : > { %v9654_v32 = vpop.f32.mrf.mxu0 }
 0xbf9   : > { %v4714_v42 = vmax.f32 %v4710_v13, %v9654_v32 }
 0xbfa   : > { %v9656_v37 = vpop.f32.mrf.mxu0 }
 0xbfb   : > { %v4717_v7 = vmax.f32 %v4713_v4, %v9656_v37 }
 0xbfc   : > { %v9658_v27 = vpop.f32.mrf.mxu0 }
 0xbfd   : > { %v4716_v0 = vmax.f32 %v4712_v16, %v9658_v27 }
 0xbfe   : > { %v9660_v53 = vpop.f32.mrf.mxu0 }
 0xbff   : > { %v4719_v34 = vmax.f32 %v4715_v21, %v9660_v53 }
 0xc00   : > { %v9662_v39 = vpop.f32.mrf.mxu0 }
 0xc01   : > { %v4718_v10 = vmax.f32 %v4714_v42, %v9662_v39 }
 0xc02   : > { %v9664_v40 = vpop.f32.mrf.mxu0 }
 0xc03   : > { %v4721_v44 = vmax.f32 %v4717_v7, %v9664_v40 }
 0xc04   : > { %v9666_v14 = vpop.f32.mrf.mxu0 }
 0xc05   : > { %v4720_v17 = vmax.f32 %v4716_v0, %v9666_v14 }
 0xc06   : > { %v9668_v11 = vpop.f32.mrf.mxu0 }
 0xc07   : > { %v4723_v18 = vmax.f32 %v4719_v34, %v9668_v11 }
 0xc08   : > { %v9670_v57 = vpop.f32.mrf.mxu0 }
 0xc09   : > { %v4722_v49 = vmax.f32 %v4718_v10, %v9670_v57 }
 0xc0a   : > { %v9672_v8 = vpop.f32.mrf.mxu0 }
 0xc0b   : > { %v4725_v58 = vmax.f32 %v4721_v44, %v9672_v8 }
 0xc0c   : > { %v9674_v22 = vpop.f32.mrf.mxu0 }
 0xc0d   : > { %v4724_v62 = vmax.f32 %v4720_v17, %v9674_v22 }
 0xc0e   : > { %v9676_v48 = vpop.f32.mrf.mxu0 }
 0xc0f   : > { %v4727_v36 = vmax.f32 %v4723_v18, %v9676_v48 }
 0xc10   : > { %v9678_v12 = vpop.f32.mrf.mxu0 }
 0xc11   : > { %v4726_v1 = vmax.f32 %v4722_v49, %v9678_v12 }
 0xc12   : > { %v9680_v30 = vpop.f32.mrf.mxu0 }
 0xc13   : > { %v4729_v61 = vmax.f32 %v4725_v58, %v9680_v30 }
 0xc14   : > { %v9684_v31 = vpop.f32.mrf.mxu0 }
 0xc15   : > { %v4728_v2 = vmax.f32 %v4724_v62, %v9684_v31 }
 0xc16   : > { %v9693_v45 = vpop.f32.mrf.mxu0 }
 0xc17   : > { %v4731_v43 = vmax.f32 %v4727_v36, %v9693_v45 }
 0xc18   : > { %v9699_v60 = vpop.f32.mrf.mxu0 }
 0xc19   : > { %v4730_v35 = vmax.f32 %v4726_v1, %v9699_v60 }
 0xc1a   : > { %v9705_v15 = vpop.f32.mrf.mxu0 }
 0xc1b   : > { %v4733_v63 = vmax.f32 %v4729_v61, %v9705_v15 }
 0xc1c   : > { %v9711_v19 = vpop.f32.mrf.mxu0 }
 0xc1d   : > { %v4732_v52 = vmax.f32 %v4728_v2, %v9711_v19 }
 0xc1e   : > { %v9717_v56 = vpop.f32.mrf.mxu0 }
 0xc1f   : > { %v4735_v6 = vmax.f32 %v4731_v43, %v9717_v56  ;;  %v4736_v23 = vmax.f32 %v4732_v52, %v4733_v63 }
 0xc20   : > { %v9723_v20 = vpop.f32.mrf.mxu0 }
 0xc21   : > { %v4734_v9 = vmax.f32 %v4730_v35, %v9723_v20 }
 0xc23   : > { %v4737_v50 = vmax.f32 %v4734_v9, %v4735_v6 }
 0xc25   : > { %v4738_v24 = vmax.f32 %v4736_v23, %v4737_v50 }
 0xc27   : > { %v4739_v46 = vrot.slane %v4738_v24, 4 }
 0xc29   : > { %v4740_v59 = vmax.f32 %v4738_v24, %v4739_v46 }
 0xc2b   : > { %v4741_v13 = vrot.slane %v4740_v59, 2 }
 0xc2d   : > { %v4742_v16 = vmax.f32 %v4740_v59, %v4741_v13 }
 0xc2f   : > { %v4743_v4 = vrot.slane %v4742_v16, 1 }
 0xc31   : > { %v9728_v21 = vmax.f32 %v4742_v16, %v4743_v4 }
 0xc33   : > { %v4745_v42 = vsub.f32 %v9634_v28, %v9728_v21  ;;  %v4746_v0 = vsub.f32 %v9630_v38, %v9728_v21  ;;  %v4747_v7 = vsub.f32 %v9638_v54, %v9728_v21  ;;  %v4748_v34 = vsub.f32 %v9636_v5, %v9728_v21 }
 0xc34   : > { %v4749_v17 = vsub.f32 %v9642_v55, %v9728_v21  ;;  %v4750_v49 = vsub.f32 %v9640_v29, %v9728_v21  ;;  %v4751_v38 = vsub.f32 %v9646_v47, %v9728_v21  ;;  %v4752_v5 = vsub.f32 %v9644_v25, %v9728_v21 }
 0xc35   : > { %v4777_v10 = vmul.f32 1.442695, %v4745_v42  ;;  %v4779_v44 = vmul.f32 1.442695, %v4746_v0  ;;  %v4781_v18 = vmul.f32 1.442695, %v4747_v7  ;;  %v4753_v55 = vsub.f32 %v9650_v3, %v9728_v21 }
 0xc36   : > { %v4783_v28 = vmul.f32 1.442695, %v4748_v34  ;;  %v4785_v54 = vmul.f32 1.442695, %v4749_v17  ;;  %v4787_v62 = vmul.f32 1.442695, %v4750_v49  ;;  %v4754_v29 = vsub.f32 %v9648_v33, %v9728_v21 }
 0xc37   : > { %6920 = vpow2.f32 %v4777_v10  ;;  %v4789_v58 = vmul.f32 1.442695, %v4751_v38  ;;  %v4791_v36 = vmul.f32 1.442695, %v4752_v5  ;;  %v4755_v47 = vsub.f32 %v9654_v32, %v9728_v21 }
 0xc38   : > { %6922 = vpow2.f32 %v4779_v44  ;;  %v4793_v1 = vmul.f32 1.442695, %v4753_v55  ;;  %v4756_v25 = vsub.f32 %v9652_v26, %v9728_v21  ;;  %v4795_v61 = vmul.f32 1.442695, %v4754_v29 }
 0xc39   : > { %6924 = vpow2.f32 %v4781_v18  ;;  %v4757_v43 = vsub.f32 %v9658_v27, %v9728_v21  ;;  %v4797_v33 = vmul.f32 1.442695, %v4755_v47  ;;  %v4758_v52 = vsub.f32 %v9656_v37, %v9728_v21 }
 0xc3a   : > { %6926 = vpow2.f32 %v4783_v28  ;;  %v4799_v63 = vmul.f32 1.442695, %v4756_v25  ;;  %v4759_v9 = vsub.f32 %v9662_v39, %v9728_v21  ;;  %v4760_v24 = vsub.f32 %v9660_v53, %v9728_v21 }
 0xc3b   : > { %6928 = vpow2.f32 %v4785_v54  ;;  %v4801_v27 = vmul.f32 1.442695, %v4757_v43  ;;  %v4803_v37 = vmul.f32 1.442695, %v4758_v52  ;;  %v4761_v13 = vsub.f32 %v9666_v14, %v9728_v21 }
 0xc3c   : > { %6930 = vpow2.f32 %v4787_v62  ;;  %v4805_v39 = vmul.f32 1.442695, %v4759_v9  ;;  %v4776_v4 = vsub.f32 %v9717_v56, %v9728_v21  ;;  %v4762_v53 = vsub.f32 %v9664_v40, %v9728_v21 }
 0xc3d   : > { %6932 = vpow2.f32 %v4789_v58  ;;  %v4775_v0 = vsub.f32 %v9723_v20, %v9728_v21  ;;  %v4807_v7 = vmul.f32 1.442695, %v4760_v24  ;;  %v4763_v10 = vsub.f32 %v9670_v57, %v9728_v21 }
 0xc3e   : > { %6934 = vpow2.f32 %v4791_v36  ;;  %v4809_v17 = vmul.f32 1.442695, %v4761_v13  ;;  %v4774_v56 = vsub.f32 %v9705_v15, %v9728_v21  ;;  %v4839_v40 = vmul.f32 1.442695, %v4776_v4 }
 0xc3f   : > { %6936 = vpow2.f32 %v4793_v1  ;;  %v4764_v20 = vsub.f32 %v9668_v11, %v9728_v21  ;;  %v4811_v49 = vmul.f32 1.442695, %v4762_v53  ;;  %v4773_v28 = vsub.f32 %v9711_v19, %v9728_v21 }
 0xc40   : > { %6938 = vpow2.f32 %v4795_v61  ;;  %v4837_v38 = vmul.f32 1.442695, %v4775_v0  ;;  %v4765_v15 = vsub.f32 %v9674_v22, %v9728_v21  ;;  %v4813_v5 = vmul.f32 1.442695, %v4763_v10 }
 0xc41   : > { %6940 = vpow2.f32 %v4797_v33  ;;  %v4772_v62 = vsub.f32 %v9693_v45, %v9728_v21  ;;  %v4835_v55 = vmul.f32 1.442695, %v4774_v56  ;;  %v4766_v19 = vsub.f32 %v9672_v8, %v9728_v21 }
 0xc42   : > { %6942 = vpow2.f32 %v4799_v63  ;;  %v4815_v29 = vmul.f32 1.442695, %v4764_v20  ;;  %v4771_v36 = vsub.f32 %v9699_v60, %v9728_v21  ;;  %v4833_v22 = vmul.f32 1.442695, %v4773_v28 }
 0xc43   : > { %6944 = vpow2.f32 %v4801_v27  ;;  %v4767_v45 = vsub.f32 %v9678_v12, %v9728_v21  ;;  %v4817_v25 = vmul.f32 1.442695, %v4765_v15  ;;  %v4770_v61 = vsub.f32 %v9680_v30, %v9728_v21 }
 0xc44   : > { %v9752_v2 = vpop.eup %6920  ;;  %6946 = vpow2.f32 %v4803_v37  ;;  %v4831_v43 = vmul.f32 1.442695, %v4772_v62  ;;  %v4768_v60 = vsub.f32 %v9676_v48, %v9728_v21  ;;  %v4769_v52 = vsub.f32 %v9684_v31, %v9728_v21 }
 0xc45   : > { %v9756_v3 = vpop.eup %6922  ;;  %6948 = vpow2.f32 %v4805_v39  ;;  %v4829_v63 = vmul.f32 1.442695, %v4771_v36  ;;  %v4821_v9 = vmul.f32 1.442695, %v4767_v45  ;;  %v4827_v27 = vmul.f32 1.442695, %v4770_v61 }
 0xc46   : > { %v4841_v35 = vadd.f32 %v9756_v3, %v9752_v2  ;;  %v9762_v32 = vpop.eup %6924  ;;  %6950 = vpow2.f32 %v4807_v7  ;;  %v4823_v24 = vmul.f32 1.442695, %v4768_v60  ;;  %v4825_v37 = vmul.f32 1.442695, %v4769_v52  ;;  %v10276_v52 = vld [vmem:[#allocation28_spill] sm:$0xff] }
 0xc47   : > { %v9767_v6 = vpop.eup %6926  ;;  %6952 = vpow2.f32 %v4809_v17 }
 0xc48   : > { %v4842_v26 = vadd.f32 %v9762_v32, %v4841_v35  ;;  %v9772_v50 = vpop.eup %6928  ;;  %6954 = vpow2.f32 %v4839_v40  ;;  %v4819_v35 = vmul.f32 1.442695, %v4766_v19 }
 0xc49   : > { %v9777_v59 = vpop.eup %6930  ;;  %6956 = vpow2.f32 %v4811_v49 }
 0xc4a   : > { %v4843_v23 = vadd.f32 %v9767_v6, %v4842_v26  ;;  %v9784_v42 = vpop.eup %6932  ;;  %6958 = vpow2.f32 %v4837_v38 }
 0xc4b   : > { %v9791_v14 = vpop.eup %6934  ;;  %6960 = vpow2.f32 %v4813_v5 }
 0xc4c   : > { %v4844_v46 = vadd.f32 %v9772_v50, %v4843_v23  ;;  %v9798_v18 = vpop.eup %6936  ;;  %6962 = vpow2.f32 %v4835_v55 }
 0xc4d   : > { %v9805_v54 = vpop.eup %6938  ;;  %6964 = vpow2.f32 %v4815_v29 }
 0xc4e   : > { %v4845_v16 = vadd.f32 %v9777_v59, %v4844_v46  ;;  %v9812_v58 = vpop.eup %6940  ;;  %6966 = vpow2.f32 %v4833_v22 }
 0xc4f   : > { %v6943_v1 = vpop.eup %6942  ;;  %6968 = vpow2.f32 %v4817_v25 }
 0xc50   : > { %v4846_v34 = vadd.f32 %v9784_v42, %v4845_v16  ;;  %v6945_v33 = vpop.eup %6944  ;;  %6970 = vpow2.f32 %v4831_v43 }
 0xc51   : > { %v6947_v26 = vpop.eup %6946  ;;  %6972 = vpow2.f32 %v4819_v35  ;;  %v10275_v35 = vld [vmem:[#allocation7_spill] sm:$0xff] }
 0xc52   : > { %v4847_v44 = vadd.f32 %v9791_v14, %v4846_v34  ;;  %v6949_v23 = vpop.eup %6948  ;;  %6974 = vpow2.f32 %v4829_v63  ;;  %v4954_v63 = vld [vmem:[%s9930_s3] sm:$0xff] }
 0xc53   : > { %v6951_v46 = vpop.eup %6950  ;;  %6976 = vpow2.f32 %v4821_v9  ;;  %v4956_v9 = vld [vmem:[%s9930_s3 + $0x10] sm:$0xff] }
 0xc54   : > { %v4848_v57 = vadd.f32 %v9798_v18, %v4847_v44  ;;  %v9827_v13 = vpop.eup %6952  ;;  %6978 = vpow2.f32 %v4827_v27  ;;  %v4957_v27 = vld [vmem:[%s9930_s3 + $0x18] sm:$0xff] }
 0xc55   : > { %v9829_v21 = vpop.eup %6954  ;;  %6980 = vpow2.f32 %v4823_v24 }
 0xc56   : > { %v4849_v11 = vadd.f32 %v9805_v54, %v4848_v57  ;;  %v6957_v39 = vpop.eup %6956  ;;  %6982 = vpow2.f32 %v4825_v37  ;;  %5970 = vmatprep.subr.mxu1 %v9829_v21 }
 0xc57   : > { %v6959_v4 = vpop.eup %6958  ;;  %5971 = vmatpush3.msra.mxu1 %v6951_v46 }
 0xc58   : > { %v4850_v47 = vadd.f32 %v9812_v58, %v4849_v11  ;;  %v6961_v53 = vpop.eup %6960  ;;  %5972 = vmatprep.subr.mxu1 %v6959_v4 }
 0xc59   : > { %v6963_v7 = vpop.eup %6962  ;;  %5973 = vmatpush3.msra.mxu1 %v6949_v23 }
 0xc5a   : > { %v4851_v8 = vadd.f32 %v6943_v1, %v4850_v47  ;;  %v6965_v34 = vpop.eup %6964  ;;  %5974 = vmatprep.subr.mxu1 %v6963_v7 }
 0xc5b   : > { %v6967_v17 = vpop.eup %6966  ;;  %5975 = vmatpush3.msra.mxu1 %v6947_v26 }
 0xc5c   : > { %v4852_v12 = vadd.f32 %v6945_v33, %v4851_v8  ;;  %v6969_v56 = vpop.eup %6968  ;;  %5976 = vmatprep.subr.mxu1 %v6967_v17 }
 0xc5d   : > { %v6971_v40 = vpop.eup %6970  ;;  %5977 = vmatpush3.msra.mxu1 %v6945_v33 }
 0xc5e   : > { %v4853_v30 = vadd.f32 %v6947_v26, %v4852_v12  ;;  %v6973_v20 = vpop.eup %6972  ;;  %5978 = vmatprep.subr.mxu1 %v6971_v40  ;;  %v10277_v12 = vld [vmem:[#allocation26_spill] sm:$0xff]  ;;  %v10278_v26 = vld [vmem:[#allocation24_spill] sm:$0xff] }
 0xc5f   : > { %v6975_v28 = vpop.eup %6974  ;;  %5979 = vmatpush3.msra.mxu1 %v6943_v1 }
 0xc60   : > { %v4854_v48 = vadd.f32 %v6949_v23, %v4853_v30  ;;  %v6977_v38 = vpop.eup %6976  ;;  %5980 = vmatprep.subr.mxu1 %v6975_v28  ;;  %v4973_v30 = vpop.permute.xlu0 %4972 }
 0xc61   : > { %v6979_v15 = vpop.eup %6978  ;;  %5981 = vmatpush3.msra.mxu1 %v9812_v58  ;;  %v4978_v23 = vpop.permute.xlu1 %4977 }
 0xc62   : > { %v4855_v31 = vadd.f32 %v6951_v46, %v4854_v48  ;;  %v6981_v5 = vpop.eup %6980  ;;  %5982 = vmatprep.subr.mxu1 %v6979_v15 }
 0xc63   : > { %v6983_v55 = vpop.eup %6982  ;;  %5983 = vmatpush3.msra.mxu1 %v9805_v54 }
 0xc64   : > { %v4856_v16 = vadd.f32 %v9827_v13, %v4855_v31  ;;  %5984 = vmatprep.subr.mxu1 %v6983_v55 }
 0xc65   : > { %5985 = vmatpush3.msra.mxu1 %v9798_v18 }
 0xc66   : > { %v4857_v0 = vadd.f32 %v6957_v39, %v4856_v16  ;;  %5986 = vmatprep.subr.mxu1 %v6981_v5 }
 0xc67   : > { %5987 = vmatpush3.msra.mxu1 %v9791_v14 }
 0xc68   : > { %v4858_v10 = vadd.f32 %v6961_v53, %v4857_v0  ;;  %5988 = vmatprep.subr.mxu1 %v6977_v38 }
 0xc69   : > { %5989 = vmatpush3.msra.mxu1 %v9784_v42 }
 0xc6a   : > { %v4859_v44 = vadd.f32 %v6965_v34, %v4858_v10  ;;  %5990 = vmatprep.subr.mxu1 %v6973_v20 }
 0xc6b   : > { %5991 = vmatpush3.msra.mxu1 %v9777_v59 }
 0xc6c   : > { %v4860_v49 = vadd.f32 %v6969_v56, %v4859_v44  ;;  %5992 = vmatprep.subr.mxu1 %v6969_v56 }
 0xc6d   : > { %5993 = vmatpush3.msra.mxu1 %v9772_v50  ;;  %v10272_v50 = vmov 0.0  }
 0xc6e   : > { %v4861_v57 = vadd.f32 %v6973_v20, %v4860_v49  ;;  %5994 = vmatprep.subr.mxu1 %v6965_v34 }
 0xc6f   : > { %5995 = vmatpush3.msra.mxu1 %v9767_v6 }
 0xc70   : > { %v4862_v62 = vadd.f32 %v6977_v38, %v4861_v57  ;;  %5996 = vmatprep.subr.mxu1 %v6961_v53 }
 0xc71   : > { %5997 = vmatpush3.msra.mxu1 %v9762_v32 }
 0xc72   : > { %v4863_v11 = vadd.f32 %v6981_v5, %v4862_v62  ;;  %5998 = vmatprep.subr.mxu1 %v6957_v39 }
 0xc73   : > { %5999 = vmatpush3.msra.mxu1 %v9756_v3 }
 0xc74   : > { %v4864_v19 = vadd.f32 %v6983_v55, %v4863_v11  ;;  %6000 = vmatprep.subr.mxu1 %v9827_v13 }
 0xc75   : > { %6001 = vmatpush3.msra.mxu1 %v9752_v2  ;;  %v10274_v2 = vld [vmem:[#allocation14_spill] sm:$0xff] }
 0xc76   : > { %v4865_v29 = vadd.f32 %v6979_v15, %v4864_v19  ;;  %4943 = vmatmul.mubr.f32.vlgmr.msra.gmra.mxu1 %v9560_v51  ;;  %v10273_v51 = vld [vmem:[#allocation44_spill] sm:$0xff] }
 0xc77   : > { %5066 = vmatprep.mubr.f32.mxu1 %v10272_v50 }
 0xc78   : > { %v4866_v36 = vadd.f32 %v6975_v28, %v4865_v29 }
 0xc7a   : > { %v4867_v58 = vadd.f32 %v6971_v40, %v4866_v36 }
 0xc7c   : > { %v4868_v54 = vadd.f32 %v6967_v17, %v4867_v58 }
 0xc7e   : > { %v4869_v18 = vadd.f32 %v6963_v7, %v4868_v54 }
 0xc80   : > { %v4870_v14 = vadd.f32 %v6959_v4, %v4869_v18 }
 0xc82   : > { %v4871_v59 = vadd.f32 %v9829_v21, %v4870_v14  ;;  %v4983_v21 = vpop.permute.xlu1 %4982 }
 0xc84   : > { %v4872_v42 = vrot.slane %v4871_v59, 4 }
 0xc86   : > { %v4873_v6 = vadd.f32 %v4872_v42, %v4871_v59  ;;  %v4988_v34 = vpop.permute.xlu1 %4987 }
 0xc88   : > { %v4874_v22 = vrot.slane %v4873_v6, 2 }
 0xc8a   : > { %v4875_v47 = vadd.f32 %v4874_v22, %v4873_v6 }
 0xc8c   : > { %v4876_v1 = vrot.slane %v4875_v47, 1 }
 0xc8e   : > { %v4877_v32 = vadd.f32 %v4876_v1, %v4875_v47 }
 0xc90   : > { %6984 = vrcp.f32 %v4877_v32 }
 0xc9d   : > { %v6985_v45 = vpop.eup %6984 }
 0xc9e   : > { %v4949_v25 = vmul.f32 %v6985_v45, %v4877_v32 }
 0xca0   : > { %v4950_v3 = vsub.f32 2.0, %v4949_v25 }
 0xca2   : > { %v4951_v33 = vmul.f32 %v6985_v45, %v4950_v3 }
 0xd36   : > { %v6002_v61 = vpop.f32.mrf.mxu1 }
 0xd38   : > { %v6003_v43 = vpop.f32.mrf.mxu1 }
 0xd39   : > { %v6004_v8 = vadd.f32 %v6003_v43, %v6002_v61 }
 0xd3b   : > { %v4952_v60 = vmul.f32 %v6004_v8, %v4951_v33 }
 0xd3d   : > { %5026 = vmatprep.subr.mxu1 %v4952_v60 }
 0xd3e   : > { %5027 = vmatpush1.msra.mxu1 %v9632_v41  ;;  %v4955_v41 = vld [vmem:[%s9930_s3 + $0x8] sm:$0xff] }
 0xd3f   : > { %5028 = vmatprep.subr.mxu1 %v10273_v51 }
 0xd40   : > { %5029 = vmatpush1.msra.mxu1 %v10274_v2 }
 0xd41   : > { %5030 = vmatprep.subr.mxu1 %v10275_v35 }
 0xd42   : > { %5031 = vmatpush1.msra.mxu1 %v10276_v52 }
 0xd43   : > { %5032 = vmatprep.subr.mxu1 %v10277_v12 }
 0xd44   : > { %5033 = vmatpush1.msra.mxu1 %v10278_v26 }
 0xd45   : > { %5450 = vmatmul.mubr.msk.f32.vlgmr.msra.gmra.mxu1 %vm315_vm0, %v4954_v63 }
 0xd46   : > { %5072 = vmatprep.mubr.f32.mxu1 %v10272_v50 }
 0xd49   : > { %5451 = vmatmul.mubr.msk.f32.gmra.mxu1 %vm315_vm0, %v4955_v41 }
 0xd4a   : > { %5078 = vmatprep.mubr.f32.mxu1 %v10272_v50 }
 0xd4d   : > { %5452 = vmatmul.mubr.msk.f32.gmra.mxu1 %vm315_vm0, %v4956_v9 }
 0xd4e   : > { %5084 = vmatprep.mubr.f32.mxu1 %v10272_v50 }
 0xd51   : > { %5453 = vmatmul.mubr.msk.f32.gmra.mxu1 %vm315_vm0, %v4957_v27 }
 0xe05   : > { %v5068_v24 = vpop.f32.mrf.mxu1 }
 0xe06   : > { %v5069_v37 = vadd.f32 %v5068_v24, %v4973_v30 }
 0xe07   : > { %v5070_v48 = vpop.f32.mrf.mxu1 }
 0xe08   : > { %5091 = vst [vmem:[%s217_s12] sm:$0xff] %v5069_v37  ;;  %v5071_v46 = vadd.f32 %v5070_v48, %v4973_v30 }
 0xe09   : > { %v5074_v13 = vpop.f32.mrf.mxu1 }
 0xe0a   : > { %5092 = vst [vmem:[%s217_s12 + $0x8] sm:$0xff] %v5071_v46  ;;  %v5075_v31 = vadd.f32 %v5074_v13, %v4978_v23 }
 0xe0b   : > { %v5076_v39 = vpop.f32.mrf.mxu1 }
 0xe0c   : > { %5093 = vst [vmem:[%s217_s12 + $0x10] sm:$0xff] %v5075_v31  ;;  %v5077_v16 = vadd.f32 %v5076_v39, %v4978_v23 }
 0xe0d   : > { %v5080_v4 = vpop.f32.mrf.mxu1 }
 0xe0e   : > { %5094 = vst [vmem:[%s217_s12 + $0x18] sm:$0xff] %v5077_v16  ;;  %v5081_v53 = vadd.f32 %v5080_v4, %v4983_v21 }
 0xe0f   : > { %v5082_v0 = vpop.f32.mrf.mxu1 }
 0xe10   : > { %5095 = vst [vmem:[%s217_s12 + $0x20] sm:$0xff] %v5081_v53  ;;  %v5083_v7 = vadd.f32 %v5082_v0, %v4983_v21 }
 0xe11   : > { %v5086_v10 = vpop.f32.mrf.mxu1 }
 0xe12   : > { %5096 = vst [vmem:[%s217_s12 + $0x28] sm:$0xff] %v5083_v7  ;;  %v5087_v17 = vadd.f32 %v5086_v10, %v4988_v34 }
 0xe13   : > { %v5088_v56 = vpop.f32.mrf.mxu1 }
 0xe14   : > { %5097 = vst [vmem:[%s217_s12 + $0x30] sm:$0xff] %v5087_v17  ;;  %v5089_v44 = vadd.f32 %v5088_v56, %v4988_v34 }
 0xe16   : > { %5098 = vst [vmem:[%s217_s12 + $0x38] sm:$0xff] %v5089_v44 }
 0xe17   : > { %6999 = shalt.err (!%p6996_p3)
}
 0xe18   : > { %s7000_s6 = scalar_lea.hbm %s9881_s17, 1024  ;;  %s7004_s9 = scalar_lea.hbm %s9932_s5, 2048 }
 0xe19   : > { %p7001_p4 = scmp.ne.s32.totalorder %s9881_s17, %s7000_s6  ;;  %p7005_p9 = scmp.lt.s32.totalorder %s9881_s17, %s9932_s5 }
 0xe1a   : > { %p7006_p10 = scmp.lt.s32.totalorder %s7004_s9, %s7000_s6 }
 0xe1b   : > { %p7002_p7 = pnand %p7001_p4, %p7121_p5 }
 0xe1c   : > { %p7007_p11 = por %p7006_p10, %p7005_p9 }
 0xe1d   : > { %p7003_p8 = pneg %p7002_p7 }
 0xe1f   : > { %p7008_p12 = pnand %p7007_p11, %p7003_p8 }
 0xe21   : > { %7011 = shalt.err (!%p7008_p12)
}
 0xe22   : > { %s7051_s12 = smov 256   ;;  %s7052_s13 = smov 16  }
 0xe23   : > { %6413 = dma.vmem_to_hbm [thread:$0]  (%p7121_p5), %s9883_s14, 1024, %s9881_s17, %s9887_s22, %s7051_s12, %s7051_s12, %s7052_s13  }
 0xe24 PF: > { %p6419_p13 = scmp.ge.s32.totalorder %s7046_s21, 2  ;;  %s5128_s15 = sand.u32 1, %s7034_s18  }
 0xe25   : > { %s5129_s16 = scalar_lea.sflag [#allocation5], %s5128_s15 }
 0xe26   : > { %p6416_p0 = pnand %p6419_p13, %p7125_p6 }
 0xe28   : > { %p6417_p1 = pneg %p6416_p0 }
 0xe2a   : > { %7029 = dma.done.wait (%p6417_p1), %s5129_s16, 1024  }
 0xe2b   : > { %7031 = vsyncadd (%p6417_p1), %s5129_s16, 4294966272  ;;  %p15_p2 = scmp.ge.s32.totalorder %s7108_s24, 4   ;;  %s10279_s18 = smov %s7038_s19 }
 0xe2c   : > { %s10280_s19 = smov %s7042_s20  ;;  %s10281_s20 = smov %s7119_s27 }
 0xe2d   : > { %s10282_s21 = smov %s7108_s24  ;;  %17 = sbr.rel (!%p15_p2) target bundleno = 3 (0x3), region = 75 }
 0xe32   :  { %5134 = vsyncpa [#allocation5], 1 }
 0xe33   :  { %5136 = vsyncpa [#allocation5 + $0x1], 1 }

</bundles_post_ra>
